<compile_context>
chip_gen: v6e
topology: v6e:2x2x1
jax: 0.10.0
libtpu: 0.0.40
codegen_flags: <defaults>
</compile_context>

<pallas_src>
import functools

import jax
import jax.numpy as jnp
from jax import lax
from jax.experimental import pallas as pl
from jax.experimental.pallas import tpu as pltpu

_EPS = 1e-5


def _mosaic_params(step_bytes):
    """Compiler params with a VMEM limit derived from the per-step footprint.

    Capped at 48 MiB so there is headroom below v7x's 64 MiB physical VMEM;
    raised above the scoped default only when the tiles actually need it.
    """
    limit = int(min(48 * 1024 * 1024, max(2 * int(step_bytes), 8 * 1024 * 1024)))
    return pltpu.CompilerParams(dimension_semantics=("parallel",),
                                vmem_limit_bytes=limit)


def _zero_halo_border(pad_ref, h, w):
    """Zero only the 1-wide halo border of the (h+2, w+2, cin) scratch."""
    cin = pad_ref.shape[-1]
    dt = pad_ref.dtype
    pad_ref[0:1, :, :] = jnp.zeros((1, w + 2, cin), dt)
    pad_ref[h + 1:h + 2, :, :] = jnp.zeros((1, w + 2, cin), dt)
    pad_ref[:, 0:1, :] = jnp.zeros((h + 2, 1, cin), dt)
    pad_ref[:, w + 1:w + 2, :] = jnp.zeros((h + 2, 1, cin), dt)


def _conv3x3_accum(pad_ref, w_ref, h, w, conv_dtype):
    """3x3 'same' conv of one padded tile as 9 accumulated MXU matmuls.

    pad_ref : (h+2, w+2, cin) f32 VMEM scratch (border zeroed, interior set).
    w_ref   : (9, cin, cout) weights, tap-major (ky*3+kx), conv_dtype.
    Returns a (h*w, cout) float32 accumulator.
    """
    cin = pad_ref.shape[-1]
    acc = None
    for ky in range(3):
        for kx in range(3):
            patch = pad_ref[ky:ky + h, kx:kx + w, :].reshape(h * w, cin)
            part = jnp.dot(patch.astype(conv_dtype), w_ref[ky * 3 + kx],
                           preferred_element_type=jnp.float32)
            acc = part if acc is None else acc + part
    return acc


# ---------------- pass 1: conv1 + per-sample channel sum / sumsq ------------
def _conv1_stats_kernel(x_ref, w_ref, y_ref, s_ref, q_ref, pad_ref,
                        *, h, w, conv_dtype):
    _zero_halo_border(pad_ref, h, w)
    pad_ref[1:h + 1, 1:w + 1, :] = x_ref[...][0].astype(pad_ref.dtype)
    acc = _conv3x3_accum(pad_ref, w_ref, h, w, conv_dtype)     # (h*w, C) f32
    y_ref[...] = acc.reshape(1, h, w, -1).astype(y_ref.dtype)
    s_ref[...] = jnp.sum(acc, axis=0).reshape(1, 1, -1)
    q_ref[...] = jnp.sum(acc * acc, axis=0).reshape(1, 1, -1)


# ------- pass 2: bn1 scale/shift + ReLU + conv2 + channel sum / sumsq -------
def _norm_conv2_stats_kernel(y_ref, w_ref, sc_ref, sh_ref,
                             z_ref, s_ref, q_ref, pad_ref,
                             *, h, w, conv_dtype):
    y = y_ref[...][0].astype(jnp.float32)                      # (h, w, C)
    hn = jnp.maximum(y * sc_ref[...] + sh_ref[...], 0.0)       # IBN-a + ReLU
    _zero_halo_border(pad_ref, h, w)
    pad_ref[1:h + 1, 1:w + 1, :] = hn.astype(pad_ref.dtype)
    acc = _conv3x3_accum(pad_ref, w_ref, h, w, conv_dtype)     # (h*w, C) f32
    z_ref[...] = acc.reshape(1, h, w, -1).astype(z_ref.dtype)
    s_ref[...] = jnp.sum(acc, axis=0).reshape(1, 1, -1)
    q_ref[...] = jnp.sum(acc * acc, axis=0).reshape(1, 1, -1)


# ------------------ pass 3: bn2 + residual add + ReLU -----------------------
def _bn2_residual_relu_kernel(z_ref, x_ref, sc_ref, sh_ref, o_ref):
    z = z_ref[...].astype(jnp.float32)                         # (1, h, w, C)
    r = x_ref[...].astype(jnp.float32)
    o_ref[...] = jnp.maximum(z * sc_ref[...] + sh_ref[...] + r,
                             0.0).astype(o_ref.dtype)


def basic_block_ibn_forward_nhwc(x_nhwc, params, *,
                                 conv_dtype=jnp.bfloat16,
                                 act_dtype=jnp.bfloat16):
    """BasicBlock_IBN forward with NHWC activations."""
    n, h, w, c = x_nhwc.shape
    planes, inplanes = params["conv1_w"].shape[0], params["conv1_w"].shape[1]
    half = params["in1_w"].shape[0]
    assert c == inplanes and inplanes == planes, \
        "identity residual needs inplanes == planes"

    x32 = x_nhwc.astype(jnp.float32)

    def prep_conv_w(w_oihw):
        # OIHW -> (ky*3+kx, cin, cout), MXU operand dtype.
        w_t = jnp.transpose(w_oihw, (2, 3, 1, 0)).astype(jnp.float32)
        return w_t.reshape(9, w_t.shape[2], w_t.shape[3]).astype(conv_dtype)

    w1 = prep_conv_w(params["conv1_w"])          # (9, inplanes, planes)
    w2 = prep_conv_w(params["conv2_w"])          # (9, planes,   planes)

    def vec(v):
        return v.reshape(1, 1, -1).astype(jnp.float32)

    g1 = vec(jnp.concatenate([params["in1_w"], params["bn1_w"]]))
    b1 = vec(jnp.concatenate([params["in1_b"], params["bn1_b"]]))
    g2 = vec(params["bn2_w"])
    b2 = vec(params["bn2_b"])
    in_mask = (jnp.arange(planes) < half).reshape(1, 1, planes)

    # ----------------------------- specs ------------------------------------
    x_spec = pl.BlockSpec((1, h, w, c), lambda i: (i, 0, 0, 0))
    act_spec = pl.BlockSpec((1, h, w, planes), lambda i: (i, 0, 0, 0))
    w1_spec = pl.BlockSpec((9, inplanes, planes), lambda i: (0, 0, 0))
    w2_spec = pl.BlockSpec((9, planes, planes), lambda i: (0, 0, 0))
    per_n_vec = pl.BlockSpec((1, 1, planes), lambda i: (i, 0, 0))
    shared_vec = pl.BlockSpec((1, 1, planes), lambda i: (0, 0, 0))

    stat_shape = jax.ShapeDtypeStruct((n, 1, planes), jnp.float32)
    act_shape = jax.ShapeDtypeStruct((n, h, w, planes), act_dtype)

    esize = jnp.dtype(conv_dtype).itemsize
    asize = jnp.dtype(act_dtype).itemsize
    pad_bytes = (h + 2) * (w + 2) * max(c, planes) * 4
    acc_bytes = h * w * planes * 4
    conv_step_bytes = (2 * (h * w * c * 4 + 9 * c * planes * esize
                            + h * w * planes * asize + 4 * planes * 4)
                       + pad_bytes + acc_bytes)
    fuse_step_bytes = 2 * (h * w * planes * asize + h * w * c * 4
                           + h * w * planes * 4 + 2 * planes * 4)

    conv1_cost = pl.CostEstimate(
        flops=int(2 * n * h * w * 9 * c * planes + 3 * n * h * w * planes),
        transcendentals=0,
        bytes_accessed=int(n * h * w * c * 4 + 9 * c * planes * esize
                           + n * h * w * planes * asize + 2 * n * planes * 4))
    conv2_cost = pl.CostEstimate(
        flops=int(2 * n * h * w * 9 * planes * planes + 6 * n * h * w * planes),
        transcendentals=0,
        bytes_accessed=int(2 * n * h * w * planes * asize
                           + 9 * planes * planes * esize
                           + 4 * n * planes * 4))
    fuse_cost = pl.CostEstimate(
        flops=int(4 * n * h * w * planes),
        transcendentals=0,
        bytes_accessed=int(n * h * w * planes * asize + n * h * w * c * 4
                           + n * h * w * planes * 4 + 4 * planes * 4))

    # ---------------- pass 1: conv1 + partial IN/BN statistics --------------
    y1, s1, q1 = pl.pallas_call(
        functools.partial(_conv1_stats_kernel, h=h, w=w, conv_dtype=conv_dtype),
        grid=(n,),
        in_specs=[x_spec, w1_spec],
        out_specs=(act_spec, per_n_vec, per_n_vec),
        out_shape=(act_shape, stat_shape, stat_shape),
        scratch_shapes=[pltpu.VMEM((h + 2, w + 2, c), jnp.float32)],
        compiler_params=_mosaic_params(conv_step_bytes),
        cost_estimate=conv1_cost,
    )(x32, w1)

    # ---- finalize bn1 = IBN('a') statistics (tiny (N,1,C) XLA glue) --------
    hw_f = float(h * w)
    nhw_f = float(n * h * w)
    mu_in = s1 / hw_f                                          # per-sample IN
    var_in = jnp.maximum(q1 / hw_f - mu_in * mu_in, 0.0)
    mu_bn = jnp.sum(s1, axis=0, keepdims=True) / nhw_f         # whole-batch BN
    var_bn = jnp.maximum(
        jnp.sum(q1, axis=0, keepdims=True) / nhw_f - mu_bn * mu_bn, 0.0)
    mu1 = jnp.where(in_mask, mu_in, mu_bn)
    var1 = jnp.where(in_mask, var_in, var_bn)
    scale1 = g1 * lax.rsqrt(var1 + _EPS)                       # (n, 1, planes)
    shift1 = b1 - mu1 * scale1

    # -------- pass 2: bn1 + ReLU + conv2 + partial bn2 statistics -----------
    z, s2, q2 = pl.pallas_call(
        functools.partial(_norm_conv2_stats_kernel, h=h, w=w,
                          conv_dtype=conv_dtype),
        grid=(n,),
        in_specs=[act_spec, w2_spec, per_n_vec, per_n_vec],
        out_specs=(act_spec, per_n_vec, per_n_vec),
        out_shape=(act_shape, stat_shape, stat_shape),
        scratch_shapes=[pltpu.VMEM((h + 2, w + 2, planes), jnp.float32)],
        compiler_params=_mosaic_params(conv_step_bytes),
        cost_estimate=conv2_cost,
    )(y1, w2, scale1, shift1)

    # ---------------- finalize bn2 statistics -------------------------------
    mu2 = jnp.sum(s2, axis=0, keepdims=True) / nhw_f
    var2 = jnp.maximum(
        jnp.sum(q2, axis=0, keepdims=True) / nhw_f - mu2 * mu2, 0.0)
    scale2 = g2 * lax.rsqrt(var2 + _EPS)                       # (1, 1, planes)
    shift2 = b2 - mu2 * scale2

    # ---------------- pass 3: bn2 + residual add + ReLU ----------------------
    out = pl.pallas_call(
        _bn2_residual_relu_kernel,
        grid=(n,),
        in_specs=[act_spec, x_spec, shared_vec, shared_vec],
        out_specs=act_spec,
        out_shape=jax.ShapeDtypeStruct((n, h, w, planes), x_nhwc.dtype),
        compiler_params=_mosaic_params(fuse_step_bytes),
        cost_estimate=fuse_cost,
    )(z, x32, scale2, shift2)

    return out


def basic_block_ibn_forward(x_nchw, params, *,
                            conv_dtype=jnp.bfloat16, act_dtype=jnp.bfloat16):
    """PyTorch-layout (NCHW) entry point."""
    out = basic_block_ibn_forward_nhwc(
        jnp.transpose(x_nchw, (0, 2, 3, 1)), params,
        conv_dtype=conv_dtype, act_dtype=act_dtype)
    return jnp.transpose(out, (0, 3, 1, 2))


def init_params(key, inplanes, planes, ratio=0.5):
    """Deterministic parameters in PyTorch layout (non-trivial affines)."""
    half = int(planes * ratio)
    ks = jax.random.split(key, 8)
    conv1_w = jax.random.normal(ks[0], (planes, inplanes, 3, 3), jnp.float32) * (
        2.0 / (inplanes * 9)) ** 0.5
    conv2_w = jax.random.normal(ks[1], (planes, planes, 3, 3), jnp.float32) * (
        2.0 / (planes * 9)) ** 0.5
    return dict(
        conv1_w=conv1_w, conv2_w=conv2_w,
        in1_w=1.0 + 0.1 * jax.random.normal(ks[2], (half,), jnp.float32),
        in1_b=0.05 * jax.random.normal(ks[3], (half,), jnp.float32),
        bn1_w=1.0 + 0.1 * jax.random.normal(ks[4], (planes - half,), jnp.float32),
        bn1_b=0.05 * jax.random.normal(ks[5], (planes - half,), jnp.float32),
        bn2_w=1.0 + 0.1 * jax.random.normal(ks[6], (planes,), jnp.float32),
        bn2_b=0.05 * jax.random.normal(ks[7], (planes,), jnp.float32),
    )


def _reference_forward(x_nchw, params):
    """Pure-JAX (XLA) reference of the PyTorch forward, for self-validation."""
    x = x_nchw.astype(jnp.float32)
    half = params["in1_w"].shape[0]

    def conv(inp, w):
        return lax.conv_general_dilated(
            inp, w, (1, 1), ((1, 1), (1, 1)),
            dimension_numbers=("NCHW", "OIHW", "NCHW"),
            precision=lax.Precision.HIGHEST)

    def affine(v):
        return v.reshape(1, -1, 1, 1)

    def inorm(t, g, b):
        mu = jnp.mean(t, axis=(2, 3), keepdims=True)
        var = jnp.mean((t - mu) ** 2, axis=(2, 3), keepdims=True)
        return (t - mu) * lax.rsqrt(var + _EPS) * affine(g) + affine(b)

    def bnorm(t, g, b):
        mu = jnp.mean(t, axis=(0, 2, 3), keepdims=True)
        var = jnp.mean((t - mu) ** 2, axis=(0, 2, 3), keepdims=True)
        return (t - mu) * lax.rsqrt(var + _EPS) * affine(g) + affine(b)

    h1 = conv(x, params["conv1_w"])
    h1 = jnp.concatenate(
        [inorm(h1[:, :half], params["in1_w"], params["in1_b"]),
         bnorm(h1[:, half:], params["bn1_w"], params["bn1_b"])], axis=1)
    h1 = jnp.maximum(h1, 0.0)
    h2 = bnorm(conv(h1, params["conv2_w"]), params["bn2_w"], params["bn2_b"])
    return jnp.maximum(h2 + x, 0.0)


if __name__ == "__main__":
    key = jax.random.PRNGKey(0)
    kx, kp = jax.random.split(key)

    inplanes = planes = 8                  # ibn='a' => InstanceNorm half = 4
    x = jax.random.normal(kx, (2, inplanes, 16, 16), jnp.float32)   # NCHW
    params = init_params(kp, inplanes, planes)
    ref = _reference_forward(x, params)

    # default (bf16 MXU operands + bf16 HBM intermediates, f32 accumulation)
    fwd = jax.jit(basic_block_ibn_forward)
    out = jax.block_until_ready(fwd(x, params))
    assert out.shape == (2, planes, 16, 16)
    assert bool(jnp.all(jnp.isfinite(out))) and bool(jnp.all(out >= 0.0))
    err_bf16 = float(jnp.max(jnp.abs(out - ref)))
    assert err_bf16 < 1e-1, f"bf16 path mismatch vs reference: {err_bf16}"

    # full-f32 path: tighter check of the kernel math itself
    fwd_f32 = jax.jit(lambda a, p: basic_block_ibn_forward(
        a, p, conv_dtype=jnp.float32, act_dtype=jnp.float32))
    out32 = jax.block_until_ready(fwd_f32(x, params))
    err_f32 = float(jnp.max(jnp.abs(out32 - ref)))
    assert err_f32 < 5e-3, f"f32 path mismatch vs reference: {err_f32}"

    print("KERNEL_OK")
</pallas_src>

<mosaic_0001>
module attributes {stable_mosaic.version = 11 : i64} {
  func.func @_bn2_residual_relu_kernel(%arg0: i32, %arg1: memref<1x16x16x8xbf16, #tpu.memory_space<vmem>>, %arg2: memref<1x16x16x8xf32, #tpu.memory_space<vmem>>, %arg3: memref<1x1x8xf32, #tpu.memory_space<vmem>>, %arg4: memref<1x1x8xf32, #tpu.memory_space<vmem>>, %arg5: memref<1x16x16x8xf32, #tpu.memory_space<vmem>>) attributes {dimension_semantics = [#tpu.dimension_semantics<parallel>], iteration_bounds = array<i64: 2>, scalar_prefetch = 0 : i64, scratch_operands = 0 : i64, tpu.core_type = #tpu.core_type<tc>, window_params = [{transform_indices = @transform_0, window_bounds = array<i64: 1, 16, 16, 8>}, {transform_indices = @transform_1, window_bounds = array<i64: 1, 16, 16, 8>}, {pipeline_mode = #tpu.pipeline_mode<synchronous>, transform_indices = @transform_2, window_bounds = array<i64: 1, 1, 8>}, {pipeline_mode = #tpu.pipeline_mode<synchronous>, transform_indices = @transform_3, window_bounds = array<i64: 1, 1, 8>}, {transform_indices = @transform_4, window_bounds = array<i64: 1, 16, 16, 8>}]} {
    %c0 = arith.constant 0 : index
    %c0_0 = arith.constant 0 : index
    %c0_1 = arith.constant 0 : index
    %c0_2 = arith.constant 0 : index
    %0 = vector.load %arg1[%c0, %c0_0, %c0_1, %c0_2] : memref<1x16x16x8xbf16, #tpu.memory_space<vmem>>, vector<1x16x16x8xbf16>
    %1 = arith.extf %0 : vector<1x16x16x8xbf16> to vector<1x16x16x8xf32>
    %c0_3 = arith.constant 0 : index
    %c0_4 = arith.constant 0 : index
    %c0_5 = arith.constant 0 : index
    %c0_6 = arith.constant 0 : index
    %2 = vector.load %arg2[%c0_3, %c0_4, %c0_5, %c0_6] : memref<1x16x16x8xf32, #tpu.memory_space<vmem>>, vector<1x16x16x8xf32>
    %c0_7 = arith.constant 0 : index
    %c0_8 = arith.constant 0 : index
    %c0_9 = arith.constant 0 : index
    %3 = vector.load %arg3[%c0_7, %c0_8, %c0_9] : memref<1x1x8xf32, #tpu.memory_space<vmem>>, vector<1x1x8xf32>
    %4 = vector.shape_cast %3 : vector<1x1x8xf32> to vector<1x1x1x8xf32>
    %5 = vector.broadcast %4 : vector<1x1x1x8xf32> to vector<1x16x16x8xf32>
    %6 = arith.mulf %1, %5 : vector<1x16x16x8xf32>
    %c0_10 = arith.constant 0 : index
    %c0_11 = arith.constant 0 : index
    %c0_12 = arith.constant 0 : index
    %7 = vector.load %arg4[%c0_10, %c0_11, %c0_12] : memref<1x1x8xf32, #tpu.memory_space<vmem>>, vector<1x1x8xf32>
    %8 = vector.shape_cast %7 : vector<1x1x8xf32> to vector<1x1x1x8xf32>
    %9 = vector.broadcast %8 : vector<1x1x1x8xf32> to vector<1x16x16x8xf32>
    %10 = arith.addf %6, %9 : vector<1x16x16x8xf32>
    %11 = arith.addf %10, %2 : vector<1x16x16x8xf32>
    %cst = arith.constant 0.000000e+00 : f32
    %12 = vector.broadcast %cst : f32 to vector<1x16x16x8xf32>
    %13 = arith.maximumf %11, %12 : vector<1x16x16x8xf32>
    %c0_13 = arith.constant 0 : index
    %c0_14 = arith.constant 0 : index
    %c0_15 = arith.constant 0 : index
    %c0_16 = arith.constant 0 : index
    %14 = vector.load %arg5[%c0_13, %c0_14, %c0_15, %c0_16] : memref<1x16x16x8xf32, #tpu.memory_space<vmem>>, vector<1x16x16x8xf32>
    tpu.vector_store %arg5[%c0_13, %c0_14, %c0_15, %c0_16], %13 {strides = array<i32>} : memref<1x16x16x8xf32, #tpu.memory_space<vmem>>, vector<1x16x16x8xf32>,
    return
  }
  func.func @transform_0(%arg0: i32) -> (i32, i32, i32, i32) {
    %c0_i32 = arith.constant 0 : i32
    %c0_i32_0 = arith.constant 0 : i32
    %c0_i32_1 = arith.constant 0 : i32
    %c0_i32_2 = arith.constant 0 : i32
    return %arg0, %c0_i32, %c0_i32_0, %c0_i32_1 : i32, i32, i32, i32
  }
  func.func @transform_1(%arg0: i32) -> (i32, i32, i32, i32) {
    %c0_i32 = arith.constant 0 : i32
    %c0_i32_0 = arith.constant 0 : i32
    %c0_i32_1 = arith.constant 0 : i32
    %c0_i32_2 = arith.constant 0 : i32
    return %arg0, %c0_i32, %c0_i32_0, %c0_i32_1 : i32, i32, i32, i32
  }
  func.func @transform_2(%arg0: i32) -> (i32, i32, i32) {
    %c0_i32 = arith.constant 0 : i32
    %c0_i32_0 = arith.constant 0 : i32
    %c0_i32_1 = arith.constant 0 : i32
    %c0_i32_2 = arith.constant 0 : i32
    return %c0_i32, %c0_i32_0, %c0_i32_1 : i32, i32, i32
  }
  func.func @transform_3(%arg0: i32) -> (i32, i32, i32) {
    %c0_i32 = arith.constant 0 : i32
    %c0_i32_0 = arith.constant 0 : i32
    %c0_i32_1 = arith.constant 0 : i32
    %c0_i32_2 = arith.constant 0 : i32
    return %c0_i32, %c0_i32_0, %c0_i32_1 : i32, i32, i32
  }
  func.func @transform_4(%arg0: i32) -> (i32, i32, i32, i32) {
    %c0_i32 = arith.constant 0 : i32
    %c0_i32_0 = arith.constant 0 : i32
    %c0_i32_1 = arith.constant 0 : i32
    %c0_i32_2 = arith.constant 0 : i32
    return %arg0, %c0_i32, %c0_i32_0, %c0_i32_1 : i32, i32, i32, i32
  }
}

module attributes {stable_mosaic.version = 11 : i64} {
  func.func @_norm_conv2_stats_kernel(%arg0: i32, %arg1: memref<1x16x16x8xbf16, #tpu.memory_space<vmem>>, %arg2: memref<9x8x8xbf16, #tpu.memory_space<vmem>>, %arg3: memref<1x1x8xf32, #tpu.memory_space<vmem>>, %arg4: memref<1x1x8xf32, #tpu.memory_space<vmem>>, %arg5: memref<1x16x16x8xbf16, #tpu.memory_space<vmem>>, %arg6: memref<1x1x8xf32, #tpu.memory_space<vmem>>, %arg7: memref<1x1x8xf32, #tpu.memory_space<vmem>>, %arg8: memref<18x18x8xf32, #tpu.memory_space<vmem>>) attributes {dimension_semantics = [#tpu.dimension_semantics<parallel>], iteration_bounds = array<i64: 2>, scalar_prefetch = 0 : i64, scratch_operands = 1 : i64, tpu.core_type = #tpu.core_type<tc>, window_params = [{transform_indices = @transform_0, window_bounds = array<i64: 1, 16, 16, 8>}, {pipeline_mode = #tpu.pipeline_mode<synchronous>, transform_indices = @transform_1, window_bounds = array<i64: 9, 8, 8>}, {transform_indices = @transform_2, window_bounds = array<i64: 1, 1, 8>}, {transform_indices = @transform_3, window_bounds = array<i64: 1, 1, 8>}, {transform_indices = @transform_4, window_bounds = array<i64: 1, 16, 16, 8>}, {transform_indices = @transform_5, window_bounds = array<i64: 1, 1, 8>}, {transform_indices = @transform_6, window_bounds = array<i64: 1, 1, 8>}]} {
    %c0 = arith.constant 0 : index
    %c0_0 = arith.constant 0 : index
    %c0_1 = arith.constant 0 : index
    %c0_2 = arith.constant 0 : index
    %0 = vector.load %arg1[%c0, %c0_0, %c0_1, %c0_2] : memref<1x16x16x8xbf16, #tpu.memory_space<vmem>>, vector<1x16x16x8xbf16>
    %1 = vector.shape_cast %0 : vector<1x16x16x8xbf16> to vector<16x16x8xbf16>
    %2 = arith.extf %1 : vector<16x16x8xbf16> to vector<16x16x8xf32>
    %c0_3 = arith.constant 0 : index
    %c0_4 = arith.constant 0 : index
    %c0_5 = arith.constant 0 : index
    %3 = vector.load %arg3[%c0_3, %c0_4, %c0_5] : memref<1x1x8xf32, #tpu.memory_space<vmem>>, vector<1x1x8xf32>
    %4 = vector.broadcast %3 : vector<1x1x8xf32> to vector<16x16x8xf32>
    %5 = arith.mulf %2, %4 : vector<16x16x8xf32>
    %c0_6 = arith.constant 0 : index
    %c0_7 = arith.constant 0 : index
    %c0_8 = arith.constant 0 : index
    %6 = vector.load %arg4[%c0_6, %c0_7, %c0_8] : memref<1x1x8xf32, #tpu.memory_space<vmem>>, vector<1x1x8xf32>
    %7 = vector.broadcast %6 : vector<1x1x8xf32> to vector<16x16x8xf32>
    %8 = arith.addf %5, %7 : vector<16x16x8xf32>
    %cst = arith.constant 0.000000e+00 : f32
    %9 = vector.broadcast %cst : f32 to vector<16x16x8xf32>
    %10 = arith.maximumf %8, %9 : vector<16x16x8xf32>
    %cst_9 = arith.constant 0.000000e+00 : f32
    %11 = vector.broadcast %cst_9 : f32 to vector<1x18x8xf32>
    %c0_10 = arith.constant 0 : index
    %c0_11 = arith.constant 0 : index
    %c0_12 = arith.constant 0 : index
    %12 = vector.load %arg8[%c0_10, %c0_11, %c0_12] : memref<18x18x8xf32, #tpu.memory_space<vmem>>, vector<1x18x8xf32>
    tpu.vector_store %arg8[%c0_10, %c0_11, %c0_12], %11 {strides = array<i32>} : memref<18x18x8xf32, #tpu.memory_space<vmem>>, vector<1x18x8xf32>,
    %cst_13 = arith.constant 0.000000e+00 : f32
    %13 = vector.broadcast %cst_13 : f32 to vector<1x18x8xf32>
    %c17 = arith.constant 17 : index
    %c0_14 = arith.constant 0 : index
    %c0_15 = arith.constant 0 : index
    %14 = vector.load %arg8[%c17, %c0_14, %c0_15] : memref<18x18x8xf32, #tpu.memory_space<vmem>>, vector<1x18x8xf32>
    tpu.vector_store %arg8[%c17, %c0_14, %c0_15], %13 {strides = array<i32>} : memref<18x18x8xf32, #tpu.memory_space<vmem>>, vector<1x18x8xf32>,
    %cst_16 = arith.constant 0.000000e+00 : f32
    %15 = vector.broadcast %cst_16 : f32 to vector<18x1x8xf32>
    %c0_17 = arith.constant 0 : index
    %c0_18 = arith.constant 0 : index
    %c0_19 = arith.constant 0 : index
    %16 = vector.load %arg8[%c0_17, %c0_18, %c0_19] : memref<18x18x8xf32, #tpu.memory_space<vmem>>, vector<18x1x8xf32>
    tpu.vector_store %arg8[%c0_17, %c0_18, %c0_19], %15 {strides = array<i32>} : memref<18x18x8xf32, #tpu.memory_space<vmem>>, vector<18x1x8xf32>,
    %cst_20 = arith.constant 0.000000e+00 : f32
    %17 = vector.broadcast %cst_20 : f32 to vector<18x1x8xf32>
    %c0_21 = arith.constant 0 : index
    %c17_22 = arith.constant 17 : index
    %c0_23 = arith.constant 0 : index
    %18 = vector.load %arg8[%c0_21, %c17_22, %c0_23] : memref<18x18x8xf32, #tpu.memory_space<vmem>>, vector<18x1x8xf32>
    tpu.vector_store %arg8[%c0_21, %c17_22, %c0_23], %17 {strides = array<i32>} : memref<18x18x8xf32, #tpu.memory_space<vmem>>, vector<18x1x8xf32>,
    %c1 = arith.constant 1 : index
    %c1_24 = arith.constant 1 : index
    %c0_25 = arith.constant 0 : index
    %19 = vector.load %arg8[%c1, %c1_24, %c0_25] : memref<18x18x8xf32, #tpu.memory_space<vmem>>, vector<16x16x8xf32>
    tpu.vector_store %arg8[%c1, %c1_24, %c0_25], %10 {strides = array<i32>} : memref<18x18x8xf32, #tpu.memory_space<vmem>>, vector<16x16x8xf32>,
    %c0_26 = arith.constant 0 : index
    %c0_27 = arith.constant 0 : index
    %c0_28 = arith.constant 0 : index
    %20 = vector.load %arg8[%c0_26, %c0_27, %c0_28] : memref<18x18x8xf32, #tpu.memory_space<vmem>>, vector<16x16x8xf32>
    %21 = vector.shape_cast %20 : vector<16x16x8xf32> to vector<256x8xf32>
    %22 = arith.truncf %21 : vector<256x8xf32> to vector<256x8xbf16>
    %c0_29 = arith.constant 0 : index
    %c0_30 = arith.constant 0 : index
    %c0_31 = arith.constant 0 : index
    %23 = vector.load %arg2[%c0_29, %c0_30, %c0_31] : memref<9x8x8xbf16, #tpu.memory_space<vmem>>, vector<1x8x8xbf16>
    %24 = vector.shape_cast %23 : vector<1x8x8xbf16> to vector<8x8xbf16>
    %cst_32 = arith.constant dense<0.000000e+00> : vector<256x8xf32>
    %25 = tpu.matmul %22, %24, %cst_32 {dimension_numbers = #tpu.dot_dimension_numbers<[1], [0], [0], [1], [0, 0, 1, 1], [], []>} : vector<256x8xbf16>, vector<8x8xbf16>, vector<256x8xf32> -> vector<256x8xf32>
    %c0_33 = arith.constant 0 : index
    %c1_34 = arith.constant 1 : index
    %c0_35 = arith.constant 0 : index
    %26 = vector.load %arg8[%c0_33, %c1_34, %c0_35] : memref<18x18x8xf32, #tpu.memory_space<vmem>>, vector<16x16x8xf32>
    %27 = vector.shape_cast %26 : vector<16x16x8xf32> to vector<256x8xf32>
    %28 = arith.truncf %27 : vector<256x8xf32> to vector<256x8xbf16>
    %c1_36 = arith.constant 1 : index
    %c0_37 = arith.constant 0 : index
    %c0_38 = arith.constant 0 : index
    %29 = vector.load %arg2[%c1_36, %c0_37, %c0_38] : memref<9x8x8xbf16, #tpu.memory_space<vmem>>, vector<1x8x8xbf16>
    %30 = vector.shape_cast %29 : vector<1x8x8xbf16> to vector<8x8xbf16>
    %cst_39 = arith.constant dense<0.000000e+00> : vector<256x8xf32>
    %31 = tpu.matmul %28, %30, %cst_39 {dimension_numbers = #tpu.dot_dimension_numbers<[1], [0], [0], [1], [0, 0, 1, 1], [], []>} : vector<256x8xbf16>, vector<8x8xbf16>, vector<256x8xf32> -> vector<256x8xf32>
    %32 = arith.addf %25, %31 : vector<256x8xf32>
    %c0_40 = arith.constant 0 : index
    %c2 = arith.constant 2 : index
    %c0_41 = arith.constant 0 : index
    %33 = vector.load %arg8[%c0_40, %c2, %c0_41] : memref<18x18x8xf32, #tpu.memory_space<vmem>>, vector<16x16x8xf32>
    %34 = vector.shape_cast %33 : vector<16x16x8xf32> to vector<256x8xf32>
    %35 = arith.truncf %34 : vector<256x8xf32> to vector<256x8xbf16>
    %c2_42 = arith.constant 2 : index
    %c0_43 = arith.constant 0 : index
    %c0_44 = arith.constant 0 : index
    %36 = vector.load %arg2[%c2_42, %c0_43, %c0_44] : memref<9x8x8xbf16, #tpu.memory_space<vmem>>, vector<1x8x8xbf16>
    %37 = vector.shape_cast %36 : vector<1x8x8xbf16> to vector<8x8xbf16>
    %cst_45 = arith.constant dense<0.000000e+00> : vector<256x8xf32>
    %38 = tpu.matmul %35, %37, %cst_45 {dimension_numbers = #tpu.dot_dimension_numbers<[1], [0], [0], [1], [0, 0, 1, 1], [], []>} : vector<256x8xbf16>, vector<8x8xbf16>, vector<256x8xf32> -> vector<256x8xf32>
    %39 = arith.addf %32, %38 : vector<256x8xf32>
    %c1_46 = arith.constant 1 : index
    %c0_47 = arith.constant 0 : index
    %c0_48 = arith.constant 0 : index
    %40 = vector.load %arg8[%c1_46, %c0_47, %c0_48] : memref<18x18x8xf32, #tpu.memory_space<vmem>>, vector<16x16x8xf32>
    %41 = vector.shape_cast %40 : vector<16x16x8xf32> to vector<256x8xf32>
    %42 = arith.truncf %41 : vector<256x8xf32> to vector<256x8xbf16>
    %c3 = arith.constant 3 : index
    %c0_49 = arith.constant 0 : index
    %c0_50 = arith.constant 0 : index
    %43 = vector.load %arg2[%c3, %c0_49, %c0_50] : memref<9x8x8xbf16, #tpu.memory_space<vmem>>, vector<1x8x8xbf16>
    %44 = vector.shape_cast %43 : vector<1x8x8xbf16> to vector<8x8xbf16>
    %cst_51 = arith.constant dense<0.000000e+00> : vector<256x8xf32>
    %45 = tpu.matmul %42, %44, %cst_51 {dimension_numbers = #tpu.dot_dimension_numbers<[1], [0], [0], [1], [0, 0, 1, 1], [], []>} : vector<256x8xbf16>, vector<8x8xbf16>, vector<256x8xf32> -> vector<256x8xf32>
    %46 = arith.addf %39, %45 : vector<256x8xf32>
    %c1_52 = arith.constant 1 : index
    %c1_53 = arith.constant 1 : index
    %c0_54 = arith.constant 0 : index
    %47 = vector.load %arg8[%c1_52, %c1_53, %c0_54] : memref<18x18x8xf32, #tpu.memory_space<vmem>>, vector<16x16x8xf32>
    %48 = vector.shape_cast %47 : vector<16x16x8xf32> to vector<256x8xf32>
    %49 = arith.truncf %48 : vector<256x8xf32> to vector<256x8xbf16>
    %c4 = arith.constant 4 : index
    %c0_55 = arith.constant 0 : index
    %c0_56 = arith.constant 0 : index
    %50 = vector.load %arg2[%c4, %c0_55, %c0_56] : memref<9x8x8xbf16, #tpu.memory_space<vmem>>, vector<1x8x8xbf16>
    %51 = vector.shape_cast %50 : vector<1x8x8xbf16> to vector<8x8xbf16>
    %cst_57 = arith.constant dense<0.000000e+00> : vector<256x8xf32>
    %52 = tpu.matmul %49, %51, %cst_57 {dimension_numbers = #tpu.dot_dimension_numbers<[1], [0], [0], [1], [0, 0, 1, 1], [], []>} : vector<256x8xbf16>, vector<8x8xbf16>, vector<256x8xf32> -> vector<256x8xf32>
    %53 = arith.addf %46, %52 : vector<256x8xf32>
    %c1_58 = arith.constant 1 : index
    %c2_59 = arith.constant 2 : index
    %c0_60 = arith.constant 0 : index
    %54 = vector.load %arg8[%c1_58, %c2_59, %c0_60] : memref<18x18x8xf32, #tpu.memory_space<vmem>>, vector<16x16x8xf32>
    %55 = vector.shape_cast %54 : vector<16x16x8xf32> to vector<256x8xf32>
    %56 = arith.truncf %55 : vector<256x8xf32> to vector<256x8xbf16>
    %c5 = arith.constant 5 : index
    %c0_61 = arith.constant 0 : index
    %c0_62 = arith.constant 0 : index
    %57 = vector.load %arg2[%c5, %c0_61, %c0_62] : memref<9x8x8xbf16, #tpu.memory_space<vmem>>, vector<1x8x8xbf16>
    %58 = vector.shape_cast %57 : vector<1x8x8xbf16> to vector<8x8xbf16>
    %cst_63 = arith.constant dense<0.000000e+00> : vector<256x8xf32>
    %59 = tpu.matmul %56, %58, %cst_63 {dimension_numbers = #tpu.dot_dimension_numbers<[1], [0], [0], [1], [0, 0, 1, 1], [], []>} : vector<256x8xbf16>, vector<8x8xbf16>, vector<256x8xf32> -> vector<256x8xf32>
    %60 = arith.addf %53, %59 : vector<256x8xf32>
    %c2_64 = arith.constant 2 : index
    %c0_65 = arith.constant 0 : index
    %c0_66 = arith.constant 0 : index
    %61 = vector.load %arg8[%c2_64, %c0_65, %c0_66] : memref<18x18x8xf32, #tpu.memory_space<vmem>>, vector<16x16x8xf32>
    %62 = vector.shape_cast %61 : vector<16x16x8xf32> to vector<256x8xf32>
    %63 = arith.truncf %62 : vector<256x8xf32> to vector<256x8xbf16>
    %c6 = arith.constant 6 : index
    %c0_67 = arith.constant 0 : index
    %c0_68 = arith.constant 0 : index
    %64 = vector.load %arg2[%c6, %c0_67, %c0_68] : memref<9x8x8xbf16, #tpu.memory_space<vmem>>, vector<1x8x8xbf16>
    %65 = vector.shape_cast %64 : vector<1x8x8xbf16> to vector<8x8xbf16>
    %cst_69 = arith.constant dense<0.000000e+00> : vector<256x8xf32>
    %66 = tpu.matmul %63, %65, %cst_69 {dimension_numbers = #tpu.dot_dimension_numbers<[1], [0], [0], [1], [0, 0, 1, 1], [], []>} : vector<256x8xbf16>, vector<8x8xbf16>, vector<256x8xf32> -> vector<256x8xf32>
    %67 = arith.addf %60, %66 : vector<256x8xf32>
    %c2_70 = arith.constant 2 : index
    %c1_71 = arith.constant 1 : index
    %c0_72 = arith.constant 0 : index
    %68 = vector.load %arg8[%c2_70, %c1_71, %c0_72] : memref<18x18x8xf32, #tpu.memory_space<vmem>>, vector<16x16x8xf32>
    %69 = vector.shape_cast %68 : vector<16x16x8xf32> to vector<256x8xf32>
    %70 = arith.truncf %69 : vector<256x8xf32> to vector<256x8xbf16>
    %c7 = arith.constant 7 : index
    %c0_73 = arith.constant 0 : index
    %c0_74 = arith.constant 0 : index
    %71 = vector.load %arg2[%c7, %c0_73, %c0_74] : memref<9x8x8xbf16, #tpu.memory_space<vmem>>, vector<1x8x8xbf16>
    %72 = vector.shape_cast %71 : vector<1x8x8xbf16> to vector<8x8xbf16>
    %cst_75 = arith.constant dense<0.000000e+00> : vector<256x8xf32>
    %73 = tpu.matmul %70, %72, %cst_75 {dimension_numbers = #tpu.dot_dimension_numbers<[1], [0], [0], [1], [0, 0, 1, 1], [], []>} : vector<256x8xbf16>, vector<8x8xbf16>, vector<256x8xf32> -> vector<256x8xf32>
    %74 = arith.addf %67, %73 : vector<256x8xf32>
    %c2_76 = arith.constant 2 : index
    %c2_77 = arith.constant 2 : index
    %c0_78 = arith.constant 0 : index
    %75 = vector.load %arg8[%c2_76, %c2_77, %c0_78] : memref<18x18x8xf32, #tpu.memory_space<vmem>>, vector<16x16x8xf32>
    %76 = vector.shape_cast %75 : vector<16x16x8xf32> to vector<256x8xf32>
    %77 = arith.truncf %76 : vector<256x8xf32> to vector<256x8xbf16>
    %c8 = arith.constant 8 : index
    %c0_79 = arith.constant 0 : index
    %c0_80 = arith.constant 0 : index
    %78 = vector.load %arg2[%c8, %c0_79, %c0_80] : memref<9x8x8xbf16, #tpu.memory_space<vmem>>, vector<1x8x8xbf16>
    %79 = vector.shape_cast %78 : vector<1x8x8xbf16> to vector<8x8xbf16>
    %cst_81 = arith.constant dense<0.000000e+00> : vector<256x8xf32>
    %80 = tpu.matmul %77, %79, %cst_81 {dimension_numbers = #tpu.dot_dimension_numbers<[1], [0], [0], [1], [0, 0, 1, 1], [], []>} : vector<256x8xbf16>, vector<8x8xbf16>, vector<256x8xf32> -> vector<256x8xf32>
    %81 = arith.addf %74, %80 : vector<256x8xf32>
    %82 = vector.shape_cast %81 : vector<256x8xf32> to vector<1x16x16x8xf32>
    %83 = arith.truncf %82 : vector<1x16x16x8xf32> to vector<1x16x16x8xbf16>
    %c0_82 = arith.constant 0 : index
    %c0_83 = arith.constant 0 : index
    %c0_84 = arith.constant 0 : index
    %c0_85 = arith.constant 0 : index
    %84 = vector.load %arg5[%c0_82, %c0_83, %c0_84, %c0_85] : memref<1x16x16x8xbf16, #tpu.memory_space<vmem>>, vector<1x16x16x8xbf16>
    tpu.vector_store %arg5[%c0_82, %c0_83, %c0_84, %c0_85], %83 {strides = array<i32>} : memref<1x16x16x8xbf16, #tpu.memory_space<vmem>>, vector<1x16x16x8xbf16>,
    %cst_86 = arith.constant dense<0.000000e+00> : vector<8xf32>
    %85 = vector.multi_reduction <add>, %81, %cst_86 [0] : vector<256x8xf32> to vector<8xf32>
    %86 = vector.shape_cast %85 : vector<8xf32> to vector<1x1x8xf32>
    %c0_87 = arith.constant 0 : index
    %c0_88 = arith.constant 0 : index
    %c0_89 = arith.constant 0 : index
    %87 = vector.load %arg6[%c0_87, %c0_88, %c0_89] : memref<1x1x8xf32, #tpu.memory_space<vmem>>, vector<1x1x8xf32>
    tpu.vector_store %arg6[%c0_87, %c0_88, %c0_89], %86 {strides = array<i32>} : memref<1x1x8xf32, #tpu.memory_space<vmem>>, vector<1x1x8xf32>,
    %88 = arith.mulf %81, %81 : vector<256x8xf32>
    %cst_90 = arith.constant dense<0.000000e+00> : vector<8xf32>
    %89 = vector.multi_reduction <add>, %88, %cst_90 [0] : vector<256x8xf32> to vector<8xf32>
    %90 = vector.shape_cast %89 : vector<8xf32> to vector<1x1x8xf32>
    %c0_91 = arith.constant 0 : index
    %c0_92 = arith.constant 0 : index
    %c0_93 = arith.constant 0 : index
    %91 = vector.load %arg7[%c0_91, %c0_92, %c0_93] : memref<1x1x8xf32, #tpu.memory_space<vmem>>, vector<1x1x8xf32>
    tpu.vector_store %arg7[%c0_91, %c0_92, %c0_93], %90 {strides = array<i32>} : memref<1x1x8xf32, #tpu.memory_space<vmem>>, vector<1x1x8xf32>,
    return
  }
  func.func @transform_0(%arg0: i32) -> (i32, i32, i32, i32) {
    %c0_i32 = arith.constant 0 : i32
    %c0_i32_0 = arith.constant 0 : i32
    %c0_i32_1 = arith.constant 0 : i32
    %c0_i32_2 = arith.constant 0 : i32
    return %arg0, %c0_i32, %c0_i32_0, %c0_i32_1 : i32, i32, i32, i32
  }
  func.func @transform_1(%arg0: i32) -> (i32, i32, i32) {
    %c0_i32 = arith.constant 0 : i32
    %c0_i32_0 = arith.constant 0 : i32
    %c0_i32_1 = arith.constant 0 : i32
    %c0_i32_2 = arith.constant 0 : i32
    return %c0_i32, %c0_i32_0, %c0_i32_1 : i32, i32, i32
  }
  func.func @transform_2(%arg0: i32) -> (i32, i32, i32) {
    %c0_i32 = arith.constant 0 : i32
    %c0_i32_0 = arith.constant 0 : i32
    %c0_i32_1 = arith.constant 0 : i32
    return %arg0, %c0_i32, %c0_i32_0 : i32, i32, i32
  }
  func.func @transform_3(%arg0: i32) -> (i32, i32, i32) {
    %c0_i32 = arith.constant 0 : i32
    %c0_i32_0 = arith.constant 0 : i32
    %c0_i32_1 = arith.constant 0 : i32
    return %arg0, %c0_i32, %c0_i32_0 : i32, i32, i32
  }
  func.func @transform_4(%arg0: i32) -> (i32, i32, i32, i32) {
    %c0_i32 = arith.constant 0 : i32
    %c0_i32_0 = arith.constant 0 : i32
    %c0_i32_1 = arith.constant 0 : i32
    %c0_i32_2 = arith.constant 0 : i32
    return %arg0, %c0_i32, %c0_i32_0, %c0_i32_1 : i32, i32, i32, i32
  }
  func.func @transform_5(%arg0: i32) -> (i32, i32, i32) {
    %c0_i32 = arith.constant 0 : i32
    %c0_i32_0 = arith.constant 0 : i32
    %c0_i32_1 = arith.constant 0 : i32
    return %arg0, %c0_i32, %c0_i32_0 : i32, i32, i32
  }
  func.func @transform_6(%arg0: i32) -> (i32, i32, i32) {
    %c0_i32 = arith.constant 0 : i32
    %c0_i32_0 = arith.constant 0 : i32
    %c0_i32_1 = arith.constant 0 : i32
    return %arg0, %c0_i32, %c0_i32_0 : i32, i32, i32
  }
}

module attributes {stable_mosaic.version = 11 : i64} {
  func.func @_conv1_stats_kernel(%arg0: i32, %arg1: memref<1x16x16x8xf32, #tpu.memory_space<vmem>>, %arg2: memref<9x8x8xbf16, #tpu.memory_space<vmem>>, %arg3: memref<1x16x16x8xbf16, #tpu.memory_space<vmem>>, %arg4: memref<1x1x8xf32, #tpu.memory_space<vmem>>, %arg5: memref<1x1x8xf32, #tpu.memory_space<vmem>>, %arg6: memref<18x18x8xf32, #tpu.memory_space<vmem>>) attributes {dimension_semantics = [#tpu.dimension_semantics<parallel>], iteration_bounds = array<i64: 2>, scalar_prefetch = 0 : i64, scratch_operands = 1 : i64, tpu.core_type = #tpu.core_type<tc>, window_params = [{transform_indices = @transform_0, window_bounds = array<i64: 1, 16, 16, 8>}, {pipeline_mode = #tpu.pipeline_mode<synchronous>, transform_indices = @transform_1, window_bounds = array<i64: 9, 8, 8>}, {transform_indices = @transform_2, window_bounds = array<i64: 1, 16, 16, 8>}, {transform_indices = @transform_3, window_bounds = array<i64: 1, 1, 8>}, {transform_indices = @transform_4, window_bounds = array<i64: 1, 1, 8>}]} {
    %cst = arith.constant 0.000000e+00 : f32
    %0 = vector.broadcast %cst : f32 to vector<1x18x8xf32>
    %c0 = arith.constant 0 : index
    %c0_0 = arith.constant 0 : index
    %c0_1 = arith.constant 0 : index
    %1 = vector.load %arg6[%c0, %c0_0, %c0_1] : memref<18x18x8xf32, #tpu.memory_space<vmem>>, vector<1x18x8xf32>
    tpu.vector_store %arg6[%c0, %c0_0, %c0_1], %0 {strides = array<i32>} : memref<18x18x8xf32, #tpu.memory_space<vmem>>, vector<1x18x8xf32>,
    %cst_2 = arith.constant 0.000000e+00 : f32
    %2 = vector.broadcast %cst_2 : f32 to vector<1x18x8xf32>
    %c17 = arith.constant 17 : index
    %c0_3 = arith.constant 0 : index
    %c0_4 = arith.constant 0 : index
    %3 = vector.load %arg6[%c17, %c0_3, %c0_4] : memref<18x18x8xf32, #tpu.memory_space<vmem>>, vector<1x18x8xf32>
    tpu.vector_store %arg6[%c17, %c0_3, %c0_4], %2 {strides = array<i32>} : memref<18x18x8xf32, #tpu.memory_space<vmem>>, vector<1x18x8xf32>,
    %cst_5 = arith.constant 0.000000e+00 : f32
    %4 = vector.broadcast %cst_5 : f32 to vector<18x1x8xf32>
    %c0_6 = arith.constant 0 : index
    %c0_7 = arith.constant 0 : index
    %c0_8 = arith.constant 0 : index
    %5 = vector.load %arg6[%c0_6, %c0_7, %c0_8] : memref<18x18x8xf32, #tpu.memory_space<vmem>>, vector<18x1x8xf32>
    tpu.vector_store %arg6[%c0_6, %c0_7, %c0_8], %4 {strides = array<i32>} : memref<18x18x8xf32, #tpu.memory_space<vmem>>, vector<18x1x8xf32>,
    %cst_9 = arith.constant 0.000000e+00 : f32
    %6 = vector.broadcast %cst_9 : f32 to vector<18x1x8xf32>
    %c0_10 = arith.constant 0 : index
    %c17_11 = arith.constant 17 : index
    %c0_12 = arith.constant 0 : index
    %7 = vector.load %arg6[%c0_10, %c17_11, %c0_12] : memref<18x18x8xf32, #tpu.memory_space<vmem>>, vector<18x1x8xf32>
    tpu.vector_store %arg6[%c0_10, %c17_11, %c0_12], %6 {strides = array<i32>} : memref<18x18x8xf32, #tpu.memory_space<vmem>>, vector<18x1x8xf32>,
    %c0_13 = arith.constant 0 : index
    %c0_14 = arith.constant 0 : index
    %c0_15 = arith.constant 0 : index
    %c0_16 = arith.constant 0 : index
    %8 = vector.load %arg1[%c0_13, %c0_14, %c0_15, %c0_16] : memref<1x16x16x8xf32, #tpu.memory_space<vmem>>, vector<1x16x16x8xf32>
    %9 = vector.shape_cast %8 : vector<1x16x16x8xf32> to vector<16x16x8xf32>
    %c1 = arith.constant 1 : index
    %c1_17 = arith.constant 1 : index
    %c0_18 = arith.constant 0 : index
    %10 = vector.load %arg6[%c1, %c1_17, %c0_18] : memref<18x18x8xf32, #tpu.memory_space<vmem>>, vector<16x16x8xf32>
    tpu.vector_store %arg6[%c1, %c1_17, %c0_18], %9 {strides = array<i32>} : memref<18x18x8xf32, #tpu.memory_space<vmem>>, vector<16x16x8xf32>,
    %c0_19 = arith.constant 0 : index
    %c0_20 = arith.constant 0 : index
    %c0_21 = arith.constant 0 : index
    %11 = vector.load %arg6[%c0_19, %c0_20, %c0_21] : memref<18x18x8xf32, #tpu.memory_space<vmem>>, vector<16x16x8xf32>
    %12 = vector.shape_cast %11 : vector<16x16x8xf32> to vector<256x8xf32>
    %13 = arith.truncf %12 : vector<256x8xf32> to vector<256x8xbf16>
    %c0_22 = arith.constant 0 : index
    %c0_23 = arith.constant 0 : index
    %c0_24 = arith.constant 0 : index
    %14 = vector.load %arg2[%c0_22, %c0_23, %c0_24] : memref<9x8x8xbf16, #tpu.memory_space<vmem>>, vector<1x8x8xbf16>
    %15 = vector.shape_cast %14 : vector<1x8x8xbf16> to vector<8x8xbf16>
    %cst_25 = arith.constant dense<0.000000e+00> : vector<256x8xf32>
    %16 = tpu.matmul %13, %15, %cst_25 {dimension_numbers = #tpu.dot_dimension_numbers<[1], [0], [0], [1], [0, 0, 1, 1], [], []>} : vector<256x8xbf16>, vector<8x8xbf16>, vector<256x8xf32> -> vector<256x8xf32>
    %c0_26 = arith.constant 0 : index
    %c1_27 = arith.constant 1 : index
    %c0_28 = arith.constant 0 : index
    %17 = vector.load %arg6[%c0_26, %c1_27, %c0_28] : memref<18x18x8xf32, #tpu.memory_space<vmem>>, vector<16x16x8xf32>
    %18 = vector.shape_cast %17 : vector<16x16x8xf32> to vector<256x8xf32>
    %19 = arith.truncf %18 : vector<256x8xf32> to vector<256x8xbf16>
    %c1_29 = arith.constant 1 : index
    %c0_30 = arith.constant 0 : index
    %c0_31 = arith.constant 0 : index
    %20 = vector.load %arg2[%c1_29, %c0_30, %c0_31] : memref<9x8x8xbf16, #tpu.memory_space<vmem>>, vector<1x8x8xbf16>
    %21 = vector.shape_cast %20 : vector<1x8x8xbf16> to vector<8x8xbf16>
    %cst_32 = arith.constant dense<0.000000e+00> : vector<256x8xf32>
    %22 = tpu.matmul %19, %21, %cst_32 {dimension_numbers = #tpu.dot_dimension_numbers<[1], [0], [0], [1], [0, 0, 1, 1], [], []>} : vector<256x8xbf16>, vector<8x8xbf16>, vector<256x8xf32> -> vector<256x8xf32>
    %23 = arith.addf %16, %22 : vector<256x8xf32>
    %c0_33 = arith.constant 0 : index
    %c2 = arith.constant 2 : index
    %c0_34 = arith.constant 0 : index
    %24 = vector.load %arg6[%c0_33, %c2, %c0_34] : memref<18x18x8xf32, #tpu.memory_space<vmem>>, vector<16x16x8xf32>
    %25 = vector.shape_cast %24 : vector<16x16x8xf32> to vector<256x8xf32>
    %26 = arith.truncf %25 : vector<256x8xf32> to vector<256x8xbf16>
    %c2_35 = arith.constant 2 : index
    %c0_36 = arith.constant 0 : index
    %c0_37 = arith.constant 0 : index
    %27 = vector.load %arg2[%c2_35, %c0_36, %c0_37] : memref<9x8x8xbf16, #tpu.memory_space<vmem>>, vector<1x8x8xbf16>
    %28 = vector.shape_cast %27 : vector<1x8x8xbf16> to vector<8x8xbf16>
    %cst_38 = arith.constant dense<0.000000e+00> : vector<256x8xf32>
    %29 = tpu.matmul %26, %28, %cst_38 {dimension_numbers = #tpu.dot_dimension_numbers<[1], [0], [0], [1], [0, 0, 1, 1], [], []>} : vector<256x8xbf16>, vector<8x8xbf16>, vector<256x8xf32> -> vector<256x8xf32>
    %30 = arith.addf %23, %29 : vector<256x8xf32>
    %c1_39 = arith.constant 1 : index
    %c0_40 = arith.constant 0 : index
    %c0_41 = arith.constant 0 : index
    %31 = vector.load %arg6[%c1_39, %c0_40, %c0_41] : memref<18x18x8xf32, #tpu.memory_space<vmem>>, vector<16x16x8xf32>
    %32 = vector.shape_cast %31 : vector<16x16x8xf32> to vector<256x8xf32>
    %33 = arith.truncf %32 : vector<256x8xf32> to vector<256x8xbf16>
    %c3 = arith.constant 3 : index
    %c0_42 = arith.constant 0 : index
    %c0_43 = arith.constant 0 : index
    %34 = vector.load %arg2[%c3, %c0_42, %c0_43] : memref<9x8x8xbf16, #tpu.memory_space<vmem>>, vector<1x8x8xbf16>
    %35 = vector.shape_cast %34 : vector<1x8x8xbf16> to vector<8x8xbf16>
    %cst_44 = arith.constant dense<0.000000e+00> : vector<256x8xf32>
    %36 = tpu.matmul %33, %35, %cst_44 {dimension_numbers = #tpu.dot_dimension_numbers<[1], [0], [0], [1], [0, 0, 1, 1], [], []>} : vector<256x8xbf16>, vector<8x8xbf16>, vector<256x8xf32> -> vector<256x8xf32>
    %37 = arith.addf %30, %36 : vector<256x8xf32>
    %c1_45 = arith.constant 1 : index
    %c1_46 = arith.constant 1 : index
    %c0_47 = arith.constant 0 : index
    %38 = vector.load %arg6[%c1_45, %c1_46, %c0_47] : memref<18x18x8xf32, #tpu.memory_space<vmem>>, vector<16x16x8xf32>
    %39 = vector.shape_cast %38 : vector<16x16x8xf32> to vector<256x8xf32>
    %40 = arith.truncf %39 : vector<256x8xf32> to vector<256x8xbf16>
    %c4 = arith.constant 4 : index
    %c0_48 = arith.constant 0 : index
    %c0_49 = arith.constant 0 : index
    %41 = vector.load %arg2[%c4, %c0_48, %c0_49] : memref<9x8x8xbf16, #tpu.memory_space<vmem>>, vector<1x8x8xbf16>
    %42 = vector.shape_cast %41 : vector<1x8x8xbf16> to vector<8x8xbf16>
    %cst_50 = arith.constant dense<0.000000e+00> : vector<256x8xf32>
    %43 = tpu.matmul %40, %42, %cst_50 {dimension_numbers = #tpu.dot_dimension_numbers<[1], [0], [0], [1], [0, 0, 1, 1], [], []>} : vector<256x8xbf16>, vector<8x8xbf16>, vector<256x8xf32> -> vector<256x8xf32>
    %44 = arith.addf %37, %43 : vector<256x8xf32>
    %c1_51 = arith.constant 1 : index
    %c2_52 = arith.constant 2 : index
    %c0_53 = arith.constant 0 : index
    %45 = vector.load %arg6[%c1_51, %c2_52, %c0_53] : memref<18x18x8xf32, #tpu.memory_space<vmem>>, vector<16x16x8xf32>
    %46 = vector.shape_cast %45 : vector<16x16x8xf32> to vector<256x8xf32>
    %47 = arith.truncf %46 : vector<256x8xf32> to vector<256x8xbf16>
    %c5 = arith.constant 5 : index
    %c0_54 = arith.constant 0 : index
    %c0_55 = arith.constant 0 : index
    %48 = vector.load %arg2[%c5, %c0_54, %c0_55] : memref<9x8x8xbf16, #tpu.memory_space<vmem>>, vector<1x8x8xbf16>
    %49 = vector.shape_cast %48 : vector<1x8x8xbf16> to vector<8x8xbf16>
    %cst_56 = arith.constant dense<0.000000e+00> : vector<256x8xf32>
    %50 = tpu.matmul %47, %49, %cst_56 {dimension_numbers = #tpu.dot_dimension_numbers<[1], [0], [0], [1], [0, 0, 1, 1], [], []>} : vector<256x8xbf16>, vector<8x8xbf16>, vector<256x8xf32> -> vector<256x8xf32>
    %51 = arith.addf %44, %50 : vector<256x8xf32>
    %c2_57 = arith.constant 2 : index
    %c0_58 = arith.constant 0 : index
    %c0_59 = arith.constant 0 : index
    %52 = vector.load %arg6[%c2_57, %c0_58, %c0_59] : memref<18x18x8xf32, #tpu.memory_space<vmem>>, vector<16x16x8xf32>
    %53 = vector.shape_cast %52 : vector<16x16x8xf32> to vector<256x8xf32>
    %54 = arith.truncf %53 : vector<256x8xf32> to vector<256x8xbf16>
    %c6 = arith.constant 6 : index
    %c0_60 = arith.constant 0 : index
    %c0_61 = arith.constant 0 : index
    %55 = vector.load %arg2[%c6, %c0_60, %c0_61] : memref<9x8x8xbf16, #tpu.memory_space<vmem>>, vector<1x8x8xbf16>
    %56 = vector.shape_cast %55 : vector<1x8x8xbf16> to vector<8x8xbf16>
    %cst_62 = arith.constant dense<0.000000e+00> : vector<256x8xf32>
    %57 = tpu.matmul %54, %56, %cst_62 {dimension_numbers = #tpu.dot_dimension_numbers<[1], [0], [0], [1], [0, 0, 1, 1], [], []>} : vector<256x8xbf16>, vector<8x8xbf16>, vector<256x8xf32> -> vector<256x8xf32>
    %58 = arith.addf %51, %57 : vector<256x8xf32>
    %c2_63 = arith.constant 2 : index
    %c1_64 = arith.constant 1 : index
    %c0_65 = arith.constant 0 : index
    %59 = vector.load %arg6[%c2_63, %c1_64, %c0_65] : memref<18x18x8xf32, #tpu.memory_space<vmem>>, vector<16x16x8xf32>
    %60 = vector.shape_cast %59 : vector<16x16x8xf32> to vector<256x8xf32>
    %61 = arith.truncf %60 : vector<256x8xf32> to vector<256x8xbf16>
    %c7 = arith.constant 7 : index
    %c0_66 = arith.constant 0 : index
    %c0_67 = arith.constant 0 : index
    %62 = vector.load %arg2[%c7, %c0_66, %c0_67] : memref<9x8x8xbf16, #tpu.memory_space<vmem>>, vector<1x8x8xbf16>
    %63 = vector.shape_cast %62 : vector<1x8x8xbf16> to vector<8x8xbf16>
    %cst_68 = arith.constant dense<0.000000e+00> : vector<256x8xf32>
    %64 = tpu.matmul %61, %63, %cst_68 {dimension_numbers = #tpu.dot_dimension_numbers<[1], [0], [0], [1], [0, 0, 1, 1], [], []>} : vector<256x8xbf16>, vector<8x8xbf16>, vector<256x8xf32> -> vector<256x8xf32>
    %65 = arith.addf %58, %64 : vector<256x8xf32>
    %c2_69 = arith.constant 2 : index
    %c2_70 = arith.constant 2 : index
    %c0_71 = arith.constant 0 : index
    %66 = vector.load %arg6[%c2_69, %c2_70, %c0_71] : memref<18x18x8xf32, #tpu.memory_space<vmem>>, vector<16x16x8xf32>
    %67 = vector.shape_cast %66 : vector<16x16x8xf32> to vector<256x8xf32>
    %68 = arith.truncf %67 : vector<256x8xf32> to vector<256x8xbf16>
    %c8 = arith.constant 8 : index
    %c0_72 = arith.constant 0 : index
    %c0_73 = arith.constant 0 : index
    %69 = vector.load %arg2[%c8, %c0_72, %c0_73] : memref<9x8x8xbf16, #tpu.memory_space<vmem>>, vector<1x8x8xbf16>
    %70 = vector.shape_cast %69 : vector<1x8x8xbf16> to vector<8x8xbf16>
    %cst_74 = arith.constant dense<0.000000e+00> : vector<256x8xf32>
    %71 = tpu.matmul %68, %70, %cst_74 {dimension_numbers = #tpu.dot_dimension_numbers<[1], [0], [0], [1], [0, 0, 1, 1], [], []>} : vector<256x8xbf16>, vector<8x8xbf16>, vector<256x8xf32> -> vector<256x8xf32>
    %72 = arith.addf %65, %71 : vector<256x8xf32>
    %73 = vector.shape_cast %72 : vector<256x8xf32> to vector<1x16x16x8xf32>
    %74 = arith.truncf %73 : vector<1x16x16x8xf32> to vector<1x16x16x8xbf16>
    %c0_75 = arith.constant 0 : index
    %c0_76 = arith.constant 0 : index
    %c0_77 = arith.constant 0 : index
    %c0_78 = arith.constant 0 : index
    %75 = vector.load %arg3[%c0_75, %c0_76, %c0_77, %c0_78] : memref<1x16x16x8xbf16, #tpu.memory_space<vmem>>, vector<1x16x16x8xbf16>
    tpu.vector_store %arg3[%c0_75, %c0_76, %c0_77, %c0_78], %74 {strides = array<i32>} : memref<1x16x16x8xbf16, #tpu.memory_space<vmem>>, vector<1x16x16x8xbf16>,
    %cst_79 = arith.constant dense<0.000000e+00> : vector<8xf32>
    %76 = vector.multi_reduction <add>, %72, %cst_79 [0] : vector<256x8xf32> to vector<8xf32>
    %77 = vector.shape_cast %76 : vector<8xf32> to vector<1x1x8xf32>
    %c0_80 = arith.constant 0 : index
    %c0_81 = arith.constant 0 : index
    %c0_82 = arith.constant 0 : index
    %78 = vector.load %arg4[%c0_80, %c0_81, %c0_82] : memref<1x1x8xf32, #tpu.memory_space<vmem>>, vector<1x1x8xf32>
    tpu.vector_store %arg4[%c0_80, %c0_81, %c0_82], %77 {strides = array<i32>} : memref<1x1x8xf32, #tpu.memory_space<vmem>>, vector<1x1x8xf32>,
    %79 = arith.mulf %72, %72 : vector<256x8xf32>
    %cst_83 = arith.constant dense<0.000000e+00> : vector<8xf32>
    %80 = vector.multi_reduction <add>, %79, %cst_83 [0] : vector<256x8xf32> to vector<8xf32>
    %81 = vector.shape_cast %80 : vector<8xf32> to vector<1x1x8xf32>
    %c0_84 = arith.constant 0 : index
    %c0_85 = arith.constant 0 : index
    %c0_86 = arith.constant 0 : index
    %82 = vector.load %arg5[%c0_84, %c0_85, %c0_86] : memref<1x1x8xf32, #tpu.memory_space<vmem>>, vector<1x1x8xf32>
    tpu.vector_store %arg5[%c0_84, %c0_85, %c0_86], %81 {strides = array<i32>} : memref<1x1x8xf32, #tpu.memory_space<vmem>>, vector<1x1x8xf32>,
    return
  }
  func.func @transform_0(%arg0: i32) -> (i32, i32, i32, i32) {
    %c0_i32 = arith.constant 0 : i32
    %c0_i32_0 = arith.constant 0 : i32
    %c0_i32_1 = arith.constant 0 : i32
    %c0_i32_2 = arith.constant 0 : i32
    return %arg0, %c0_i32, %c0_i32_0, %c0_i32_1 : i32, i32, i32, i32
  }
  func.func @transform_1(%arg0: i32) -> (i32, i32, i32) {
    %c0_i32 = arith.constant 0 : i32
    %c0_i32_0 = arith.constant 0 : i32
    %c0_i32_1 = arith.constant 0 : i32
    %c0_i32_2 = arith.constant 0 : i32
    return %c0_i32, %c0_i32_0, %c0_i32_1 : i32, i32, i32
  }
  func.func @transform_2(%arg0: i32) -> (i32, i32, i32, i32) {
    %c0_i32 = arith.constant 0 : i32
    %c0_i32_0 = arith.constant 0 : i32
    %c0_i32_1 = arith.constant 0 : i32
    %c0_i32_2 = arith.constant 0 : i32
    return %arg0, %c0_i32, %c0_i32_0, %c0_i32_1 : i32, i32, i32, i32
  }
  func.func @transform_3(%arg0: i32) -> (i32, i32, i32) {
    %c0_i32 = arith.constant 0 : i32
    %c0_i32_0 = arith.constant 0 : i32
    %c0_i32_1 = arith.constant 0 : i32
    return %arg0, %c0_i32, %c0_i32_0 : i32, i32, i32
  }
  func.func @transform_4(%arg0: i32) -> (i32, i32, i32) {
    %c0_i32 = arith.constant 0 : i32
    %c0_i32_0 = arith.constant 0 : i32
    %c0_i32_1 = arith.constant 0 : i32
    return %arg0, %c0_i32, %c0_i32_0 : i32, i32, i32
  }
}

</mosaic_0001>

<bundles_post_ra>
// kernel: basic_block_ibn_forward.5
= control target key start
LH: loop header
LB: loop body
LE: loop exit
PB: predicated region body
PF: predicated region fallthrough
CT: control target
= control target key end

     0   :  { %s694_s15 = smov 0   ;;  %s914_s0 = inlined_call_operand.vmem [shape: bf16[2,16,16,8], index: 0, kind: input, shape index: {}]   ;;  %s915_s1 = inlined_call_operand.vmem [shape: f32[2,16,16,8], index: 1, kind: input, shape index: {}]   ;;  %s916_s2 = inlined_call_operand.vmem [shape: f32[1,1,8], index: 2, kind: input, shape index: {}]   ;;  %s917_s3 = inlined_call_operand.vmem [shape: f32[1,1,8], index: 3, kind: input, shape index: {}]   ;;  %s918_s4 = inlined_call_operand.vmem [shape: f32[2,16,16,8], index: 4, kind: output, shape index: {}]  }
   0x1 LB: > { %s556_s16 = sadd.s32 4294967295, %s667_s15   ;;  %p560_p0 = scmp.ge.s32.totalorder %s667_s15, 1  ;;  %s667_s15 = sphi %s694_s15, %s14_s15  }
   0x2   : > { %p172_p1 = scmp.lt.s32.totalorder %s667_s15, 3 }
   0x4   : > { %p173_p2 = pnand %p560_p0, %p172_p1 }
   0x5   : > { %p203_p3 = scmp.lt.s32.totalorder (!%p173_p2), %s556_s16, 1 }
   0x6   : > { %176 = sbr.rel (%p173_p2) target bundleno = 58 (0x3a), region = 36 }
   0xb   : > { %s920_s16 = smov (!%p203_p3, %s556_s16), 1  ;;  %v715_v1 = vld [vmem:[%s916_s2] ss:$0 sm:$0xff]  ;;  %vm456_vm0 = vcmask 64512  }
   0xc   : > { %s571_s17 = sshll.u32 %s920_s16, 7  ;;  %s572_s18 = sshll.u32 %s920_s16, 8  ;;  %v728_v5 = vld [vmem:[%s917_s3] ss:$0 sm:$0xff] }
   0xd   : > { %s709_s21 = scalar_lea.vmem %s914_s0, %s571_s17  ;;  %s722_s26 = scalar_lea.vmem %s915_s1, %s572_s18 }
   0xe   : > { %v575_v0 = vld [vmem:[%s709_s21] sm:$0xff]   ;;  %v638_v4 = vld [vmem:[%s709_s21 + $0x8] sm:$0xff]   ;;  %v639_v8 = vld [vmem:[%s709_s21 + $0x10] sm:$0xff]   ;;  %s759_s5 = scalar_lea.vmem %s918_s4, %s572_s18 }
   0xf   : > { %v576_v2 = vunpack.c.l.bf16 %v575_v0  ;;  %v577_v3 = vunpack.c.h.bf16 %v575_v0  ;;  %v580_v6 = vunpack.c.l.bf16 %v638_v4  ;;  %v581_v7 = vunpack.c.h.bf16 %v638_v4  ;;  %v640_v13 = vld [vmem:[%s709_s21 + $0x18] sm:$0xff]   ;;  %v282_v14 = vld [vmem:[%s722_s26] sm:$0xff]  ;;  %v283_v15 = vld [vmem:[%s722_s26 + $0x8] sm:$0xff] }
  0x10   : > { %v584_v11 = vunpack.c.l.bf16 %v639_v8  ;;  %v585_v12 = vunpack.c.h.bf16 %v639_v8  ;;  %v588_v18 = vunpack.c.l.bf16 %v640_v13  ;;  %v589_v19 = vunpack.c.h.bf16 %v640_v13  ;;  %v284_v22 = vld [vmem:[%s722_s26 + $0x10] sm:$0xff]  ;;  %v285_v23 = vld [vmem:[%s722_s26 + $0x18] sm:$0xff]  ;;  %v286_v28 = vld [vmem:[%s722_s26 + $0x20] sm:$0xff] }
  0x11   : > { %v321_v9 = vmul.f32 %v576_v2, %v715_v1  ;;  %v322_v10 = vmul.f32 %v577_v3, %v715_v1  ;;  %v323_v16 = vmul.f32 %v580_v6, %v715_v1  ;;  %v324_v17 = vmul.f32 %v581_v7, %v715_v1  ;;  %v287_v29 = vld [vmem:[%s722_s26 + $0x28] sm:$0xff]  ;;  %v288_v36 = vld [vmem:[%s722_s26 + $0x30] sm:$0xff]  ;;  %v289_v37 = vld [vmem:[%s722_s26 + $0x38] sm:$0xff] }
  0x12   : > { %v325_v24 = vmul.f32 %v584_v11, %v715_v1  ;;  %v326_v25 = vmul.f32 %v585_v12, %v715_v1  ;;  %v327_v30 = vmul.f32 %v588_v18, %v715_v1  ;;  %v328_v31 = vmul.f32 %v589_v19, %v715_v1  ;;  %v641_v42 = vld [vmem:[%s709_s21 + $0x20] sm:$0xff]   ;;  %v642_v47 = vld [vmem:[%s709_s21 + $0x28] sm:$0xff]   ;;  %v643_v52 = vld [vmem:[%s709_s21 + $0x30] sm:$0xff]  }
  0x13   : > { %v360_v20 = vadd.f32 %v728_v5, %v321_v9  ;;  %v361_v21 = vadd.f32 %v728_v5, %v322_v10  ;;  %v362_v26 = vadd.f32 %v728_v5, %v323_v16  ;;  %v363_v27 = vadd.f32 %v728_v5, %v324_v17  ;;  %v644_v57 = vld [vmem:[%s709_s21 + $0x38] sm:$0xff]   ;;  %v290_v3 = vld [vmem:[%s722_s26 + $0x40] sm:$0xff]  ;;  %v291_v4 = vld [vmem:[%s722_s26 + $0x48] sm:$0xff] }
  0x14   : > { %v364_v34 = vadd.f32 %v728_v5, %v325_v24  ;;  %v365_v35 = vadd.f32 %v728_v5, %v326_v25  ;;  %v366_v40 = vadd.f32 %v728_v5, %v327_v30  ;;  %v367_v41 = vadd.f32 %v728_v5, %v328_v31  ;;  %v292_v12 = vld [vmem:[%s722_s26 + $0x50] sm:$0xff]  ;;  %v293_v13 = vld [vmem:[%s722_s26 + $0x58] sm:$0xff]  ;;  %v294_v18 = vld [vmem:[%s722_s26 + $0x60] sm:$0xff] }
  0x15   : > { %v392_v32 = vadd.f32 %v360_v20, %v282_v14  ;;  %v393_v33 = vadd.f32 %v361_v21, %v283_v15  ;;  %v394_v38 = vadd.f32 %v362_v26, %v284_v22  ;;  %v395_v39 = vadd.f32 %v363_v27, %v285_v23  ;;  %v295_v19 = vld [vmem:[%s722_s26 + $0x68] sm:$0xff]  ;;  %v296_v26 = vld [vmem:[%s722_s26 + $0x70] sm:$0xff]  ;;  %v297_v27 = vld [vmem:[%s722_s26 + $0x78] sm:$0xff] }
  0x16   : > { %v396_v45 = vadd.f32 %v364_v34, %v286_v28  ;;  %v397_v46 = vadd.f32 %v365_v35, %v287_v29  ;;  %v398_v50 = vadd.f32 %v366_v40, %v288_v36  ;;  %v399_v51 = vadd.f32 %v367_v41, %v289_v37  ;;  %v646_v37 = vld [vmem:[%s709_s21 + $0x48] sm:$0xff]  }
  0x17   : > { %v424_v43 = vmax.f32 %v392_v32, 0.0  ;;  %v425_v44 = vmax.f32 %v393_v33, 0.0  ;;  %v426_v48 = vmax.f32 %v394_v38, 0.0  ;;  %v427_v49 = vmax.f32 %v395_v39, 0.0  ;;  %v645_v32 = vld [vmem:[%s709_s21 + $0x40] sm:$0xff]  }
  0x18   : > { %v428_v53 = vmax.f32 %v396_v45, 0.0  ;;  %v429_v54 = vmax.f32 %v397_v46, 0.0  ;;  %v592_v55 = vunpack.c.l.bf16 %v641_v42  ;;  %v593_v56 = vunpack.c.h.bf16 %v641_v42  ;;  %v647_v42 = vld [vmem:[%s709_s21 + $0x50] sm:$0xff]  }
  0x19   : > { %457 = vst.msk [vmem:[%s759_s5] sm:$0xff] %vm456_vm0, %v424_v43  ;;  %458 = vst.msk [vmem:[%s759_s5 + $0x8] sm:$0xff] %vm456_vm0, %v425_v44  ;;  %v430_v58 = vmax.f32 %v398_v50, 0.0  ;;  %v431_v59 = vmax.f32 %v399_v51, 0.0  ;;  %v596_v60 = vunpack.c.l.bf16 %v642_v47  ;;  %v597_v61 = vunpack.c.h.bf16 %v642_v47  ;;  %v648_v47 = vld [vmem:[%s709_s21 + $0x58] sm:$0xff]  }
  0x1a   : > { %459 = vst.msk [vmem:[%s759_s5 + $0x10] sm:$0xff] %vm456_vm0, %v426_v48  ;;  %460 = vst.msk [vmem:[%s759_s5 + $0x18] sm:$0xff] %vm456_vm0, %v427_v49  ;;  %v329_v62 = vmul.f32 %v592_v55, %v715_v1  ;;  %v330_v63 = vmul.f32 %v593_v56, %v715_v1  ;;  %v600_v0 = vunpack.c.l.bf16 %v643_v52  ;;  %v601_v2 = vunpack.c.h.bf16 %v643_v52  ;;  %v298_v56 = vld [vmem:[%s722_s26 + $0x80] sm:$0xff] }
  0x1b   : > { %461 = vst.msk [vmem:[%s759_s5 + $0x20] sm:$0xff] %vm456_vm0, %v428_v53  ;;  %462 = vst.msk [vmem:[%s759_s5 + $0x28] sm:$0xff] %vm456_vm0, %v429_v54  ;;  %v331_v6 = vmul.f32 %v596_v60, %v715_v1  ;;  %v332_v7 = vmul.f32 %v597_v61, %v715_v1  ;;  %v604_v8 = vunpack.c.l.bf16 %v644_v57  ;;  %v605_v9 = vunpack.c.h.bf16 %v644_v57  ;;  %v299_v57 = vld [vmem:[%s722_s26 + $0x88] sm:$0xff] }
  0x1c   : > { %463 = vst.msk [vmem:[%s759_s5 + $0x30] sm:$0xff] %vm456_vm0, %v430_v58  ;;  %464 = vst.msk [vmem:[%s759_s5 + $0x38] sm:$0xff] %vm456_vm0, %v431_v59  ;;  %v368_v10 = vadd.f32 %v728_v5, %v329_v62  ;;  %v369_v11 = vadd.f32 %v728_v5, %v330_v63  ;;  %v333_v14 = vmul.f32 %v600_v0, %v715_v1  ;;  %v608_v45 = vunpack.c.l.bf16 %v645_v32  ;;  %v300_v0 = vld [vmem:[%s722_s26 + $0x90] sm:$0xff] }
  0x1d   : > { %v334_v15 = vmul.f32 %v601_v2, %v715_v1  ;;  %v370_v16 = vadd.f32 %v728_v5, %v331_v6  ;;  %v371_v17 = vadd.f32 %v728_v5, %v332_v7  ;;  %v335_v20 = vmul.f32 %v604_v8, %v715_v1  ;;  %v301_v2 = vld [vmem:[%s722_s26 + $0x98] sm:$0xff]  ;;  %v302_v8 = vld [vmem:[%s722_s26 + $0xa0] sm:$0xff] }
  0x1e   : > { %v336_v21 = vmul.f32 %v605_v9, %v715_v1  ;;  %v400_v22 = vadd.f32 %v368_v10, %v290_v3  ;;  %v401_v23 = vadd.f32 %v369_v11, %v291_v4  ;;  %v372_v24 = vadd.f32 %v728_v5, %v333_v14  ;;  %v303_v9 = vld [vmem:[%s722_s26 + $0xa8] sm:$0xff] }
  0x1f   : > { %v373_v25 = vadd.f32 %v728_v5, %v334_v15  ;;  %v402_v28 = vadd.f32 %v370_v16, %v292_v12  ;;  %v403_v29 = vadd.f32 %v371_v17, %v293_v13  ;;  %v374_v30 = vadd.f32 %v728_v5, %v335_v20  ;;  %v304_v16 = vld [vmem:[%s722_s26 + $0xb0] sm:$0xff]  ;;  %v305_v17 = vld [vmem:[%s722_s26 + $0xb8] sm:$0xff] }
  0x20   : > { %v375_v31 = vadd.f32 %v728_v5, %v336_v21  ;;  %v432_v33 = vmax.f32 %v400_v22, 0.0  ;;  %v433_v34 = vmax.f32 %v401_v23, 0.0  ;;  %v404_v35 = vadd.f32 %v372_v24, %v294_v18  ;;  %v649_v22 = vld [vmem:[%s709_s21 + $0x60] sm:$0xff]  }
  0x21   : > { %v405_v36 = vadd.f32 %v373_v25, %v295_v19  ;;  %v434_v38 = vmax.f32 %v402_v28, 0.0  ;;  %v435_v39 = vmax.f32 %v403_v29, 0.0  ;;  %v406_v40 = vadd.f32 %v374_v30, %v296_v26 }
  0x22   : > { %v407_v41 = vadd.f32 %v375_v31, %v297_v27  ;;  %465 = vst.msk [vmem:[%s759_s5 + $0x40] sm:$0xff] %vm456_vm0, %v432_v33  ;;  %466 = vst.msk [vmem:[%s759_s5 + $0x48] sm:$0xff] %vm456_vm0, %v433_v34  ;;  %v436_v43 = vmax.f32 %v404_v35, 0.0  ;;  %v609_v46 = vunpack.c.h.bf16 %v645_v32  ;;  %v612_v50 = vunpack.c.l.bf16 %v646_v37  ;;  %v650_v27 = vld [vmem:[%s709_s21 + $0x68] sm:$0xff]   ;;  %v651_v32 = vld [vmem:[%s709_s21 + $0x70] sm:$0xff]  }
  0x23   : > { %v437_v44 = vmax.f32 %v405_v36, 0.0  ;;  %467 = vst.msk [vmem:[%s759_s5 + $0x50] sm:$0xff] %vm456_vm0, %v434_v38  ;;  %468 = vst.msk [vmem:[%s759_s5 + $0x58] sm:$0xff] %vm456_vm0, %v435_v39  ;;  %v438_v48 = vmax.f32 %v406_v40, 0.0  ;;  %v613_v51 = vunpack.c.h.bf16 %v646_v37  ;;  %v337_v52 = vmul.f32 %v608_v45, %v715_v1  ;;  %v652_v37 = vld [vmem:[%s709_s21 + $0x78] sm:$0xff]  }
  0x24   : > { %v439_v49 = vmax.f32 %v407_v41, 0.0  ;;  %469 = vst.msk [vmem:[%s759_s5 + $0x60] sm:$0xff] %vm456_vm0, %v436_v43  ;;  %v338_v53 = vmul.f32 %v609_v46, %v715_v1  ;;  %v616_v54 = vunpack.c.l.bf16 %v647_v42  ;;  %v617_v55 = vunpack.c.h.bf16 %v647_v42  ;;  %v306_v46 = vld [vmem:[%s722_s26 + $0xc0] sm:$0xff] }
  0x25   : > { %470 = vst.msk [vmem:[%s759_s5 + $0x68] sm:$0xff] %vm456_vm0, %v437_v44  ;;  %471 = vst.msk [vmem:[%s759_s5 + $0x70] sm:$0xff] %vm456_vm0, %v438_v48  ;;  %v339_v58 = vmul.f32 %v612_v50, %v715_v1  ;;  %v340_v59 = vmul.f32 %v613_v51, %v715_v1  ;;  %v620_v60 = vunpack.c.l.bf16 %v648_v47  ;;  %v621_v61 = vunpack.c.h.bf16 %v648_v47  ;;  %v307_v47 = vld [vmem:[%s722_s26 + $0xc8] sm:$0xff] }
  0x26   : > { %472 = vst.msk [vmem:[%s759_s5 + $0x78] sm:$0xff] %vm456_vm0, %v439_v49  ;;  %v376_v62 = vadd.f32 %v728_v5, %v337_v52  ;;  %v377_v63 = vadd.f32 %v728_v5, %v338_v53  ;;  %v341_v3 = vmul.f32 %v616_v54, %v715_v1  ;;  %v342_v4 = vmul.f32 %v617_v55, %v715_v1  ;;  %v308_v54 = vld [vmem:[%s722_s26 + $0xd0] sm:$0xff]  ;;  %v309_v55 = vld [vmem:[%s722_s26 + $0xd8] sm:$0xff] }
  0x27   : > { %v378_v6 = vadd.f32 %v728_v5, %v339_v58  ;;  %v379_v7 = vadd.f32 %v728_v5, %v340_v59  ;;  %v343_v10 = vmul.f32 %v620_v60, %v715_v1  ;;  %v344_v11 = vmul.f32 %v621_v61, %v715_v1  ;;  %v310_v60 = vld [vmem:[%s722_s26 + $0xe0] sm:$0xff]  ;;  %v311_v61 = vld [vmem:[%s722_s26 + $0xe8] sm:$0xff] }
  0x28   : > { %v408_v12 = vadd.f32 %v376_v62, %v298_v56  ;;  %v409_v13 = vadd.f32 %v377_v63, %v299_v57  ;;  %v380_v14 = vadd.f32 %v728_v5, %v341_v3  ;;  %v381_v15 = vadd.f32 %v728_v5, %v342_v4 }
  0x29   : > { %v410_v18 = vadd.f32 %v378_v6, %v300_v0  ;;  %v411_v19 = vadd.f32 %v379_v7, %v301_v2  ;;  %v382_v20 = vadd.f32 %v728_v5, %v343_v10  ;;  %v383_v21 = vadd.f32 %v728_v5, %v344_v11  ;;  %v312_v6 = vld [vmem:[%s722_s26 + $0xf0] sm:$0xff]  ;;  %v313_v7 = vld [vmem:[%s722_s26 + $0xf8] sm:$0xff] }
  0x2a   : > { %v440_v23 = vmax.f32 %v408_v12, 0.0  ;;  %v441_v24 = vmax.f32 %v409_v13, 0.0  ;;  %v412_v25 = vadd.f32 %v380_v14, %v302_v8  ;;  %v413_v26 = vadd.f32 %v381_v15, %v303_v9 }
  0x2b   : > { %v442_v28 = vmax.f32 %v410_v18, 0.0  ;;  %v443_v29 = vmax.f32 %v411_v19, 0.0  ;;  %v414_v30 = vadd.f32 %v382_v20, %v304_v16  ;;  %v415_v31 = vadd.f32 %v383_v21, %v305_v17 }
  0x2c   : > { %473 = vst.msk [vmem:[%s759_s5 + $0x80] sm:$0xff] %vm456_vm0, %v440_v23  ;;  %474 = vst.msk [vmem:[%s759_s5 + $0x88] sm:$0xff] %vm456_vm0, %v441_v24  ;;  %v444_v33 = vmax.f32 %v412_v25, 0.0  ;;  %v445_v34 = vmax.f32 %v413_v26, 0.0  ;;  %v624_v35 = vunpack.c.l.bf16 %v649_v22  ;;  %v625_v36 = vunpack.c.h.bf16 %v649_v22 }
  0x2d   : > { %475 = vst.msk [vmem:[%s759_s5 + $0x90] sm:$0xff] %vm456_vm0, %v442_v28  ;;  %476 = vst.msk [vmem:[%s759_s5 + $0x98] sm:$0xff] %vm456_vm0, %v443_v29  ;;  %v446_v38 = vmax.f32 %v414_v30, 0.0  ;;  %v447_v39 = vmax.f32 %v415_v31, 0.0  ;;  %v628_v40 = vunpack.c.l.bf16 %v650_v27  ;;  %v629_v41 = vunpack.c.h.bf16 %v650_v27 }
  0x2e   : > { %477 = vst.msk [vmem:[%s759_s5 + $0xa0] sm:$0xff] %vm456_vm0, %v444_v33  ;;  %478 = vst.msk [vmem:[%s759_s5 + $0xa8] sm:$0xff] %vm456_vm0, %v445_v34  ;;  %v345_v42 = vmul.f32 %v624_v35, %v715_v1  ;;  %v346_v43 = vmul.f32 %v625_v36, %v715_v1  ;;  %v632_v44 = vunpack.c.l.bf16 %v651_v32  ;;  %v633_v45 = vunpack.c.h.bf16 %v651_v32 }
  0x2f   : > { %479 = vst.msk [vmem:[%s759_s5 + $0xb0] sm:$0xff] %vm456_vm0, %v446_v38  ;;  %480 = vst.msk [vmem:[%s759_s5 + $0xb8] sm:$0xff] %vm456_vm0, %v447_v39  ;;  %v347_v48 = vmul.f32 %v628_v40, %v715_v1  ;;  %v348_v49 = vmul.f32 %v629_v41, %v715_v1  ;;  %v636_v50 = vunpack.c.l.bf16 %v652_v37  ;;  %v637_v51 = vunpack.c.h.bf16 %v652_v37 }
  0x30   : > { %v384_v52 = vadd.f32 %v728_v5, %v345_v42  ;;  %v385_v53 = vadd.f32 %v728_v5, %v346_v43  ;;  %v349_v56 = vmul.f32 %v632_v44, %v715_v1  ;;  %v350_v57 = vmul.f32 %v633_v45, %v715_v1 }
  0x31   : > { %v386_v58 = vadd.f32 %v728_v5, %v347_v48  ;;  %v387_v59 = vadd.f32 %v728_v5, %v348_v49  ;;  %v351_v62 = vmul.f32 %v636_v50, %v715_v1  ;;  %v352_v63 = vmul.f32 %v637_v51, %v715_v1 }
  0x32   : > { %v416_v0 = vadd.f32 %v384_v52, %v306_v46  ;;  %v417_v2 = vadd.f32 %v385_v53, %v307_v47  ;;  %v388_v3 = vadd.f32 %v728_v5, %v349_v56  ;;  %v389_v4 = vadd.f32 %v728_v5, %v350_v57 }
  0x33   : > { %v418_v8 = vadd.f32 %v386_v58, %v308_v54  ;;  %v419_v9 = vadd.f32 %v387_v59, %v309_v55  ;;  %v390_v10 = vadd.f32 %v728_v5, %v351_v62  ;;  %v391_v11 = vadd.f32 %v728_v5, %v352_v63 }
  0x34   : > { %v448_v12 = vmax.f32 %v416_v0, 0.0  ;;  %v449_v1 = vmax.f32 %v417_v2, 0.0  ;;  %v420_v13 = vadd.f32 %v388_v3, %v310_v60  ;;  %v421_v14 = vadd.f32 %v389_v4, %v311_v61 }
  0x35   : > { %v450_v15 = vmax.f32 %v418_v8, 0.0  ;;  %v451_v16 = vmax.f32 %v419_v9, 0.0  ;;  %v422_v17 = vadd.f32 %v390_v10, %v312_v6  ;;  %v423_v18 = vadd.f32 %v391_v11, %v313_v7 }
  0x36   : > { %481 = vst.msk [vmem:[%s759_s5 + $0xc0] sm:$0xff] %vm456_vm0, %v448_v12  ;;  %482 = vst.msk [vmem:[%s759_s5 + $0xc8] sm:$0xff] %vm456_vm0, %v449_v1  ;;  %v452_v19 = vmax.f32 %v420_v13, 0.0  ;;  %v453_v20 = vmax.f32 %v421_v14, 0.0 }
  0x37   : > { %483 = vst.msk [vmem:[%s759_s5 + $0xd0] sm:$0xff] %vm456_vm0, %v450_v15  ;;  %484 = vst.msk [vmem:[%s759_s5 + $0xd8] sm:$0xff] %vm456_vm0, %v451_v16  ;;  %v454_v5 = vmax.f32 %v422_v17, 0.0  ;;  %v455_v21 = vmax.f32 %v423_v18, 0.0 }
  0x38   : > { %485 = vst.msk [vmem:[%s759_s5 + $0xe0] sm:$0xff] %vm456_vm0, %v452_v19  ;;  %486 = vst.msk [vmem:[%s759_s5 + $0xe8] sm:$0xff] %vm456_vm0, %v453_v20 }
  0x39   : > { %487 = vst.msk [vmem:[%s759_s5 + $0xf0] sm:$0xff] %vm456_vm0, %v454_v5  ;;  %488 = vst.msk [vmem:[%s759_s5 + $0xf8] sm:$0xff] %vm456_vm0, %v455_v21 }
  0x3a PF: > { %s14_s15 = sadd.s32 1, %s667_s15  }
  0x3b   : > { %p11_p4 = scmp.ge.s32.totalorder %s14_s15, 4  }
  0x3d   :  { %13 = sbr.rel (!%p11_p4) target bundleno = 1 (0x1), region = 69 }

// kernel: basic_block_ibn_forward.3
= control target key start
LH: loop header
LB: loop body
LE: loop exit
PB: predicated region body
PF: predicated region fallthrough
CT: control target
= control target key end

     0   :  { %s4091_s15 = smov 0   ;;  %s5304_s0 = inlined_call_operand.vmem [shape: f32[2,16,16,8], index: 0, kind: input, shape index: {}]   ;;  %s5305_s1 = inlined_call_operand.vmem [shape: bf16[9,8,8], index: 1, kind: input, shape index: {}]   ;;  %s5306_s2 = inlined_call_operand.vmem [shape: bf16[2,16,16,8], index: 2, kind: output, shape index: {0}]   ;;  %s5307_s3 = inlined_call_operand.vmem [shape: f32[2,1,8], index: 3, kind: output, shape index: {1}]   ;;  %s5308_s4 = inlined_call_operand.vmem [shape: f32[2,1,8], index: 4, kind: output, shape index: {2}]  }
   0x1 LB: > { %s3348_s16 = sadd.s32 4294967295, %s4063_s15   ;;  %p3352_p0 = scmp.ge.s32.totalorder %s4063_s15, 1  ;;  %s4063_s15 = sphi %s4091_s15, %s15_s15  }
   0x2   : > { %p167_p1 = scmp.lt.s32.totalorder %s4063_s15, 3 }
   0x4   : > { %p168_p2 = pnand %p3352_p0, %p167_p1 }
   0x6   : > { %171 = sbr.rel (%p168_p2) target bundleno = 551 (0x227), region = 28 }
   0xb   : > { %v3357_v0 = vld [vmem:[%s5305_s1 + $0x4] sm:$0xf]  ;;  %vm474_vm0 = vcmask 1043456   ;;  %vm216_vm1 = vcmask 64512   ;;  %vm219_vm2 = vcmask 58368   ;;  %v4065_v2 = vmov 0.0  }
   0xc   : > { %4038 = vmatprep.subr.msk.bf16.mxu0 %vm474_vm0, %v3357_v0  ;;  %4039 = vmatprep.subr.msk.bf16.mxu1 %vm474_vm0, %v3357_v0  ;;  %v476_v1 = vsel %vm474_vm0, %v3357_v0, 0  ;;  %217 = vst.msk [vmem:[#allocation2] sm:$0xff] %vm216_vm1, %v4065_v2  ;;  %218 = vst.msk [vmem:[#allocation2 + $0x8] sm:$0xff] %vm216_vm1, %v4065_v2  ;;  %vm225_vm3 = vcmask 57344   ;;  %p4111_p3 = scmp.lt.s32.totalorder %s3348_s16, 1  ;;  %vm3038_vm4 = vcmask 60416  }
   0xd   : > { %220 = vst.msk [vmem:[#allocation2 + $0x10] sm:$0x3] %vm219_vm2, %v4065_v2  ;;  %224 = vst.msk [vmem:[#allocation2 + $0x1a8] sm:$0x3] %vm219_vm2, %v4065_v2  ;;  %v4118_v3 = vld [vmem:[%s5305_s1] sm:$0xf]  ;;  %3731 = vmatpush3.bf16.msra.mxu0 %v476_v1  ;;  %4037 = vmatpush3.bf16.msra.mxu1 %v476_v1 }
   0xe   : > { %222 = vst.msk [vmem:[#allocation2 + $0x198] sm:$0xff] %vm216_vm1, %v4065_v2  ;;  %223 = vst.msk [vmem:[#allocation2 + $0x1a0] sm:$0xff] %vm216_vm1, %v4065_v2  ;;  %v3390_v4 = vld [vmem:[%s5305_s1 + $0x8] sm:$0xf]  ;;  %s5379_s16 = smov (!%p4111_p3, %s3348_s16), 1  ;;  %4040 = vmatprep.subr.msk.bf16.mxu1 %vm474_vm0, %v4118_v3  ;;  %v688_v44 = vsel %vm474_vm0, %v4118_v3, 0 }
   0xf   : > { %226 = vst.msk [vmem:[#allocation2] sm:$0x1] %vm225_vm3, %v4065_v2  ;;  %244 = vst.msk [vmem:[#allocation2 + $0x11] sm:$0x1] %vm225_vm3, %v4065_v2  ;;  %4041 = vmatprep.subr.msk.bf16.mxu0 %vm474_vm0, %v3390_v4  ;;  %s3543_s24 = sshll.u32 %s5379_s16, 8  ;;  %v950_v36 = vsel %vm474_vm0, %v3390_v4, 0  ;;  %s211_s22 = scalar_lea.vmem %s5307_s3, %s5379_s16 }
  0x10   : > { %261 = vst.msk [vmem:[#allocation2 + $0x1a9] sm:$0x1] %vm225_vm3, %v4065_v2  ;;  %227 = vst.msk [vmem:[#allocation2 + $0x18] sm:$0x1] %vm225_vm3, %v4065_v2  ;;  %s4172_s27 = scalar_lea.vmem %s5304_s0, %s3543_s24  ;;  %v4222_v33 = vld [vmem:[%s5305_s1 + $0x10] sm:$0xf]  ;;  %s214_s25 = scalar_lea.vmem %s5308_s4, %s5379_s16 }
  0x11   : > { %228 = vst.msk [vmem:[#allocation2 + $0x30] sm:$0x1] %vm225_vm3, %v4065_v2  ;;  %229 = vst.msk [vmem:[#allocation2 + $0x48] sm:$0x1] %vm225_vm3, %v4065_v2  ;;  %v262_v5 = vld [vmem:[%s4172_s27] sm:$0xff]  ;;  %v263_v6 = vld [vmem:[%s4172_s27 + $0x8] sm:$0xff] }
  0x12   : > { %230 = vst.msk [vmem:[#allocation2 + $0x60] sm:$0x1] %vm225_vm3, %v4065_v2  ;;  %231 = vst.msk [vmem:[#allocation2 + $0x78] sm:$0x1] %vm225_vm3, %v4065_v2  ;;  %v276_v7 = vld [vmem:[%s4172_s27 + $0x70] sm:$0xff]  ;;  %v277_v10 = vld [vmem:[%s4172_s27 + $0x78] sm:$0xff] }
  0x13   : > { %232 = vst.msk [vmem:[#allocation2 + $0x90] sm:$0x1] %vm225_vm3, %v4065_v2  ;;  %233 = vst.msk [vmem:[#allocation2 + $0xa8] sm:$0x1] %vm225_vm3, %v4065_v2  ;;  %v376_v8 = vld [vmem:[#allocation2 + $0x1] sm:$0xff]  ;;  %v264_v14 = vld [vmem:[%s4172_s27 + $0x10] sm:$0xff] }
  0x14   : > { %234 = vst.msk [vmem:[#allocation2 + $0xc0] sm:$0x1] %vm225_vm3, %v4065_v2  ;;  %235 = vst.msk [vmem:[#allocation2 + $0xd8] sm:$0x1] %vm225_vm3, %v4065_v2  ;;  %v377_v9 = vld [vmem:[#allocation2 + $0x9] sm:$0xff]  ;;  %v278_v12 = vld [vmem:[%s4172_s27 + $0x80] sm:$0xff] }
  0x15   : > { %236 = vst.msk [vmem:[#allocation2 + $0xf0] sm:$0x1] %vm225_vm3, %v4065_v2  ;;  %237 = vst.msk [vmem:[#allocation2 + $0x108] sm:$0x1] %vm225_vm3, %v4065_v2  ;;  %v408_v11 = vpack.c.bf16 %v377_v9, %v376_v8  ;;  %v279_v13 = vld [vmem:[%s4172_s27 + $0x88] sm:$0xff]  ;;  %v265_v15 = vld [vmem:[%s4172_s27 + $0x18] sm:$0xff] }
  0x16   : > { %238 = vst.msk [vmem:[#allocation2 + $0x120] sm:$0x1] %vm225_vm3, %v4065_v2  ;;  %239 = vst.msk [vmem:[#allocation2 + $0x138] sm:$0x1] %vm225_vm3, %v4065_v2  ;;  %v266_v16 = vld [vmem:[%s4172_s27 + $0x20] sm:$0xff]  ;;  %v267_v17 = vld [vmem:[%s4172_s27 + $0x28] sm:$0xff] }
  0x17   : > { %240 = vst.msk [vmem:[#allocation2 + $0x150] sm:$0x1] %vm225_vm3, %v4065_v2  ;;  %241 = vst.msk [vmem:[#allocation2 + $0x168] sm:$0x1] %vm225_vm3, %v4065_v2  ;;  %3732 = vmatprep.mubr.msk.bf16.mxu0 %vm216_vm1, %v408_v11  ;;  %v280_v18 = vld [vmem:[%s4172_s27 + $0x90] sm:$0xff]  ;;  %v281_v19 = vld [vmem:[%s4172_s27 + $0x98] sm:$0xff] }
  0x18   : > { %242 = vst.msk [vmem:[#allocation2 + $0x180] sm:$0x1] %vm225_vm3, %v4065_v2  ;;  %245 = vst.msk [vmem:[#allocation2 + $0x29] sm:$0x1] %vm225_vm3, %v4065_v2  ;;  %v282_v20 = vld [vmem:[%s4172_s27 + $0xa0] sm:$0xff]  ;;  %v283_v21 = vld [vmem:[%s4172_s27 + $0xa8] sm:$0xff] }
  0x19   : > { %246 = vst.msk [vmem:[#allocation2 + $0x41] sm:$0x1] %vm225_vm3, %v4065_v2  ;;  %247 = vst.msk [vmem:[#allocation2 + $0x59] sm:$0x1] %vm225_vm3, %v4065_v2  ;;  %v268_v22 = vld [vmem:[%s4172_s27 + $0x30] sm:$0xff]  ;;  %v269_v23 = vld [vmem:[%s4172_s27 + $0x38] sm:$0xff] }
  0x1a   : > { %248 = vst.msk [vmem:[#allocation2 + $0x71] sm:$0x1] %vm225_vm3, %v4065_v2  ;;  %249 = vst.msk [vmem:[#allocation2 + $0x89] sm:$0x1] %vm225_vm3, %v4065_v2  ;;  %v270_v24 = vld [vmem:[%s4172_s27 + $0x40] sm:$0xff]  ;;  %v271_v25 = vld [vmem:[%s4172_s27 + $0x48] sm:$0xff] }
  0x1b   : > { %250 = vst.msk [vmem:[#allocation2 + $0xa1] sm:$0x1] %vm225_vm3, %v4065_v2  ;;  %251 = vst.msk [vmem:[#allocation2 + $0xb9] sm:$0x1] %vm225_vm3, %v4065_v2  ;;  %v284_v26 = vld [vmem:[%s4172_s27 + $0xb0] sm:$0xff]  ;;  %v285_v27 = vld [vmem:[%s4172_s27 + $0xb8] sm:$0xff] }
  0x1c   : > { %252 = vst.msk [vmem:[#allocation2 + $0xd1] sm:$0x1] %vm225_vm3, %v4065_v2  ;;  %253 = vst.msk [vmem:[#allocation2 + $0xe9] sm:$0x1] %vm225_vm3, %v4065_v2  ;;  %v286_v28 = vld [vmem:[%s4172_s27 + $0xc0] sm:$0xff]  ;;  %v287_v29 = vld [vmem:[%s4172_s27 + $0xc8] sm:$0xff] }
  0x1d   : > { %254 = vst.msk [vmem:[#allocation2 + $0x101] sm:$0x1] %vm225_vm3, %v4065_v2  ;;  %255 = vst.msk [vmem:[#allocation2 + $0x119] sm:$0x1] %vm225_vm3, %v4065_v2  ;;  %v272_v37 = vld [vmem:[%s4172_s27 + $0x50] sm:$0xff]  ;;  %v273_v38 = vld [vmem:[%s4172_s27 + $0x58] sm:$0xff] }
  0x1e   : > { %256 = vst.msk [vmem:[#allocation2 + $0x131] sm:$0x1] %vm225_vm3, %v4065_v2  ;;  %257 = vst.msk [vmem:[#allocation2 + $0x149] sm:$0x1] %vm225_vm3, %v4065_v2  ;;  %v4242_v47 = vld [vmem:[%s5305_s1 + $0xc] sm:$0xf] }
  0x1f   : > { %258 = vst.msk [vmem:[#allocation2 + $0x161] sm:$0x1] %vm225_vm3, %v4065_v2  ;;  %259 = vst.msk [vmem:[#allocation2 + $0x179] sm:$0x1] %vm225_vm3, %v4065_v2  ;;  %v274_v61 = vld [vmem:[%s4172_s27 + $0x60] sm:$0xff]  ;;  %v275_v62 = vld [vmem:[%s4172_s27 + $0x68] sm:$0xff] }
  0x20   : > { %260 = vst.msk [vmem:[#allocation2 + $0x191] sm:$0x1] %vm225_vm3, %v4065_v2  ;;  %243 = vst.msk [vmem:[#allocation2 + $0x198] sm:$0x1] %vm225_vm3, %v4065_v2  ;;  %v288_v63 = vld [vmem:[%s4172_s27 + $0xd0] sm:$0xff]  ;;  %v289_v1 = vld [vmem:[%s4172_s27 + $0xd8] sm:$0xff] }
  0x21   : > { %295 = vst.msk [vmem:[#allocation2 + $0x19] sm:$0xff] %vm216_vm1, %v262_v5  ;;  %296 = vst.msk [vmem:[#allocation2 + $0x21] sm:$0xff] %vm216_vm1, %v263_v6  ;;  %v290_v3 = vld [vmem:[%s4172_s27 + $0xe0] sm:$0xff]  ;;  %v291_v4 = vld [vmem:[%s4172_s27 + $0xe8] sm:$0xff]  ;;  %s3544_s14 = sshll.u32 %s5379_s16, 7 }
  0x22   : > { %309 = vst.msk [vmem:[#allocation2 + $0xc1] sm:$0xff] %vm216_vm1, %v276_v7  ;;  %310 = vst.msk [vmem:[#allocation2 + $0xc9] sm:$0xff] %vm216_vm1, %v277_v10  ;;  %s5071_s19 = scalar_lea.vmem %s5306_s2, %s3544_s14 }
  0x23   : > { %311 = vst.msk [vmem:[#allocation2 + $0xd9] sm:$0xff] %vm216_vm1, %v278_v12  ;;  %312 = vst.msk [vmem:[#allocation2 + $0xe1] sm:$0xff] %vm216_vm1, %v279_v13 }
  0x24   : > { %297 = vst.msk [vmem:[#allocation2 + $0x31] sm:$0xff] %vm216_vm1, %v264_v14  ;;  %298 = vst.msk [vmem:[#allocation2 + $0x39] sm:$0xff] %vm216_vm1, %v265_v15 }
  0x25   : > { %299 = vst.msk [vmem:[#allocation2 + $0x49] sm:$0xff] %vm216_vm1, %v266_v16  ;;  %300 = vst.msk [vmem:[#allocation2 + $0x51] sm:$0xff] %vm216_vm1, %v267_v17 }
  0x26   : > { %313 = vst.msk [vmem:[#allocation2 + $0xf1] sm:$0xff] %vm216_vm1, %v280_v18  ;;  %314 = vst.msk [vmem:[#allocation2 + $0xf9] sm:$0xff] %vm216_vm1, %v281_v19  ;;  %v851_v19 = vld [vmem:[#allocation2 + $0x2] sm:$0xff] }
  0x27   : > { %315 = vst.msk [vmem:[#allocation2 + $0x109] sm:$0xff] %vm216_vm1, %v282_v20  ;;  %316 = vst.msk [vmem:[#allocation2 + $0x111] sm:$0xff] %vm216_vm1, %v283_v21  ;;  %v852_v20 = vld [vmem:[#allocation2 + $0xa] sm:$0xff] }
  0x28   : > { %301 = vst.msk [vmem:[#allocation2 + $0x61] sm:$0xff] %vm216_vm1, %v268_v22  ;;  %302 = vst.msk [vmem:[#allocation2 + $0x69] sm:$0xff] %vm216_vm1, %v269_v23  ;;  %v378_v30 = vld [vmem:[#allocation2 + $0x19] sm:$0xff]  ;;  %v379_v31 = vld [vmem:[#allocation2 + $0x21] sm:$0xff] }
  0x29   : > { %303 = vst.msk [vmem:[#allocation2 + $0x79] sm:$0xff] %vm216_vm1, %v270_v24  ;;  %304 = vst.msk [vmem:[#allocation2 + $0x81] sm:$0xff] %vm216_vm1, %v271_v25  ;;  %v392_v32 = vld [vmem:[#allocation2 + $0xc1] sm:$0xff]  ;;  %v4224_v34 = vpack.c.bf16 %v379_v31, %v378_v30  ;;  %v393_v35 = vld [vmem:[#allocation2 + $0xc9] sm:$0xff] }
  0x2a   : > { %317 = vst.msk [vmem:[#allocation2 + $0x121] sm:$0xff] %vm216_vm1, %v284_v26  ;;  %318 = vst.msk [vmem:[#allocation2 + $0x129] sm:$0xff] %vm216_vm1, %v285_v27  ;;  %v4229_v39 = vpack.c.bf16 %v393_v35, %v392_v32  ;;  %v394_v40 = vld [vmem:[#allocation2 + $0xd9] sm:$0xff]  ;;  %v395_v41 = vld [vmem:[#allocation2 + $0xe1] sm:$0xff]  ;;  %v883_v26 = vpack.c.bf16 %v852_v20, %v851_v19 }
  0x2b   : > { %319 = vst.msk [vmem:[#allocation2 + $0x139] sm:$0xff] %vm216_vm1, %v286_v28  ;;  %320 = vst.msk [vmem:[#allocation2 + $0x141] sm:$0xff] %vm216_vm1, %v287_v29  ;;  %v380_v42 = vld [vmem:[#allocation2 + $0x31] sm:$0xff]  ;;  %3733 = vmatmul.mubr.msk.bf16.vlgmr.msra.gmra.mxu0 %vm216_vm1, %v4224_v34  ;;  %v4235_v43 = vpack.c.bf16 %v395_v41, %v394_v40  ;;  %v381_v45 = vld [vmem:[#allocation2 + $0x39] sm:$0xff] }
  0x2c   : > { %305 = vst.msk [vmem:[#allocation2 + $0x91] sm:$0xff] %vm216_vm1, %v272_v37  ;;  %306 = vst.msk [vmem:[#allocation2 + $0x99] sm:$0xff] %vm216_vm1, %v273_v38  ;;  %v382_v46 = vld [vmem:[#allocation2 + $0x49] sm:$0xff]  ;;  %3748 = vmatprep.mubr.msk.bf16.mxu1 %vm216_vm1, %v4229_v39  ;;  %3799 = vmatpush3.bf16.msra.mxu0 %v950_v36  ;;  %v4246_v48 = vpack.c.bf16 %v381_v45, %v380_v42  ;;  %v383_v49 = vld [vmem:[#allocation2 + $0x51] sm:$0xff] }
  0x2d   : > { %v396_v50 = vld [vmem:[#allocation2 + $0xf1] sm:$0xff]  ;;  %v397_v51 = vld [vmem:[#allocation2 + $0xf9] sm:$0xff]  ;;  %3749 = vmatmul.mubr.msk.bf16.vlgmr.msra.gmra.mxu1 %vm216_vm1, %v4235_v43  ;;  %4043 = vmatprep.subr.msk.bf16.mxu0 %vm474_vm0, %v4222_v33  ;;  %v4256_v57 = vpack.c.bf16 %v383_v49, %v382_v46  ;;  %307 = vst.msk [vmem:[#allocation2 + $0xa9] sm:$0xff] %vm216_vm1, %v274_v61  ;;  %308 = vst.msk [vmem:[#allocation2 + $0xb1] sm:$0xff] %vm216_vm1, %v275_v62 }
  0x2e   : > { %v4250_v52 = vpack.c.bf16 %v397_v51, %v396_v50  ;;  %3765 = vmatpush3.bf16.msra.mxu1 %v688_v44  ;;  %3736 = vmatprep.mubr.msk.bf16.mxu0 %vm216_vm1, %v4246_v48  ;;  %v398_v55 = vld [vmem:[#allocation2 + $0x109] sm:$0xff]  ;;  %v399_v56 = vld [vmem:[#allocation2 + $0x111] sm:$0xff]  ;;  %321 = vst.msk [vmem:[#allocation2 + $0x151] sm:$0xff] %vm216_vm1, %v288_v63  ;;  %322 = vst.msk [vmem:[#allocation2 + $0x159] sm:$0xff] %vm216_vm1, %v289_v1  ;;  %v1538_v44 = vsel %vm474_vm0, %v4222_v33, 0  ;;  %v1244_v51 = vsel %vm474_vm0, %v4242_v47, 0 }
  0x2f   : > { %v384_v53 = vld [vmem:[#allocation2 + $0x61] sm:$0xff]  ;;  %v385_v54 = vld [vmem:[#allocation2 + $0x69] sm:$0xff]  ;;  %4042 = vmatprep.subr.msk.bf16.mxu1 %vm474_vm0, %v4242_v47  ;;  %v4267_v0 = vpack.c.bf16 %v399_v56, %v398_v55  ;;  %323 = vst.msk [vmem:[#allocation2 + $0x169] sm:$0xff] %vm216_vm1, %v290_v3  ;;  %324 = vst.msk [vmem:[#allocation2 + $0x171] sm:$0xff] %vm216_vm1, %v291_v4 }
  0x30   : > { %3752 = vmatprep.mubr.msk.bf16.mxu1 %vm216_vm1, %v4250_v52  ;;  %v4262_v60 = vpack.c.bf16 %v385_v54, %v384_v53  ;;  %v386_v5 = vld [vmem:[#allocation2 + $0x79] sm:$0xff]  ;;  %v387_v6 = vld [vmem:[#allocation2 + $0x81] sm:$0xff]  ;;  %v331_v38 = vld [vmem:[#allocation2 + $0x30] sm:$0xff] }
  0x31   : > { %v400_v58 = vld [vmem:[#allocation2 + $0x121] sm:$0xff]  ;;  %v401_v59 = vld [vmem:[#allocation2 + $0x129] sm:$0xff]  ;;  %v4288_v11 = vpack.c.bf16 %v387_v6, %v386_v5  ;;  %v855_v31 = vld [vmem:[#allocation2 + $0x32] sm:$0xff] }
  0x32   : > { %v4273_v2 = vpack.c.bf16 %v401_v59, %v400_v58  ;;  %v402_v9 = vld [vmem:[#allocation2 + $0x139] sm:$0xff]  ;;  %v403_v10 = vld [vmem:[#allocation2 + $0x141] sm:$0xff]  ;;  %v292_v49 = vld [vmem:[%s4172_s27 + $0xf0] sm:$0xff] }
  0x33   : > { %3737 = vmatmul.mubr.msk.bf16.gmra.mxu0 %vm216_vm1, %v4256_v57  ;;  %v388_v7 = vld [vmem:[#allocation2 + $0x91] sm:$0xff]  ;;  %v389_v8 = vld [vmem:[#allocation2 + $0x99] sm:$0xff]  ;;  %v4292_v14 = vpack.c.bf16 %v403_v10, %v402_v9  ;;  %v328_v25 = vld [vmem:[#allocation2 + $0x8] sm:$0xff]  ;;  %325 = vst.msk [vmem:[#allocation2 + $0x181] sm:$0xff] %vm216_vm1, %v292_v49 }
  0x34   : > { %3740 = vmatprep.mubr.msk.bf16.mxu0 %vm216_vm1, %v4262_v60  ;;  %v4290_v12 = vpack.c.bf16 %v389_v8, %v388_v7  ;;  %v390_v17 = vld [vmem:[#allocation2 + $0xa9] sm:$0xff]  ;;  %v391_v18 = vld [vmem:[#allocation2 + $0xb1] sm:$0xff]  ;;  %v327_v24 = vld [vmem:[#allocation2] sm:$0xff] }
  0x35   : > { %3753 = vmatmul.mubr.msk.bf16.gmra.mxu1 %vm216_vm1, %v4267_v0  ;;  %v404_v13 = vld [vmem:[#allocation2 + $0x151] sm:$0xff]  ;;  %v405_v15 = vld [vmem:[#allocation2 + $0x159] sm:$0xff]  ;;  %v4304_v23 = vpack.c.bf16 %v391_v18, %v390_v17  ;;  %v359_v28 = vpack.c.bf16 %v328_v25, %v327_v24  ;;  %v854_v30 = vld [vmem:[#allocation2 + $0x22] sm:$0xff] }
  0x36   : > { %3756 = vmatprep.mubr.msk.bf16.mxu1 %vm216_vm1, %v4273_v2  ;;  %v4294_v16 = vpack.c.bf16 %v405_v15, %v404_v13  ;;  %v406_v21 = vld [vmem:[#allocation2 + $0x169] sm:$0xff]  ;;  %v407_v22 = vld [vmem:[#allocation2 + $0x171] sm:$0xff]  ;;  %v853_v29 = vld [vmem:[#allocation2 + $0x1a] sm:$0xff] }
  0x37   : > { %v4306_v27 = vpack.c.bf16 %v407_v22, %v406_v21  ;;  %v856_v32 = vld [vmem:[#allocation2 + $0x3a] sm:$0xff]  ;;  %v4314_v37 = vpack.c.bf16 %v854_v30, %v853_v29  ;;  %v857_v33 = vld [vmem:[#allocation2 + $0x4a] sm:$0xff]  ;;  %v858_v53 = vld [vmem:[#allocation2 + $0x52] sm:$0xff] }
  0x38   : > { %v329_v35 = vld [vmem:[#allocation2 + $0x18] sm:$0xff]  ;;  %v330_v36 = vld [vmem:[#allocation2 + $0x20] sm:$0xff]  ;;  %v4316_v41 = vpack.c.bf16 %v856_v32, %v855_v31  ;;  %v4342_v54 = vld [vmem:[%s5305_s1 + $0x14] sm:$0xf]  ;;  %v4350_v59 = vpack.c.bf16 %v858_v53, %v857_v33 }
  0x39   : > { %v332_v40 = vld [vmem:[#allocation2 + $0x38] sm:$0xff]  ;;  %v4318_v42 = vpack.c.bf16 %v330_v36, %v329_v35  ;;  %v859_v55 = vld [vmem:[#allocation2 + $0x62] sm:$0xff]  ;;  %v860_v47 = vld [vmem:[#allocation2 + $0x6a] sm:$0xff] }
  0x3a   : > { %v4322_v45 = vpack.c.bf16 %v332_v40, %v331_v38  ;;  %v4327_v46 = vld [vmem:[%s5305_s1 + $0x18] sm:$0xf]  ;;  %v333_v56 = vld [vmem:[#allocation2 + $0x48] sm:$0xff]  ;;  %v334_v58 = vld [vmem:[#allocation2 + $0x50] sm:$0xff]  ;;  %v4354_v63 = vpack.c.bf16 %v860_v47, %v859_v55 }
  0x3b   : > { %3741 = vmatmul.mubr.msk.bf16.gmra.mxu0 %vm216_vm1, %v4288_v11  ;;  %v293_v50 = vld [vmem:[%s4172_s27 + $0xf8] sm:$0xff]  ;;  %v335_v61 = vld [vmem:[#allocation2 + $0x60] sm:$0xff]  ;;  %v336_v62 = vld [vmem:[#allocation2 + $0x68] sm:$0xff]  ;;  %v4356_v1 = vpack.c.bf16 %v334_v58, %v333_v56 }
  0x3c   : > { %3744 = vmatprep.mubr.msk.bf16.mxu0 %vm216_vm1, %v4290_v12  ;;  %326 = vst.msk [vmem:[#allocation2 + $0x189] sm:$0xff] %vm216_vm1, %v293_v50  ;;  %v4358_v3 = vpack.c.bf16 %v336_v62, %v335_v61  ;;  %v861_v4 = vld [vmem:[#allocation2 + $0x7a] sm:$0xff]  ;;  %v862_v5 = vld [vmem:[#allocation2 + $0x82] sm:$0xff]  ;;  %v863_v6 = vld [vmem:[#allocation2 + $0x92] sm:$0xff] }
  0x3d   : > { %3757 = vmatmul.mubr.msk.bf16.gmra.mxu1 %vm216_vm1, %v4292_v14  ;;  %v864_v7 = vld [vmem:[#allocation2 + $0x9a] sm:$0xff]  ;;  %v4368_v10 = vpack.c.bf16 %v862_v5, %v861_v4  ;;  %v339_v13 = vld [vmem:[#allocation2 + $0x90] sm:$0xff]  ;;  %v867_v22 = vld [vmem:[#allocation2 + $0xc2] sm:$0xff] }
  0x3e   : > { %3760 = vmatprep.mubr.msk.bf16.mxu1 %vm216_vm1, %v4294_v16  ;;  %v337_v8 = vld [vmem:[#allocation2 + $0x78] sm:$0xff]  ;;  %v338_v9 = vld [vmem:[#allocation2 + $0x80] sm:$0xff]  ;;  %v4370_v17 = vpack.c.bf16 %v864_v7, %v863_v6  ;;  %v865_v20 = vld [vmem:[#allocation2 + $0xaa] sm:$0xff] }
  0x3f   : > { %v340_v15 = vld [vmem:[#allocation2 + $0x98] sm:$0xff]  ;;  %v4372_v18 = vpack.c.bf16 %v338_v9, %v337_v8  ;;  %v868_v24 = vld [vmem:[#allocation2 + $0xca] sm:$0xff]  ;;  %v343_v29 = vld [vmem:[#allocation2 + $0xc0] sm:$0xff] }
  0x40   : > { %v4374_v19 = vpack.c.bf16 %v340_v15, %v339_v13  ;;  %v866_v21 = vld [vmem:[#allocation2 + $0xb2] sm:$0xff]  ;;  %v341_v25 = vld [vmem:[#allocation2 + $0xa8] sm:$0xff]  ;;  %v4386_v31 = vpack.c.bf16 %v868_v24, %v867_v22  ;;  %v869_v36 = vld [vmem:[#allocation2 + $0xda] sm:$0xff] }
  0x41   : > { %v344_v30 = vld [vmem:[#allocation2 + $0xc8] sm:$0xff]  ;;  %v871_v40 = vld [vmem:[#allocation2 + $0xf2] sm:$0xff]  ;;  %v346_v50 = vld [vmem:[#allocation2 + $0xe0] sm:$0xff] }
  0x42   : > { %v4390_v35 = vpack.c.bf16 %v344_v30, %v343_v29  ;;  %v870_v38 = vld [vmem:[#allocation2 + $0xe2] sm:$0xff]  ;;  %v345_v49 = vld [vmem:[#allocation2 + $0xd8] sm:$0xff]  ;;  %v347_v33 = vld [vmem:[#allocation2 + $0xf0] sm:$0xff] }
  0x43   : > { %3745 = vmatmul.mubr.msk.bf16.gmra.mxu0 %vm216_vm1, %v4304_v23  ;;  %v348_v53 = vld [vmem:[#allocation2 + $0xf8] sm:$0xff]  ;;  %v4404_v47 = vpack.c.bf16 %v346_v50, %v345_v49  ;;  %v873_v58 = vld [vmem:[#allocation2 + $0x10a] sm:$0xff]  ;;  %v875_v62 = vld [vmem:[#allocation2 + $0x122] sm:$0xff] }
  0x44   : > { %3800 = vmatprep.mubr.msk.bf16.mxu0 %vm216_vm1, %v883_v26  ;;  %v342_v26 = vld [vmem:[#allocation2 + $0xb0] sm:$0xff]  ;;  %v4406_v56 = vpack.c.bf16 %v348_v53, %v347_v33  ;;  %v349_v5 = vld [vmem:[#allocation2 + $0x108] sm:$0xff]  ;;  %v351_v8 = vld [vmem:[#allocation2 + $0x120] sm:$0xff] }
  0x45   : > { %3761 = vmatmul.mubr.msk.bf16.gmra.mxu1 %vm216_vm1, %v4306_v27  ;;  %v4388_v32 = vpack.c.bf16 %v342_v26, %v341_v25  ;;  %v874_v61 = vld [vmem:[#allocation2 + $0x112] sm:$0xff]  ;;  %v876_v4 = vld [vmem:[#allocation2 + $0x12a] sm:$0xff]  ;;  %v878_v22 = vld [vmem:[#allocation2 + $0x142] sm:$0xff] }
  0x46   : > { %3766 = vmatprep.mubr.msk.bf16.mxu1 %vm216_vm1, %v359_v28  ;;  %v4384_v28 = vpack.c.bf16 %v866_v21, %v865_v20  ;;  %v350_v6 = vld [vmem:[#allocation2 + $0x110] sm:$0xff]  ;;  %v4416_v7 = vpack.c.bf16 %v874_v61, %v873_v58  ;;  %v352_v9 = vld [vmem:[#allocation2 + $0x128] sm:$0xff]  ;;  %v4418_v13 = vpack.c.bf16 %v876_v4, %v875_v62  ;;  %v877_v21 = vld [vmem:[#allocation2 + $0x13a] sm:$0xff]  ;;  %v2127_v4 = vsel %vm474_vm0, %v4327_v46, 0 }
  0x47   : > { %v4420_v15 = vpack.c.bf16 %v350_v6, %v349_v5  ;;  %v4422_v20 = vpack.c.bf16 %v352_v9, %v351_v8  ;;  %v879_v24 = vld [vmem:[#allocation2 + $0x152] sm:$0xff]  ;;  %v880_v25 = vld [vmem:[#allocation2 + $0x15a] sm:$0xff]  ;;  %v4432_v30 = vpack.c.bf16 %v878_v22, %v877_v21  ;;  %v881_v50 = vld [vmem:[#allocation2 + $0x16a] sm:$0xff]  ;;  %v1832_v6 = vsel %vm474_vm0, %v4342_v54, 0 }
  0x48   : > { %v353_v26 = vld [vmem:[#allocation2 + $0x138] sm:$0xff]  ;;  %v354_v29 = vld [vmem:[#allocation2 + $0x140] sm:$0xff]  ;;  %v357_v53 = vld [vmem:[#allocation2 + $0x168] sm:$0xff] }
  0x49   : > { %v882_v33 = vld [vmem:[#allocation2 + $0x172] sm:$0xff]  ;;  %v3492_v5 = vld [vmem:[%s5305_s1 + $0x20] sm:$0xf] }
  0x4a   : > { %v358_v58 = vld [vmem:[#allocation2 + $0x170] sm:$0xff]  ;;  %v4448_v61 = vpack.c.bf16 %v882_v33, %v881_v50 }
  0x4b   : > { %3801 = vmatmul.mubr.msk.bf16.vlgmr.msra.gmra.mxu0 %vm216_vm1, %v4314_v37  ;;  %v4450_v62 = vpack.c.bf16 %v358_v58, %v357_v53  ;;  %v2324_v58 = vld [vmem:[#allocation2 + $0x49] sm:$0xff] }
  0x4c   : > { %3867 = vmatpush3.bf16.msra.mxu0 %v1538_v44  ;;  %3804 = vmatprep.mubr.msk.bf16.mxu0 %vm216_vm1, %v4316_v41  ;;  %v872_v44 = vld [vmem:[#allocation2 + $0xfa] sm:$0xff] }
  0x4d   : > { %3767 = vmatmul.mubr.msk.bf16.vlgmr.msra.gmra.mxu1 %vm216_vm1, %v4318_v42  ;;  %4045 = vmatprep.subr.msk.bf16.mxu0 %vm474_vm0, %v4327_v46  ;;  %v4402_v55 = vpack.c.bf16 %v872_v44, %v871_v40  ;;  %v4434_v40 = vpack.c.bf16 %v880_v25, %v879_v24  ;;  %v4436_v44 = vpack.c.bf16 %v354_v29, %v353_v26  ;;  %v2322_v25 = vld [vmem:[#allocation2 + $0x31] sm:$0xff]  ;;  %v2323_v26 = vld [vmem:[#allocation2 + $0x39] sm:$0xff] }
  0x4e   : > { %3833 = vmatpush3.bf16.msra.mxu1 %v1244_v51  ;;  %3770 = vmatprep.mubr.msk.bf16.mxu1 %vm216_vm1, %v4322_v45  ;;  %v4400_v51 = vpack.c.bf16 %v870_v38, %v869_v36  ;;  %v355_v36 = vld [vmem:[#allocation2 + $0x150] sm:$0xff]  ;;  %v356_v38 = vld [vmem:[#allocation2 + $0x158] sm:$0xff] }
  0x4f   : > { %4044 = vmatprep.subr.msk.bf16.mxu1 %vm474_vm0, %v4342_v54  ;;  %v4438_v49 = vpack.c.bf16 %v356_v38, %v355_v36 }
  0x53   : > { %3805 = vmatmul.mubr.msk.bf16.gmra.mxu0 %vm216_vm1, %v4350_v59 }
  0x54   : > { %3808 = vmatprep.mubr.msk.bf16.mxu0 %vm216_vm1, %v4354_v63 }
  0x55   : > { %3771 = vmatmul.mubr.msk.bf16.gmra.mxu1 %vm216_vm1, %v4356_v1 }
  0x56   : > { %3774 = vmatprep.mubr.msk.bf16.mxu1 %vm216_vm1, %v4358_v3 }
  0x5b   : > { %3809 = vmatmul.mubr.msk.bf16.gmra.mxu0 %vm216_vm1, %v4368_v10 }
  0x5c   : > { %3812 = vmatprep.mubr.msk.bf16.mxu0 %vm216_vm1, %v4370_v17 }
  0x5d   : > { %3775 = vmatmul.mubr.msk.bf16.gmra.mxu1 %vm216_vm1, %v4372_v18 }
  0x5e   : > { %3778 = vmatprep.mubr.msk.bf16.mxu1 %vm216_vm1, %v4374_v19 }
  0x63   : > { %3813 = vmatmul.mubr.msk.bf16.gmra.mxu0 %vm216_vm1, %v4384_v28 }
  0x64   : > { %3816 = vmatprep.mubr.msk.bf16.mxu0 %vm216_vm1, %v4386_v31 }
  0x65   : > { %3779 = vmatmul.mubr.msk.bf16.gmra.mxu1 %vm216_vm1, %v4388_v32 }
  0x66   : > { %3782 = vmatprep.mubr.msk.bf16.mxu1 %vm216_vm1, %v4390_v35 }
  0x6b   : > { %3817 = vmatmul.mubr.msk.bf16.gmra.mxu0 %vm216_vm1, %v4400_v51 }
  0x6c   : > { %3820 = vmatprep.mubr.msk.bf16.mxu0 %vm216_vm1, %v4402_v55 }
  0x6d   : > { %3783 = vmatmul.mubr.msk.bf16.gmra.mxu1 %vm216_vm1, %v4404_v47 }
  0x6e   : > { %3786 = vmatprep.mubr.msk.bf16.mxu1 %vm216_vm1, %v4406_v56 }
  0x73   : > { %3821 = vmatmul.mubr.msk.bf16.gmra.mxu0 %vm216_vm1, %v4416_v7 }
  0x74   : > { %3824 = vmatprep.mubr.msk.bf16.mxu0 %vm216_vm1, %v4418_v13 }
  0x75   : > { %3787 = vmatmul.mubr.msk.bf16.gmra.mxu1 %vm216_vm1, %v4420_v15 }
  0x76   : > { %3790 = vmatprep.mubr.msk.bf16.mxu1 %vm216_vm1, %v4422_v20 }
  0x7b   : > { %3825 = vmatmul.mubr.msk.bf16.gmra.mxu0 %vm216_vm1, %v4432_v30 }
  0x7c   : > { %3828 = vmatprep.mubr.msk.bf16.mxu0 %vm216_vm1, %v4434_v40 }
  0x7d   : > { %3791 = vmatmul.mubr.msk.bf16.gmra.mxu1 %vm216_vm1, %v4436_v44 }
  0x7e   : > { %3794 = vmatprep.mubr.msk.bf16.mxu1 %vm216_vm1, %v4438_v49 }
  0x83   : > { %3829 = vmatmul.mubr.msk.bf16.gmra.mxu0 %vm216_vm1, %v4448_v61 }
  0x84   : > { %3868 = vmatprep.mubr.msk.bf16.mxu0 %vm216_vm1, %v4224_v34  ;;  %v3475_v34 = vld [vmem:[%s5305_s1 + $0x1c] sm:$0xf] }
  0x85   : > { %3795 = vmatmul.mubr.msk.bf16.gmra.mxu1 %vm216_vm1, %v4450_v62 }
  0x86   : > { %3834 = vmatprep.mubr.msk.bf16.mxu1 %vm216_vm1, %v4318_v42 }
  0x8b   : > { %3869 = vmatmul.mubr.msk.bf16.vlgmr.msra.gmra.mxu0 %vm216_vm1, %v4246_v48  ;;  %v1175_v48 = vld [vmem:[#allocation2 + $0x180] sm:$0xff] }
  0x8c   : > { %3935 = vmatpush3.bf16.msra.mxu0 %v2127_v4  ;;  %3872 = vmatprep.mubr.msk.bf16.mxu0 %vm216_vm1, %v4256_v57 }
  0x8d   : > { %3835 = vmatmul.mubr.msk.bf16.vlgmr.msra.gmra.mxu1 %vm216_vm1, %v4322_v45  ;;  %4047 = vmatprep.subr.msk.bf16.mxu0 %vm474_vm0, %v3492_v5 }
  0x8e   : > { %3901 = vmatpush3.bf16.msra.mxu1 %v1832_v6  ;;  %3838 = vmatprep.mubr.msk.bf16.mxu1 %vm216_vm1, %v4356_v1  ;;  %v2326_v6 = vld [vmem:[#allocation2 + $0x61] sm:$0xff] }
  0x8f   : > { %4046 = vmatprep.subr.msk.bf16.mxu1 %vm474_vm0, %v3475_v34 }
  0x93   : > { %3873 = vmatmul.mubr.msk.bf16.gmra.mxu0 %vm216_vm1, %v4262_v60 }
  0x94   : > { %3876 = vmatprep.mubr.msk.bf16.mxu0 %vm216_vm1, %v4288_v11 }
  0x95   : > { %3839 = vmatmul.mubr.msk.bf16.gmra.mxu1 %vm216_vm1, %v4358_v3 }
  0x96   : > { %3842 = vmatprep.mubr.msk.bf16.mxu1 %vm216_vm1, %v4372_v18 }
  0x9b   : > { %3877 = vmatmul.mubr.msk.bf16.gmra.mxu0 %vm216_vm1, %v4290_v12 }
  0x9c   : > { %3880 = vmatprep.mubr.msk.bf16.mxu0 %vm216_vm1, %v4304_v23 }
  0x9d   : > { %3843 = vmatmul.mubr.msk.bf16.gmra.mxu1 %vm216_vm1, %v4374_v19 }
  0x9e   : > { %3846 = vmatprep.mubr.msk.bf16.mxu1 %vm216_vm1, %v4388_v32 }
  0xa3   : > { %3881 = vmatmul.mubr.msk.bf16.gmra.mxu0 %vm216_vm1, %v4229_v39  ;;  %v1469_v39 = vld [vmem:[#allocation2 + $0x181] sm:$0xff] }
  0xa4   : > { %3884 = vmatprep.mubr.msk.bf16.mxu0 %vm216_vm1, %v4235_v43  ;;  %v1470_v43 = vld [vmem:[#allocation2 + $0x189] sm:$0xff] }
  0xa5   : > { %3847 = vmatmul.mubr.msk.bf16.gmra.mxu1 %vm216_vm1, %v4390_v35  ;;  %v4528_v57 = vpack.c.bf16 %v1470_v43, %v1469_v39 }
  0xa6   : > { %3850 = vmatprep.mubr.msk.bf16.mxu1 %vm216_vm1, %v4404_v47 }
  0xab   : > { %3885 = vmatmul.mubr.msk.bf16.gmra.mxu0 %vm216_vm1, %v4250_v52  ;;  %v1176_v52 = vld [vmem:[#allocation2 + $0x188] sm:$0xff] }
  0xac   : > { %3888 = vmatprep.mubr.msk.bf16.mxu0 %vm216_vm1, %v4267_v0  ;;  %v1192_v60 = vpack.c.bf16 %v1176_v52, %v1175_v48  ;;  %v2715_v0 = vsel %vm474_vm0, %v3492_v5, 0 }
  0xad   : > { %3851 = vmatmul.mubr.msk.bf16.gmra.mxu1 %vm216_vm1, %v4406_v56 }
  0xae   : > { %3854 = vmatprep.mubr.msk.bf16.mxu1 %vm216_vm1, %v4420_v15 }
  0xb3   : > { %3889 = vmatmul.mubr.msk.bf16.gmra.mxu0 %vm216_vm1, %v4273_v2  ;;  %v2421_v2 = vsel %vm474_vm0, %v3475_v34, 0  ;;  %v2327_v34 = vld [vmem:[#allocation2 + $0x69] sm:$0xff] }
  0xb4   : > { %3892 = vmatprep.mubr.msk.bf16.mxu0 %vm216_vm1, %v4292_v14  ;;  %v2356_v48 = vpack.c.bf16 %v2327_v34, %v2326_v6 }
  0xb5   : > { %3855 = vmatmul.mubr.msk.bf16.gmra.mxu1 %vm216_vm1, %v4422_v20 }
  0xb6   : > { %3858 = vmatprep.mubr.msk.bf16.mxu1 %vm216_vm1, %v4436_v44 }
  0xbb   : > { %3893 = vmatmul.mubr.msk.bf16.gmra.mxu0 %vm216_vm1, %v4294_v16 }
  0xbc   : > { %3896 = vmatprep.mubr.msk.bf16.mxu0 %vm216_vm1, %v4306_v27 }
  0xbd   : > { %3859 = vmatmul.mubr.msk.bf16.gmra.mxu1 %vm216_vm1, %v4438_v49 }
  0xbe   : > { %3862 = vmatprep.mubr.msk.bf16.mxu1 %vm216_vm1, %v4450_v62 }
  0xc3   : > { %3897 = vmatmul.mubr.msk.bf16.gmra.mxu0 %vm216_vm1, %v4528_v57 }
  0xc4   : > { %3936 = vmatprep.mubr.msk.bf16.mxu0 %vm216_vm1, %v4322_v45 }
  0xc5   : > { %3863 = vmatmul.mubr.msk.bf16.gmra.mxu1 %vm216_vm1, %v1192_v60 }
  0xc6   : > { %3902 = vmatprep.mubr.msk.bf16.mxu1 %vm216_vm1, %v4314_v37 }
  0xcb   : > { %3937 = vmatmul.mubr.msk.bf16.vlgmr.msra.gmra.mxu0 %vm216_vm1, %v4356_v1 }
  0xcc   : > { %4003 = vmatpush3.bf16.msra.mxu0 %v2715_v0  ;;  %3940 = vmatprep.mubr.msk.bf16.mxu0 %vm216_vm1, %v4358_v3 }
  0xcd   : > { %3903 = vmatmul.mubr.msk.bf16.vlgmr.msra.gmra.mxu1 %vm216_vm1, %v4316_v41 }
  0xce   : > { %3969 = vmatpush3.bf16.msra.mxu1 %v2421_v2  ;;  %3906 = vmatprep.mubr.msk.bf16.mxu1 %vm216_vm1, %v4350_v59 }
  0xd3   : > { %3941 = vmatmul.mubr.msk.bf16.gmra.mxu0 %vm216_vm1, %v4372_v18 }
  0xd4   : > { %3944 = vmatprep.mubr.msk.bf16.mxu0 %vm216_vm1, %v4374_v19 }
  0xd5   : > { %3907 = vmatmul.mubr.msk.bf16.gmra.mxu1 %vm216_vm1, %v4354_v63 }
  0xd6   : > { %3910 = vmatprep.mubr.msk.bf16.mxu1 %vm216_vm1, %v4368_v10 }
  0xdb   : > { %3945 = vmatmul.mubr.msk.bf16.gmra.mxu0 %vm216_vm1, %v4388_v32 }
  0xdc   : > { %3948 = vmatprep.mubr.msk.bf16.mxu0 %vm216_vm1, %v4390_v35 }
  0xdd   : > { %3911 = vmatmul.mubr.msk.bf16.gmra.mxu1 %vm216_vm1, %v4370_v17 }
  0xde   : > { %3914 = vmatprep.mubr.msk.bf16.mxu1 %vm216_vm1, %v4384_v28 }
  0xe3   : > { %3949 = vmatmul.mubr.msk.bf16.gmra.mxu0 %vm216_vm1, %v4404_v47  ;;  %v2058_v47 = vld [vmem:[#allocation2 + $0x198] sm:$0xff] }
  0xe4   : > { %3952 = vmatprep.mubr.msk.bf16.mxu0 %vm216_vm1, %v4406_v56  ;;  %v2059_v56 = vld [vmem:[#allocation2 + $0x1a0] sm:$0xff] }
  0xe5   : > { %3915 = vmatmul.mubr.msk.bf16.gmra.mxu1 %vm216_vm1, %v4386_v31  ;;  %v2075_v24 = vpack.c.bf16 %v2059_v56, %v2058_v47  ;;  %v2328_v56 = vld [vmem:[#allocation2 + $0x79] sm:$0xff] }
  0xe6   : > { %3918 = vmatprep.mubr.msk.bf16.mxu1 %vm216_vm1, %v4400_v51 }
  0xeb   : > { %v4571_v11 = vpop.f32.mrf.mxu0  ;;  %3953 = vmatmul.mubr.msk.bf16.gmra.mxu0 %vm216_vm1, %v4420_v15  ;;  %v1763_v15 = vld [vmem:[#allocation2 + $0x182] sm:$0xff] }
  0xec   : > { %3956 = vmatprep.mubr.msk.bf16.mxu0 %vm216_vm1, %v4422_v20  ;;  %v1764_v20 = vld [vmem:[#allocation2 + $0x18a] sm:$0xff] }
  0xed   : > { %v4577_v12 = vpop.f32.mrf.mxu1  ;;  %3919 = vmatmul.mubr.msk.bf16.gmra.mxu1 %vm216_vm1, %v4402_v55  ;;  %v4581_v14 = vpop.f32.mrf.mxu0  ;;  %v4640_v38 = vpack.c.bf16 %v1764_v20, %v1763_v15  ;;  %v2329_v15 = vld [vmem:[#allocation2 + $0x81] sm:$0xff] }
  0xee   : > { %3922 = vmatprep.mubr.msk.bf16.mxu1 %vm216_vm1, %v4416_v7 }
  0xef   : > { %v4585_v16 = vpop.f32.mrf.mxu1  ;;  %v4587_v23 = vpop.f32.mrf.mxu0 }
  0xf1   : > { %v4589_v27 = vpop.f32.mrf.mxu1  ;;  %v4591_v37 = vpop.f32.mrf.mxu0 }
  0xf3   : > { %v4593_v42 = vpop.f32.mrf.mxu1  ;;  %v4595_v45 = vpop.f32.mrf.mxu0  ;;  %3957 = vmatmul.mubr.msk.bf16.gmra.mxu0 %vm216_vm1, %v4436_v44  ;;  %v2354_v44 = vpack.c.bf16 %v2323_v26, %v2322_v25  ;;  %v2330_v25 = vld [vmem:[#allocation2 + $0x91] sm:$0xff]  ;;  %v2331_v26 = vld [vmem:[#allocation2 + $0x99] sm:$0xff] }
  0xf4   : > { %3960 = vmatprep.mubr.msk.bf16.mxu0 %vm216_vm1, %v4438_v49  ;;  %v2358_v34 = vpack.c.bf16 %v2331_v26, %v2330_v25  ;;  %v2335_v25 = vld [vmem:[#allocation2 + $0xc9] sm:$0xff] }
  0xf5   : > { %v4601_v46 = vpop.f32.mrf.mxu1  ;;  %3923 = vmatmul.mubr.msk.bf16.gmra.mxu1 %vm216_vm1, %v4418_v13  ;;  %v4605_v54 = vpop.f32.mrf.mxu0 }
  0xf6   : > { %3926 = vmatprep.mubr.msk.bf16.mxu1 %vm216_vm1, %v4432_v30 }
  0xf7   : > { %v4609_v1 = vpop.f32.mrf.mxu1  ;;  %v4611_v3 = vpop.f32.mrf.mxu0 }
  0xf9   : > { %v4613_v18 = vpop.f32.mrf.mxu1  ;;  %v4615_v19 = vpop.f32.mrf.mxu0 }
  0xfb   : > { %v4617_v32 = vpop.f32.mrf.mxu1  ;;  %v4619_v35 = vpop.f32.mrf.mxu0  ;;  %3961 = vmatmul.mubr.msk.bf16.gmra.mxu0 %vm216_vm1, %v4450_v62  ;;  %v2325_v62 = vld [vmem:[#allocation2 + $0x51] sm:$0xff] }
  0xfc   : > { %3964 = vmatprep.mubr.msk.bf16.mxu0 %vm216_vm1, %v1192_v60  ;;  %v2355_v43 = vpack.c.bf16 %v2325_v62, %v2324_v58  ;;  %v2357_v62 = vpack.c.bf16 %v2329_v15, %v2328_v56  ;;  %v2333_v56 = vld [vmem:[#allocation2 + $0xb1] sm:$0xff] }
  0xfd   : > { %v4624_v8 = vpop.f32.mrf.mxu1  ;;  %3927 = vmatmul.mubr.msk.bf16.gmra.mxu1 %vm216_vm1, %v4434_v40  ;;  %v4628_v9 = vpop.f32.mrf.mxu0 }
  0xfe   : > { %3930 = vmatprep.mubr.msk.bf16.mxu1 %vm216_vm1, %v4448_v61 }
  0xff   : > { %v4632_v21 = vpop.f32.mrf.mxu1  ;;  %v4634_v22 = vpop.f32.mrf.mxu0 }
 0x101   : > { %v4636_v29 = vpop.f32.mrf.mxu1  ;;  %v4638_v36 = vpop.f32.mrf.mxu0 }
 0x103   : > { %v4642_v49 = vpop.f32.mrf.mxu1  ;;  %v4644_v50 = vpop.f32.mrf.mxu0  ;;  %3965 = vmatmul.mubr.msk.bf16.gmra.mxu0 %vm216_vm1, %v2075_v24 }
 0x104   : > { %4004 = vmatprep.mubr.msk.bf16.mxu0 %vm216_vm1, %v4316_v41 }
 0x105   : > { %v4649_v33 = vpop.f32.mrf.mxu1  ;;  %3931 = vmatmul.mubr.msk.bf16.gmra.mxu1 %vm216_vm1, %v4640_v38  ;;  %v4653_v53 = vpop.f32.mrf.mxu0 }
 0x106   : > { %3970 = vmatprep.mubr.msk.bf16.mxu1 %vm216_vm1, %v2354_v44 }
 0x107   : > { %v4656_v4 = vpop.f32.mrf.mxu1  ;;  %v4658_v5 = vpop.f32.mrf.mxu0 }
 0x109   : > { %v4660_v39 = vpop.f32.mrf.mxu1  ;;  %v4662_v41 = vpop.f32.mrf.mxu0 }
 0x10b   : > { %v4664_v52 = vpop.f32.mrf.mxu1  ;;  %v3802_v60 = vpop.f32.mrf.mxu0  ;;  %4005 = vmatmul.mubr.msk.bf16.vlgmr.msra.gmra.mxu0 %vm216_vm1, %v4350_v59 }
 0x10c   : > { %4008 = vmatprep.mubr.msk.bf16.mxu0 %vm216_vm1, %v4354_v63 }
 0x10d   : > { %v3768_v0 = vpop.f32.mrf.mxu1  ;;  %3971 = vmatmul.mubr.msk.bf16.vlgmr.msra.gmra.mxu1 %vm216_vm1, %v2355_v43  ;;  %v986_v2 = vpop.f32.mrf.mxu0 }
 0x10e   : > { %v733_v47 = vadd.f32 %v3768_v0, %v4571_v11  ;;  %3974 = vmatprep.mubr.msk.bf16.mxu1 %vm216_vm1, %v2356_v48 }
 0x10f   : > { %v724_v20 = vpop.f32.mrf.mxu1  ;;  %v3803_v24 = vpop.f32.mrf.mxu0 }
 0x110   : > { %v725_v44 = vadd.f32 %v724_v20, %v4581_v14  ;;  %v4674_v59 = vadd.f32 %v3802_v60, %v733_v47 }
 0x111   : > { %v3769_v58 = vpop.f32.mrf.mxu1  ;;  %v989_v63 = vpop.f32.mrf.mxu0 }
 0x112   : > { %v736_v6 = vadd.f32 %v3769_v58, %v4587_v23  ;;  %v4677_v43 = vadd.f32 %v986_v2, %v725_v44  ;;  %v2332_v2 = vld [vmem:[#allocation2 + $0xa9] sm:$0xff] }
 0x113   : > { %v727_v11 = vpop.f32.mrf.mxu1  ;;  %v3806_v48 = vpop.f32.mrf.mxu0  ;;  %4009 = vmatmul.mubr.msk.bf16.gmra.mxu0 %vm216_vm1, %v4368_v10  ;;  %v2359_v58 = vpack.c.bf16 %v2333_v56, %v2332_v2  ;;  %v2339_v56 = vld [vmem:[#allocation2 + $0xf9] sm:$0xff] }
 0x114   : > { %v728_v0 = vadd.f32 %v727_v11, %v4591_v37  ;;  %4012 = vmatprep.mubr.msk.bf16.mxu0 %vm216_vm1, %v4370_v17  ;;  %v4684_v14 = vadd.f32 %v3803_v24, %v736_v6  ;;  %v2334_v37 = vld [vmem:[#allocation2 + $0xc1] sm:$0xff] }
 0x115   : > { %v3772_v60 = vpop.f32.mrf.mxu1  ;;  %3975 = vmatmul.mubr.msk.bf16.gmra.mxu1 %vm216_vm1, %v2357_v62  ;;  %v1002_v47 = vpop.f32.mrf.mxu0 }
 0x116   : > { %v749_v23 = vadd.f32 %v3772_v60, %v4595_v45  ;;  %3978 = vmatprep.mubr.msk.bf16.mxu1 %vm216_vm1, %v2358_v34  ;;  %v4689_v15 = vadd.f32 %v989_v63, %v728_v0  ;;  %v2360_v45 = vpack.c.bf16 %v2335_v25, %v2334_v37  ;;  %v2336_v60 = vld [vmem:[#allocation2 + $0xd9] sm:$0xff] }
 0x117   : > { %v740_v10 = vpop.f32.mrf.mxu1  ;;  %v3807_v20 = vpop.f32.mrf.mxu0 }
 0x118   : > { %v741_v17 = vadd.f32 %v740_v10, %v4605_v54  ;;  %v4692_v24 = vadd.f32 %v3806_v48, %v749_v23 }
 0x119   : > { %v3773_v26 = vpop.f32.mrf.mxu1  ;;  %v1005_v44 = vpop.f32.mrf.mxu0 }
 0x11a   : > { %v752_v62 = vadd.f32 %v3773_v26, %v4611_v3  ;;  %v4695_v6 = vadd.f32 %v1002_v47, %v741_v17  ;;  %v2337_v47 = vld [vmem:[#allocation2 + $0xe1] sm:$0xff] }
 0x11b   : > { %v743_v34 = vpop.f32.mrf.mxu1  ;;  %v3810_v11 = vpop.f32.mrf.mxu0  ;;  %4013 = vmatmul.mubr.msk.bf16.gmra.mxu0 %vm216_vm1, %v4384_v28  ;;  %v2361_v25 = vpack.c.bf16 %v2337_v47, %v2336_v60 }
 0x11c   : > { %v744_v63 = vadd.f32 %v743_v34, %v4615_v19  ;;  %4016 = vmatprep.mubr.msk.bf16.mxu0 %vm216_vm1, %v4386_v31  ;;  %v4702_v54 = vadd.f32 %v3807_v20, %v752_v62  ;;  %v2338_v19 = vld [vmem:[#allocation2 + $0xf1] sm:$0xff] }
 0x11d   : > { %v3776_v48 = vpop.f32.mrf.mxu1  ;;  %3979 = vmatmul.mubr.msk.bf16.gmra.mxu1 %vm216_vm1, %v2359_v58  ;;  %v1018_v0 = vpop.f32.mrf.mxu0 }
 0x11e   : > { %v765_v3 = vadd.f32 %v3776_v48, %v4619_v35  ;;  %3982 = vmatprep.mubr.msk.bf16.mxu1 %vm216_vm1, %v2360_v45  ;;  %v4707_v23 = vadd.f32 %v1005_v44, %v744_v63  ;;  %v2362_v35 = vpack.c.bf16 %v2339_v56, %v2338_v19  ;;  %v2341_v63 = vld [vmem:[#allocation2 + $0x111] sm:$0xff] }
 0x11f   : > { %v756_v28 = vpop.f32.mrf.mxu1  ;;  %v3811_v2 = vpop.f32.mrf.mxu0 }
 0x120   : > { %v757_v31 = vadd.f32 %v756_v28, %v4628_v9  ;;  %v4710_v10 = vadd.f32 %v3810_v11, %v765_v3  ;;  %v2340_v11 = vld [vmem:[#allocation2 + $0x109] sm:$0xff] }
 0x121   : > { %v3777_v20 = vpop.f32.mrf.mxu1  ;;  %v1021_v37 = vpop.f32.mrf.mxu0  ;;  %v2343_v3 = vld [vmem:[#allocation2 + $0x129] sm:$0xff] }
 0x122   : > { %v768_v17 = vadd.f32 %v3777_v20, %v4634_v22  ;;  %v4713_v26 = vadd.f32 %v1018_v0, %v757_v31 }
 0x123   : > { %v759_v58 = vpop.f32.mrf.mxu1  ;;  %v3814_v62 = vpop.f32.mrf.mxu0  ;;  %4017 = vmatmul.mubr.msk.bf16.gmra.mxu0 %vm216_vm1, %v4400_v51 }
 0x124   : > { %v760_v44 = vadd.f32 %v759_v58, %v4638_v36  ;;  %4020 = vmatprep.mubr.msk.bf16.mxu0 %vm216_vm1, %v4402_v55  ;;  %v4720_v9 = vadd.f32 %v3811_v2, %v768_v17  ;;  %v2342_v36 = vld [vmem:[#allocation2 + $0x121] sm:$0xff]  ;;  %v2363_v2 = vpack.c.bf16 %v2341_v63, %v2340_v11 }
 0x125   : > { %v3780_v45 = vpop.f32.mrf.mxu1  ;;  %3983 = vmatmul.mubr.msk.bf16.gmra.mxu1 %vm216_vm1, %v2361_v25  ;;  %v1034_v34 = vpop.f32.mrf.mxu0  ;;  %v2345_v58 = vld [vmem:[#allocation2 + $0x141] sm:$0xff] }
 0x126   : > { %v781_v22 = vadd.f32 %v3780_v45, %v4644_v50  ;;  %3986 = vmatprep.mubr.msk.bf16.mxu1 %vm216_vm1, %v2362_v35  ;;  %v4725_v48 = vadd.f32 %v1021_v37, %v760_v44  ;;  %v2364_v50 = vpack.c.bf16 %v2343_v3, %v2342_v36  ;;  %v2344_v35 = vld [vmem:[#allocation2 + $0x139] sm:$0xff] }
 0x127   : > { %v772_v51 = vpop.f32.mrf.mxu1  ;;  %v3815_v0 = vpop.f32.mrf.mxu0  ;;  %v2347_v45 = vld [vmem:[#allocation2 + $0x159] sm:$0xff]  ;;  %v2365_v63 = vpack.c.bf16 %v2345_v58, %v2344_v35 }
 0x128   : > { %v773_v55 = vadd.f32 %v772_v51, %v4653_v53  ;;  %v4728_v60 = vadd.f32 %v3814_v62, %v781_v22 }
 0x129   : > { %v3781_v47 = vpop.f32.mrf.mxu1  ;;  %v1037_v28 = vpop.f32.mrf.mxu0 }
 0x12a   : > { %v784_v19 = vadd.f32 %v3781_v47, %v4658_v5  ;;  %v4731_v56 = vadd.f32 %v1034_v34, %v773_v55 }
 0x12b   : > { %v775_v31 = vpop.f32.mrf.mxu1  ;;  %v3818_v20 = vpop.f32.mrf.mxu0  ;;  %4021 = vmatmul.mubr.msk.bf16.gmra.mxu0 %vm216_vm1, %v4416_v7 }
 0x12c   : > { %v776_v37 = vadd.f32 %v775_v31, %v4662_v41  ;;  %4024 = vmatprep.mubr.msk.bf16.mxu0 %vm216_vm1, %v4418_v13  ;;  %v4738_v53 = vadd.f32 %v3815_v0, %v784_v19  ;;  %v2346_v41 = vld [vmem:[#allocation2 + $0x151] sm:$0xff] }
 0x12d   : > { %v3784_v25 = vpop.f32.mrf.mxu1  ;;  %3987 = vmatmul.mubr.msk.bf16.gmra.mxu1 %vm216_vm1, %v2363_v2  ;;  %v1050_v17 = vpop.f32.mrf.mxu0  ;;  %v2348_v2 = vld [vmem:[#allocation2 + $0x169] sm:$0xff]  ;;  %v2349_v19 = vld [vmem:[#allocation2 + $0x171] sm:$0xff] }
 0x12e   : > { %v797_v5 = vadd.f32 %v3784_v25, %v4577_v12  ;;  %3990 = vmatprep.mubr.msk.bf16.mxu1 %vm216_vm1, %v2364_v50  ;;  %v4743_v62 = vadd.f32 %v1037_v28, %v776_v37  ;;  %v2366_v12 = vpack.c.bf16 %v2347_v45, %v2346_v41  ;;  %v2367_v25 = vpack.c.bf16 %v2349_v19, %v2348_v2 }
 0x12f   : > { %v788_v7 = vpop.f32.mrf.mxu1  ;;  %v3819_v44 = vpop.f32.mrf.mxu0 }
 0x130   : > { %v789_v13 = vadd.f32 %v788_v7, %v4585_v16  ;;  %v4746_v34 = vadd.f32 %v3818_v20, %v797_v5  ;;  %v2647_v7 = vld [vmem:[#allocation2 + $0x1a2] sm:$0xff] }
 0x131   : > { %v3785_v22 = vpop.f32.mrf.mxu1  ;;  %v1053_v11 = vpop.f32.mrf.mxu0 }
 0x132   : > { %v800_v51 = vadd.f32 %v3785_v22, %v4589_v27  ;;  %v4749_v0 = vadd.f32 %v1050_v17, %v789_v13  ;;  %v2352_v13 = vld [vmem:[#allocation2 + $0x199] sm:$0xff] }
 0x133   : > { %v791_v36 = vpop.f32.mrf.mxu1  ;;  %v3822_v3 = vpop.f32.mrf.mxu0  ;;  %4025 = vmatmul.mubr.msk.bf16.gmra.mxu0 %vm216_vm1, %v4432_v30 }
 0x134   : > { %v792_v55 = vadd.f32 %v791_v36, %v4593_v42  ;;  %4028 = vmatprep.mubr.msk.bf16.mxu0 %vm216_vm1, %v4434_v40  ;;  %v4756_v16 = vadd.f32 %v3819_v44, %v800_v51 }
 0x135   : > { %v3788_v47 = vpop.f32.mrf.mxu1  ;;  %3991 = vmatmul.mubr.msk.bf16.gmra.mxu1 %vm216_vm1, %v2365_v63  ;;  %v1066_v28 = vpop.f32.mrf.mxu0 }
 0x136   : > { %v813_v27 = vadd.f32 %v3788_v47, %v4601_v46  ;;  %3994 = vmatprep.mubr.msk.bf16.mxu1 %vm216_vm1, %v2366_v12  ;;  %v4761_v50 = vadd.f32 %v1053_v11, %v792_v55 }
 0x137   : > { %v804_v30 = vpop.f32.mrf.mxu1  ;;  %v3823_v31 = vpop.f32.mrf.mxu0 }
 0x138   : > { %v805_v42 = vadd.f32 %v804_v30, %v4609_v1  ;;  %v4764_v20 = vadd.f32 %v3822_v3, %v813_v27  ;;  %v2646_v1 = vld [vmem:[#allocation2 + $0x19a] sm:$0xff] }
 0x139   : > { %v3789_v40 = vpop.f32.mrf.mxu1  ;;  %v1069_v37 = vpop.f32.mrf.mxu0 }
 0x13a   : > { %v816_v17 = vadd.f32 %v3789_v40, %v4613_v18  ;;  %v4767_v5 = vadd.f32 %v1066_v28, %v805_v42 }
 0x13b   : > { %v807_v46 = vpop.f32.mrf.mxu1  ;;  %v3826_v35 = vpop.f32.mrf.mxu0  ;;  %4029 = vmatmul.mubr.msk.bf16.gmra.mxu0 %vm216_vm1, %v4448_v61  ;;  %v2353_v61 = vld [vmem:[#allocation2 + $0x1a1] sm:$0xff] }
 0x13c   : > { %v808_v58 = vadd.f32 %v807_v46, %v4617_v32  ;;  %4032 = vmatprep.mubr.msk.bf16.mxu0 %vm216_vm1, %v4640_v38  ;;  %v4774_v44 = vadd.f32 %v3823_v31, %v816_v17  ;;  %v2663_v38 = vpack.c.bf16 %v2647_v7, %v2646_v1  ;;  %v2369_v3 = vpack.c.bf16 %v2353_v61, %v2352_v13 }
 0x13d   : > { %v3792_v41 = vpop.f32.mrf.mxu1  ;;  %3995 = vmatmul.mubr.msk.bf16.gmra.mxu1 %vm216_vm1, %v2367_v25  ;;  %v1082_v18 = vpop.f32.mrf.mxu0 }
 0x13e   : > { %v829_v45 = vadd.f32 %v3792_v41, %v4624_v8  ;;  %3998 = vmatprep.mubr.msk.bf16.mxu1 %vm216_vm1, %v4528_v57  ;;  %v4780_v22 = vadd.f32 %v1069_v37, %v808_v58 }
 0x13f   : > { %v820_v32 = vpop.f32.mrf.mxu1  ;;  %v3827_v11 = vpop.f32.mrf.mxu0 }
 0x140   : > { %v821_v63 = vadd.f32 %v820_v32, %v4632_v21  ;;  %v4783_v51 = vadd.f32 %v3826_v35, %v829_v45 }
 0x141   : > { %v3793_v12 = vpop.f32.mrf.mxu1  ;;  %v1085_v36 = vpop.f32.mrf.mxu0 }
 0x142   : > { %v832_v55 = vadd.f32 %v3793_v12, %v4636_v29  ;;  %v4786_v8 = vadd.f32 %v1082_v18, %v821_v63 }
 0x143   : > { %v823_v47 = vpop.f32.mrf.mxu1  ;;  %v3830_v57 = vpop.f32.mrf.mxu0  ;;  %4033 = vmatmul.mubr.msk.bf16.gmra.mxu0 %vm216_vm1, %v2663_v38 }
 0x144   : > { %v824_v28 = vadd.f32 %v823_v47, %v4642_v49  ;;  %v4790_v27 = vadd.f32 %v3827_v11, %v832_v55 }
 0x145   : > { %v3796_v2 = vpop.f32.mrf.mxu1  ;;  %3999 = vmatmul.mubr.msk.bf16.gmra.mxu1 %vm216_vm1, %v2369_v3  ;;  %v1098_v21 = vpop.f32.mrf.mxu0 }
 0x146   : > { %v845_v19 = vadd.f32 %v3796_v2, %v4649_v33  ;;  %v4794_v30 = vadd.f32 %v1085_v36, %v824_v28 }
 0x147   : > { %v836_v31 = vpop.f32.mrf.mxu1  ;;  %v3831_v29 = vpop.f32.mrf.mxu0 }
 0x148   : > { %v837_v42 = vadd.f32 %v836_v31, %v4656_v4  ;;  %v4797_v40 = vadd.f32 %v3830_v57, %v845_v19 }
 0x149   : > { %v3797_v37 = vpop.f32.mrf.mxu1  ;;  %v1101_v25 = vpop.f32.mrf.mxu0 }
 0x14a   : > { %v848_v49 = vadd.f32 %v3797_v37, %v4660_v39  ;;  %v4800_v17 = vadd.f32 %v1098_v21, %v837_v42 }
 0x14b   : > { %v839_v46 = vpop.f32.mrf.mxu1  ;;  %v3870_v35 = vpop.f32.mrf.mxu0 }
 0x14c   : > { %v840_v58 = vadd.f32 %v839_v46, %v4664_v52  ;;  %v4803_v1 = vadd.f32 %v3831_v29, %v848_v49 }
 0x14d   : > { %v3836_v33 = vpop.f32.mrf.mxu1  ;;  %v1574_v7 = vpop.f32.mrf.mxu0 }
 0x14e   : > { %v1409_v41 = vadd.f32 %v3836_v33, %v4674_v59  ;;  %v4806_v18 = vadd.f32 %v1101_v25, %v840_v58 }
 0x14f   : > { %v1280_v4 = vpop.f32.mrf.mxu1  ;;  %v3871_v45 = vpop.f32.mrf.mxu0 }
 0x150   : > { %v1407_v13 = vadd.f32 %v1280_v4, %v4677_v43  ;;  %v4809_v61 = vadd.f32 %v3870_v35, %v1409_v41 }
 0x151   : > { %v3837_v39 = vpop.f32.mrf.mxu1  ;;  %v1577_v32 = vpop.f32.mrf.mxu0 }
 0x152   : > { %v1410_v11 = vadd.f32 %v3837_v39, %v4684_v14  ;;  %v4812_v38 = vadd.f32 %v1574_v7, %v1407_v13 }
 0x153   : > { %v1283_v52 = vpop.f32.mrf.mxu1  ;;  %v3874_v63 = vpop.f32.mrf.mxu0 }
 0x154   : > { %v1408_v12 = vadd.f32 %v1283_v52, %v4689_v15  ;;  %v4815_v36 = vadd.f32 %v3871_v45, %v1410_v11 }
 0x155   : > { %v3840_v59 = vpop.f32.mrf.mxu1  ;;  %v1590_v3 = vpop.f32.mrf.mxu0 }
 0x156   : > { %v1413_v55 = vadd.f32 %v3840_v59, %v4692_v24  ;;  %v4818_v47 = vadd.f32 %v1577_v32, %v1408_v12 }
 0x157   : > { %v1296_v43 = vpop.f32.mrf.mxu1  ;;  %v3875_v57 = vpop.f32.mrf.mxu0 }
 0x158   : > { %v1411_v28 = vadd.f32 %v1296_v43, %v4695_v6  ;;  %v4821_v2 = vadd.f32 %v3874_v63, %v1413_v55 }
 0x159   : > { %v3841_v14 = vpop.f32.mrf.mxu1  ;;  %v1593_v21 = vpop.f32.mrf.mxu0 }
 0x15a   : > { %v1414_v19 = vadd.f32 %v3841_v14, %v4702_v54  ;;  %v4824_v31 = vadd.f32 %v1590_v3, %v1411_v28 }
 0x15b   : > { %v1299_v15 = vpop.f32.mrf.mxu1  ;;  %v3878_v29 = vpop.f32.mrf.mxu0 }
 0x15c   : > { %v1412_v42 = vadd.f32 %v1299_v15, %v4707_v23  ;;  %v4827_v37 = vadd.f32 %v3875_v57, %v1414_v19 }
 0x15d   : > { %v3844_v24 = vpop.f32.mrf.mxu1  ;;  %v1606_v25 = vpop.f32.mrf.mxu0 }
 0x15e   : > { %v1417_v49 = vadd.f32 %v3844_v24, %v4710_v10  ;;  %v4830_v46 = vadd.f32 %v1593_v21, %v1412_v42 }
 0x15f   : > { %v1312_v6 = vpop.f32.mrf.mxu1  ;;  %v3879_v35 = vpop.f32.mrf.mxu0 }
 0x160   : > { %v1415_v58 = vadd.f32 %v1312_v6, %v4713_v26  ;;  %v4833_v33 = vadd.f32 %v3878_v29, %v1417_v49 }
 0x161   : > { %v3845_v54 = vpop.f32.mrf.mxu1  ;;  %v1609_v7 = vpop.f32.mrf.mxu0 }
 0x162   : > { %v1418_v41 = vadd.f32 %v3845_v54, %v4720_v9  ;;  %v4836_v4 = vadd.f32 %v1606_v25, %v1415_v58 }
 0x163   : > { %v1315_v23 = vpop.f32.mrf.mxu1  ;;  %v3882_v45 = vpop.f32.mrf.mxu0 }
 0x164   : > { %v1416_v13 = vadd.f32 %v1315_v23, %v4725_v48  ;;  %v4839_v39 = vadd.f32 %v3879_v35, %v1418_v41 }
 0x165   : > { %v3848_v10 = vpop.f32.mrf.mxu1  ;;  %v1622_v32 = vpop.f32.mrf.mxu0 }
 0x166   : > { %v1421_v11 = vadd.f32 %v3848_v10, %v4728_v60  ;;  %v4842_v52 = vadd.f32 %v1609_v7, %v1416_v13 }
 0x167   : > { %v1328_v26 = vpop.f32.mrf.mxu1  ;;  %v3883_v63 = vpop.f32.mrf.mxu0 }
 0x168   : > { %v1419_v12 = vadd.f32 %v1328_v26, %v4731_v56  ;;  %v4845_v59 = vadd.f32 %v3882_v45, %v1421_v11 }
 0x169   : > { %v3849_v9 = vpop.f32.mrf.mxu1  ;;  %v1625_v3 = vpop.f32.mrf.mxu0 }
 0x16a   : > { %v1422_v55 = vadd.f32 %v3849_v9, %v4738_v53  ;;  %v4848_v43 = vadd.f32 %v1622_v32, %v1419_v12 }
 0x16b   : > { %v1331_v48 = vpop.f32.mrf.mxu1  ;;  %v3886_v57 = vpop.f32.mrf.mxu0 }
 0x16c   : > { %v1420_v28 = vadd.f32 %v1331_v48, %v4743_v62  ;;  %v4851_v14 = vadd.f32 %v3883_v63, %v1422_v55 }
 0x16d   : > { %v3852_v60 = vpop.f32.mrf.mxu1  ;;  %v1638_v21 = vpop.f32.mrf.mxu0 }
 0x16e   : > { %v1425_v19 = vadd.f32 %v3852_v60, %v4746_v34  ;;  %v4854_v15 = vadd.f32 %v1625_v3, %v1420_v28 }
 0x16f   : > { %v1344_v56 = vpop.f32.mrf.mxu1  ;;  %v3887_v29 = vpop.f32.mrf.mxu0 }
 0x170   : > { %v1423_v42 = vadd.f32 %v1344_v56, %v4749_v0  ;;  %v4857_v24 = vadd.f32 %v3886_v57, %v1425_v19 }
 0x171   : > { %v3853_v53 = vpop.f32.mrf.mxu1  ;;  %v1641_v25 = vpop.f32.mrf.mxu0 }
 0x172   : > { %v1426_v49 = vadd.f32 %v3853_v53, %v4756_v16  ;;  %v4860_v6 = vadd.f32 %v1638_v21, %v1423_v42 }
 0x173   : > { %v1347_v62 = vpop.f32.mrf.mxu1  ;;  %v3890_v35 = vpop.f32.mrf.mxu0 }
 0x174   : > { %v1424_v58 = vadd.f32 %v1347_v62, %v4761_v50  ;;  %v4863_v54 = vadd.f32 %v3887_v29, %v1426_v49 }
 0x175   : > { %v3856_v34 = vpop.f32.mrf.mxu1  ;;  %v1654_v7 = vpop.f32.mrf.mxu0 }
 0x176   : > { %v1429_v41 = vadd.f32 %v3856_v34, %v4764_v20  ;;  %v4866_v23 = vadd.f32 %v1641_v25, %v1424_v58 }
 0x177   : > { %v1360_v0 = vpop.f32.mrf.mxu1  ;;  %v3891_v45 = vpop.f32.mrf.mxu0 }
 0x178   : > { %5310 = vst [vmem:[#allocation3_spill] sm:$0xff] %v4866_v23  ;;  %v1427_v13 = vadd.f32 %v1360_v0, %v4767_v5  ;;  %v4869_v10 = vadd.f32 %v3890_v35, %v1429_v41 }
 0x179   : > { %v3857_v16 = vpop.f32.mrf.mxu1  ;;  %v1657_v32 = vpop.f32.mrf.mxu0 }
 0x17a   : > { %5311 = vst [vmem:[#allocation4_spill] sm:$0xff] %v4869_v10  ;;  %v1430_v11 = vadd.f32 %v3857_v16, %v4774_v44  ;;  %v4872_v26 = vadd.f32 %v1654_v7, %v1427_v13 }
 0x17b   : > { %v1363_v50 = vpop.f32.mrf.mxu1  ;;  %v3894_v63 = vpop.f32.mrf.mxu0 }
 0x17c   : > { %5312 = vst [vmem:[#allocation5_spill] sm:$0xff] %v4872_v26  ;;  %v1428_v12 = vadd.f32 %v1363_v50, %v4780_v22  ;;  %v4875_v9 = vadd.f32 %v3891_v45, %v1430_v11 }
 0x17d   : > { %v3860_v20 = vpop.f32.mrf.mxu1  ;;  %v1670_v3 = vpop.f32.mrf.mxu0 }
 0x17e   : > { %5313 = vst [vmem:[#allocation6_spill] sm:$0xff] %v4875_v9  ;;  %v1433_v55 = vadd.f32 %v3860_v20, %v4783_v51  ;;  %v4878_v48 = vadd.f32 %v1657_v32, %v1428_v12 }
 0x17f   : > { %v1376_v5 = vpop.f32.mrf.mxu1  ;;  %v3895_v57 = vpop.f32.mrf.mxu0 }
 0x180   : > { %5314 = vst [vmem:[#allocation7_spill] sm:$0xff] %v4878_v48  ;;  %v1431_v28 = vadd.f32 %v1376_v5, %v4786_v8  ;;  %v4881_v60 = vadd.f32 %v3894_v63, %v1433_v55 }
 0x181   : > { %v3861_v44 = vpop.f32.mrf.mxu1  ;;  %v1673_v21 = vpop.f32.mrf.mxu0 }
 0x182   : > { %5315 = vst [vmem:[#allocation8_spill] sm:$0xff] %v4881_v60  ;;  %v1434_v19 = vadd.f32 %v3861_v44, %v4790_v27  ;;  %v4884_v56 = vadd.f32 %v1670_v3, %v1431_v28 }
 0x183   : > { %v1379_v22 = vpop.f32.mrf.mxu1  ;;  %v3898_v29 = vpop.f32.mrf.mxu0 }
 0x184   : > { %5316 = vst [vmem:[#allocation9_spill] sm:$0xff] %v4884_v56  ;;  %v1432_v42 = vadd.f32 %v1379_v22, %v4794_v30  ;;  %v4887_v53 = vadd.f32 %v3895_v57, %v1434_v19 }
 0x185   : > { %v3864_v51 = vpop.f32.mrf.mxu1  ;;  %v1686_v25 = vpop.f32.mrf.mxu0 }
 0x186   : > { %5317 = vst [vmem:[#allocation10_spill] sm:$0xff] %v4887_v53  ;;  %v1437_v49 = vadd.f32 %v3864_v51, %v4797_v40  ;;  %v4890_v62 = vadd.f32 %v1673_v21, %v1432_v42 }
 0x187   : > { %v1392_v8 = vpop.f32.mrf.mxu1  ;;  %v3899_v35 = vpop.f32.mrf.mxu0 }
 0x188   : > { %5318 = vst [vmem:[#allocation11_spill] sm:$0xff] %v4890_v62  ;;  %v1435_v58 = vadd.f32 %v1392_v8, %v4800_v17  ;;  %v4893_v34 = vadd.f32 %v3898_v29, %v1437_v49 }
 0x189   : > { %v3865_v27 = vpop.f32.mrf.mxu1  ;;  %v1689_v7 = vpop.f32.mrf.mxu0 }
 0x18a   : > { %5319 = vst [vmem:[#allocation12_spill] sm:$0xff] %v4893_v34  ;;  %v1438_v41 = vadd.f32 %v3865_v27, %v4803_v1  ;;  %v4896_v0 = vadd.f32 %v1686_v25, %v1435_v58 }
 0x18b   : > { %v1395_v30 = vpop.f32.mrf.mxu1  ;;  %v4898_v45 = vpop.f32.mrf.mxu0 }
 0x18c   : > { %5320 = vst [vmem:[#allocation13_spill] sm:$0xff] %v4896_v0  ;;  %v1436_v13 = vadd.f32 %v1395_v30, %v4806_v18  ;;  %v4901_v40 = vadd.f32 %v3899_v35, %v1438_v41 }
 0x18d   : > { %v3904_v16 = vpop.f32.mrf.mxu1  ;;  %v4903_v32 = vpop.f32.mrf.mxu0 }
 0x18e   : > { %5321 = vst [vmem:[#allocation14_spill] sm:$0xff] %v4901_v40  ;;  %v4905_v11 = vadd.f32 %v1689_v7, %v1436_v13 }
 0x18f   : > { %v1868_v17 = vpop.f32.mrf.mxu1  ;;  %v4907_v50 = vpop.f32.mrf.mxu0 }
 0x190   : > { %5322 = vst [vmem:[#allocation15_spill] sm:$0xff] %v4905_v11 }
 0x191   : > { %v3905_v63 = vpop.f32.mrf.mxu1  ;;  %v4909_v12 = vpop.f32.mrf.mxu0 }
 0x193   : > { %v1871_v1 = vpop.f32.mrf.mxu1  ;;  %v4911_v20 = vpop.f32.mrf.mxu0 }
 0x195   : > { %v3908_v3 = vpop.f32.mrf.mxu1  ;;  %v4913_v55 = vpop.f32.mrf.mxu0 }
 0x197   : > { %v1884_v18 = vpop.f32.mrf.mxu1  ;;  %v4915_v5 = vpop.f32.mrf.mxu0 }
 0x199   : > { %v3909_v57 = vpop.f32.mrf.mxu1  ;;  %v4917_v28 = vpop.f32.mrf.mxu0 }
 0x19b   : > { %v1887_v44 = vpop.f32.mrf.mxu1  ;;  %v4919_v21 = vpop.f32.mrf.mxu0 }
 0x19d   : > { %v3912_v19 = vpop.f32.mrf.mxu1  ;;  %v4921_v22 = vpop.f32.mrf.mxu0 }
 0x19f   : > { %v1900_v29 = vpop.f32.mrf.mxu1  ;;  %v4923_v42 = vpop.f32.mrf.mxu0 }
 0x1a1   : > { %v3913_v51 = vpop.f32.mrf.mxu1  ;;  %v4925_v25 = vpop.f32.mrf.mxu0 }
 0x1a3   : > { %v1903_v49 = vpop.f32.mrf.mxu1  ;;  %v4927_v8 = vpop.f32.mrf.mxu0 }
 0x1a5   : > { %v3916_v35 = vpop.f32.mrf.mxu1  ;;  %v4929_v58 = vpop.f32.mrf.mxu0 }
 0x1a7   : > { %v1916_v27 = vpop.f32.mrf.mxu1  ;;  %v4931_v7 = vpop.f32.mrf.mxu0 }
 0x1a9   : > { %v3917_v41 = vpop.f32.mrf.mxu1  ;;  %v4933_v30 = vpop.f32.mrf.mxu0 }
 0x1aa   : > { %5323 = vst [vmem:[#allocation16_spill] sm:$0xff] %v4933_v30 }
 0x1ab   : > { %v1919_v13 = vpop.f32.mrf.mxu1  ;;  %v4935_v11 = vpop.f32.mrf.mxu0 }
 0x1ac   : > { %5324 = vst [vmem:[#allocation17_spill] sm:$0xff] %v4935_v11 }
 0x1ad   : > { %v3920_v40 = vpop.f32.mrf.mxu1  ;;  %v4937_v0 = vpop.f32.mrf.mxu0 }
 0x1ae   : > { %5325 = vst [vmem:[#allocation18_spill] sm:$0xff] %v4937_v0 }
 0x1af   : > { %v1932_v34 = vpop.f32.mrf.mxu1  ;;  %v4939_v62 = vpop.f32.mrf.mxu0 }
 0x1b0   : > { %5326 = vst [vmem:[#allocation19_spill] sm:$0xff] %v4939_v62 }
 0x1b1   : > { %v3921_v53 = vpop.f32.mrf.mxu1  ;;  %v4941_v56 = vpop.f32.mrf.mxu0 }
 0x1b2   : > { %5327 = vst [vmem:[#allocation20_spill] sm:$0xff] %v4941_v56 }
 0x1b3   : > { %v4943_v60 = vpop.f32.mrf.mxu1  ;;  %v4945_v48 = vpop.f32.mrf.mxu0 }
 0x1b4   : > { %5328 = vst [vmem:[#allocation21_spill] sm:$0xff] %v4943_v60  ;;  %5329 = vst [vmem:[#allocation22_spill] sm:$0xff] %v4945_v48 }
 0x1b5   : > { %v4947_v9 = vpop.f32.mrf.mxu1  ;;  %v4949_v26 = vpop.f32.mrf.mxu0 }
 0x1b6   : > { %5330 = vst [vmem:[#allocation23_spill] sm:$0xff] %v4947_v9  ;;  %5331 = vst [vmem:[#allocation24_spill] sm:$0xff] %v4949_v26 }
 0x1b7   : > { %v4951_v10 = vpop.f32.mrf.mxu1  ;;  %v4953_v11 = vpop.f32.mrf.mxu0 }
 0x1b8   : > { %5332 = vst [vmem:[#allocation25_spill] sm:$0xff] %v4951_v10  ;;  %5333 = vst [vmem:[#allocation26_spill] sm:$0xff] %v4953_v11  ;;  %v1997_v11 = vadd.f32 %v3904_v16, %v4809_v61  ;;  %v2002_v61 = vadd.f32 %v3909_v57, %v4827_v37  ;;  %v5344_v57 = vld [vmem:[#allocation16_spill] sm:$0xff] }
 0x1b9   : > { %v4955_v23 = vpop.f32.mrf.mxu1  ;;  %v4957_v0 = vpop.f32.mrf.mxu0 }
 0x1ba   : > { %5334 = vst [vmem:[#allocation27_spill] sm:$0xff] %v4955_v23  ;;  %5335 = vst [vmem:[#allocation28_spill] sm:$0xff] %v4957_v0 }
 0x1bb   : > { %v4959_v62 = vpop.f32.mrf.mxu1  ;;  %v4961_v30 = vpop.f32.mrf.mxu0 }
 0x1bc   : > { %5336 = vst [vmem:[#allocation29_spill] sm:$0xff] %v4959_v62  ;;  %5337 = vst [vmem:[#allocation30_spill] sm:$0xff] %v4961_v30  ;;  %v1995_v30 = vadd.f32 %v1868_v17, %v4812_v38  ;;  %v2292_v38 = vadd.f32 %v4898_v45, %v1997_v11  ;;  %v2005_v17 = vadd.f32 %v3912_v19, %v4833_v33  ;;  %v5349_v19 = vld [vmem:[#allocation5_spill] sm:$0xff] }
 0x1bd   : > { %v4963_v56 = vpop.f32.mrf.mxu1  ;;  %v4965_v60 = vpop.f32.mrf.mxu0  ;;  %v2010_v33 = vadd.f32 %v3917_v41, %v4851_v14 }
 0x1be   : > { %5338 = vst [vmem:[#allocation31_spill] sm:$0xff] %v4963_v56  ;;  %5339 = vst [vmem:[#allocation32_spill] sm:$0xff] %v4965_v60  ;;  %v1998_v56 = vadd.f32 %v3905_v63, %v4815_v36  ;;  %v2000_v36 = vadd.f32 %v1887_v44, %v4830_v46  ;;  %v2003_v63 = vadd.f32 %v1900_v29, %v4836_v4  ;;  %v5348_v44 = vld [vmem:[#allocation23_spill] sm:$0xff] }
 0x1bf   : > { %v4967_v48 = vpop.f32.mrf.mxu1  ;;  %v4969_v9 = vpop.f32.mrf.mxu0  ;;  %v2007_v46 = vadd.f32 %v1916_v27, %v4848_v43  ;;  %v2008_v4 = vadd.f32 %v1919_v13, %v4854_v15  ;;  %v5025_v14 = vadd.f32 %v4919_v21, %v2005_v17  ;;  %v5354_v27 = vld [vmem:[#allocation7_spill] sm:$0xff]  ;;  %v5358_v17 = vld [vmem:[#allocation9_spill] sm:$0xff] }
 0x1c0   : > { %5340 = vst [vmem:[#allocation33_spill] sm:$0xff] %v4969_v9  ;;  %v1996_v9 = vadd.f32 %v1871_v1, %v4818_v47  ;;  %v2006_v47 = vadd.f32 %v3913_v51, %v4839_v39  ;;  %v2293_v45 = vadd.f32 %v4907_v50, %v1998_v56  ;;  %v5019_v56 = vadd.f32 %v4915_v5, %v2002_v61  ;;  %v5356_v61 = vld [vmem:[#allocation8_spill] sm:$0xff] }
 0x1c1   : > { %v4971_v26 = vpop.f32.mrf.mxu1  ;;  %v4973_v10 = vpop.f32.mrf.mxu0  ;;  %v5022_v43 = vadd.f32 %v4917_v28, %v2000_v36  ;;  %v5028_v15 = vadd.f32 %v4921_v22, %v2003_v63  ;;  %v5046_v5 = vadd.f32 %v4931_v7, %v2010_v33  ;;  %v5347_v28 = vld [vmem:[#allocation4_spill] sm:$0xff]  ;;  %v5350_v22 = vld [vmem:[#allocation25_spill] sm:$0xff]  ;;  %v2019_v63 = vadd.f32 %v4967_v48, %v5358_v17  ;;  %v5360_v33 = vld [vmem:[#allocation19_spill] sm:$0xff] }
 0x1c2   : > { %5341 = vst [vmem:[#allocation34_spill] sm:$0xff] %v4971_v26  ;;  %5342 = vst [vmem:[#allocation35_spill] sm:$0xff] %v4973_v10  ;;  %v2001_v26 = vadd.f32 %v3908_v3, %v4821_v2  ;;  %v1999_v10 = vadd.f32 %v1884_v18, %v4824_v31  ;;  %v2004_v2 = vadd.f32 %v1903_v49, %v4842_v52 }
 0x1c3   : > { %v4976_v23 = vpop.f32.mrf.mxu1  ;;  %v4978_v0 = vpop.f32.mrf.mxu0  ;;  %v2009_v31 = vadd.f32 %v3916_v35, %v4845_v59  ;;  %v2290_v3 = vadd.f32 %v4903_v32, %v1995_v30  ;;  %v2291_v39 = vadd.f32 %v4909_v12, %v1996_v9  ;;  %v2013_v52 = vadd.f32 %v3920_v40, %v4857_v24  ;;  %v5353_v35 = vld [vmem:[#allocation27_spill] sm:$0xff]  ;;  %v5355_v7 = vld [vmem:[#allocation29_spill] sm:$0xff]  ;;  %v5371_v17 = vld [vmem:[#allocation30_spill] sm:$0xff] }
 0x1c4   : > { %5343 = vst [vmem:[#allocation36_spill] sm:$0xff] %v4976_v23  ;;  %v2296_v18 = vadd.f32 %v4911_v20, %v2001_v26  ;;  %v5016_v32 = vadd.f32 %v4913_v55, %v1999_v10  ;;  %v5031_v24 = vadd.f32 %v4923_v42, %v2006_v47  ;;  %v2011_v26 = vadd.f32 %v1932_v34, %v4860_v6 }
 0x1c5   : > { %v4982_v62 = vpop.f32.mrf.mxu1  ;;  %v4984_v60 = vpop.f32.mrf.mxu0  ;;  %v2014_v10 = vadd.f32 %v3921_v53, %v4863_v54  ;;  %v5036_v50 = vadd.f32 %v4925_v25, %v2004_v2  ;;  %v5039_v12 = vadd.f32 %v4927_v8, %v2009_v31  ;;  %v5043_v55 = vadd.f32 %v4929_v58, %v2007_v46  ;;  %v5345_v54 = vld [vmem:[#allocation3_spill] sm:$0xff]  ;;  %v5346_v53 = vld [vmem:[#allocation21_spill] sm:$0xff]  ;;  %v5352_v8 = vld [vmem:[#allocation6_spill] sm:$0xff] }
 0x1c6   : > { %v5049_v6 = vadd.f32 %v5344_v57, %v2008_v4  ;;  %v2012_v34 = vadd.f32 %v5346_v53, %v5345_v54  ;;  %v2017_v21 = vadd.f32 %v5348_v44, %v5347_v28  ;;  %v2015_v29 = vadd.f32 %v5350_v22, %v5349_v19  ;;  %v5351_v25 = vld [vmem:[#allocation17_spill] sm:$0xff]  ;;  %v5359_v31 = vld [vmem:[#allocation18_spill] sm:$0xff]  ;;  %v5365_v53 = vld [vmem:[#allocation12_spill] sm:$0xff] }
 0x1c7   : > { %v4990_v16 = vpop.f32.mrf.mxu1  ;;  %v4992_v23 = vpop.f32.mrf.mxu0  ;;  %v5058_v49 = vadd.f32 %v5351_v25, %v2013_v52  ;;  %v2018_v58 = vadd.f32 %v5353_v35, %v5352_v8  ;;  %v2016_v41 = vadd.f32 %v5355_v7, %v5354_v27  ;;  %v5074_v46 = vadd.f32 %v5359_v31, %v2011_v26  ;;  %v5366_v26 = vld [vmem:[#allocation20_spill] sm:$0xff] }
 0x1c8   : > { %v5077_v4 = vadd.f32 %v5360_v33, %v2014_v10  ;;  %v2025_v28 = vadd.f32 %v4982_v62, %v5365_v53  ;;  %v5367_v10 = vld [vmem:[#allocation22_spill] sm:$0xff]  ;;  %v5368_v35 = vld [vmem:[#allocation24_spill] sm:$0xff] }
 0x1c9   : > { %v5001_v1 = vpop.f32.mrf.mxu1  ;;  %v5003_v37 = vpop.f32.mrf.mxu0  ;;  %v5362_v52 = vld [vmem:[#allocation34_spill] sm:$0xff]  ;;  %v5089_v25 = vadd.f32 %v5367_v10, %v2017_v21  ;;  %v5094_v27 = vadd.f32 %v5368_v35, %v2015_v29  ;;  %v5370_v62 = vld [vmem:[#allocation28_spill] sm:$0xff] }
 0x1ca   : > { %v5372_v21 = vld [vmem:[#allocation32_spill] sm:$0xff]  ;;  %v5376_v53 = vld [vmem:[#allocation14_spill] sm:$0xff] }
 0x1cb   : > { %v5012_v59 = vpop.f32.mrf.mxu1  ;;  %v4006_v11 = vpop.f32.mrf.mxu0  ;;  %v5106_v31 = vadd.f32 %v5372_v21, %v2019_v63 }
 0x1cd   : > { %v3972_v9 = vpop.f32.mrf.mxu1  ;;  %v2751_v40 = vpop.f32.mrf.mxu0 }
 0x1ce   : > { %v2586_v20 = vadd.f32 %v3972_v9, %v2292_v38  ;;  %v5357_v38 = vld [vmem:[#allocation31_spill] sm:$0xff] }
 0x1cf   : > { %v2457_v42 = vpop.f32.mrf.mxu1  ;;  %v4007_v51 = vpop.f32.mrf.mxu0  ;;  %v2021_v36 = vadd.f32 %v5357_v38, %v5356_v61  ;;  %v5363_v9 = vld [vmem:[#allocation11_spill] sm:$0xff] }
 0x1d0   : > { %v2880_v30 = vadd.f32 %v4006_v11, %v2586_v20  ;;  %v2584_v13 = vadd.f32 %v2457_v42, %v2290_v3  ;;  %v5361_v3 = vld [vmem:[#allocation10_spill] sm:$0xff]  ;;  %v5364_v20 = vld [vmem:[#allocation36_spill] sm:$0xff]  ;;  %v5086_v42 = vadd.f32 %v5366_v26, %v2012_v34 }
 0x1d1   : > { %v3973_v47 = vpop.f32.mrf.mxu1  ;;  %v2754_v2 = vpop.f32.mrf.mxu0  ;;  %v2022_v11 = vadd.f32 %v5362_v52, %v5361_v3  ;;  %v2020_v48 = vadd.f32 %v5364_v20, %v5363_v9 }
 0x1d2   : > { %v3547_v57 = vpack.c.bf16 %v2880_v30, %v2880_v30  ;;  %v2878_v54 = vadd.f32 %v2751_v40, %v2584_v13  ;;  %v2587_v44 = vadd.f32 %v3973_v47, %v2293_v45  ;;  %v5369_v40 = vld [vmem:[#allocation26_spill] sm:$0xff]  ;;  %v5100_v45 = vadd.f32 %v5370_v62, %v2016_v41  ;;  %v5374_v41 = vld [vmem:[#allocation35_spill] sm:$0xff] }
 0x1d3   : > { %v2460_v19 = vpop.f32.mrf.mxu1  ;;  %v4010_v22 = vpop.f32.mrf.mxu0  ;;  %v5097_v7 = vadd.f32 %v5369_v40, %v2018_v58  ;;  %v5103_v47 = vadd.f32 %v5371_v17, %v2021_v36  ;;  %v5373_v58 = vld [vmem:[#allocation33_spill] sm:$0xff]  ;;  %v5114_v52 = vadd.f32 %v5374_v41, %v2020_v48 }
 0x1d4   : > { %3041 = vst.msk [vmem:[%s5071_s19 + $0x8] sm:$0xf] %vm3038_vm4, %v3547_v57  ;;  %v3545_v8 = vpack.c.bf16 %v2878_v54, %v2878_v54  ;;  %v2881_v13 = vadd.f32 %v4007_v51, %v2587_v44  ;;  %v2585_v61 = vadd.f32 %v2460_v19, %v2291_v39  ;;  %v3141_v29 = vmul.f32 %v2878_v54, %v2878_v54  ;;  %v5375_v39 = vld [vmem:[#allocation13_spill] sm:$0xff] }
 0x1d5   : > { %v3976_v38 = vpop.f32.mrf.mxu1  ;;  %v2767_v34 = vpop.f32.mrf.mxu0  ;;  %v5111_v3 = vadd.f32 %v5373_v58, %v2022_v11  ;;  %v5118_v51 = vadd.f32 %v4990_v16, %v5375_v39  ;;  %v5121_v57 = vadd.f32 %v4978_v0, %v2025_v28  ;;  %v3143_v11 = vmul.f32 %v2880_v30, %v2880_v30 }
 0x1d6   : > { %3039 = vst.msk [vmem:[%s5071_s19] sm:$0xf] %vm3038_vm4, %v3545_v8  ;;  %v2590_v33 = vadd.f32 %v3976_v38, %v2296_v18  ;;  %v3548_v36 = vpack.c.bf16 %v2881_v13, %v2881_v13  ;;  %v2879_v9 = vadd.f32 %v2754_v2, %v2585_v61  ;;  %v5125_v18 = vadd.f32 %v5001_v1, %v5376_v53 }
 0x1d7   : > { %v2473_v20 = vpop.f32.mrf.mxu1  ;;  %v4011_v63 = vpop.f32.mrf.mxu0  ;;  %v3071_v19 = vsel %vm216_vm1, %v2878_v54, 0.0  ;;  %v3074_v28 = vsel %vm216_vm1, %v2880_v30, 0.0  ;;  %v3173_v1 = vsel %vm216_vm1, %v3141_v29, 0.0  ;;  %v3176_v38 = vsel %vm216_vm1, %v3143_v11, 0.0 }
 0x1d8   : > { %v2884_v44 = vadd.f32 %v4010_v22, %v2590_v33  ;;  %v2588_v48 = vadd.f32 %v2473_v20, %v5016_v32  ;;  %3042 = vst.msk [vmem:[%s5071_s19 + $0xc] sm:$0xf] %vm3038_vm4, %v3548_v36  ;;  %v3546_v16 = vpack.c.bf16 %v2879_v9, %v2879_v9  ;;  %v3072_v2 = vsel %vm216_vm1, %v2879_v9, 0.0 }
 0x1d9   : > { %v3142_v26 = vmul.f32 %v2879_v9, %v2879_v9  ;;  %v3977_v10 = vpop.f32.mrf.mxu1  ;;  %v2770_v0 = vpop.f32.mrf.mxu0  ;;  %v3073_v8 = vadd.f32 %v3072_v2, %v3071_v19  ;;  %v3144_v22 = vmul.f32 %v2881_v13, %v2881_v13  ;;  %v3076_v29 = vsel %vm216_vm1, %v2881_v13, 0.0 }
 0x1da   : > { %v3551_v35 = vpack.c.bf16 %v2884_v44, %v2884_v44  ;;  %3040 = vst.msk [vmem:[%s5071_s19 + $0x4] sm:$0xf] %vm3038_vm4, %v3546_v16  ;;  %v2882_v54 = vadd.f32 %v2767_v34, %v2588_v48  ;;  %v2591_v40 = vadd.f32 %v3977_v10, %v5019_v56  ;;  %v3147_v11 = vmul.f32 %v2884_v44, %v2884_v44 }
 0x1db   : > { %v3174_v32 = vsel %vm216_vm1, %v3142_v26, 0.0  ;;  %v2476_v62 = vpop.f32.mrf.mxu1  ;;  %v4014_v61 = vpop.f32.mrf.mxu0  ;;  %v3075_v17 = vadd.f32 %v3074_v28, %v3073_v8  ;;  %v3178_v53 = vsel %vm216_vm1, %v3144_v22, 0.0 }
 0x1dc   : > { %v3175_v21 = vadd.f32 %v3174_v32, %v3173_v1  ;;  %3045 = vst.msk [vmem:[%s5071_s19 + $0x18] sm:$0xf] %vm3038_vm4, %v3551_v35  ;;  %v2589_v30 = vadd.f32 %v2476_v62, %v5022_v43  ;;  %v3549_v33 = vpack.c.bf16 %v2882_v54, %v2882_v54  ;;  %v3145_v58 = vmul.f32 %v2882_v54, %v2882_v54 }
 0x1dd   : > { %v2885_v41 = vadd.f32 %v4011_v63, %v2591_v40  ;;  %v3980_v39 = vpop.f32.mrf.mxu1  ;;  %v2783_v34 = vpop.f32.mrf.mxu0  ;;  %v3077_v56 = vadd.f32 %v3076_v29, %v3075_v17  ;;  %v3078_v43 = vsel %vm216_vm1, %v2882_v54, 0.0  ;;  %v5158_v54 = vadd.f32 %v4984_v60, %v5118_v51 }
 0x1de   : > { %v3177_v36 = vadd.f32 %v3176_v38, %v3175_v21  ;;  %v2883_v9 = vadd.f32 %v2770_v0, %v2589_v30  ;;  %v2594_v20 = vadd.f32 %v3980_v39, %v5025_v14  ;;  %3043 = vst.msk [vmem:[%s5071_s19 + $0x10] sm:$0xf] %vm3038_vm4, %v3549_v33  ;;  %v3180_v10 = vsel %vm216_vm1, %v3145_v58, 0.0  ;;  %v5377_v58 = vld [vmem:[#allocation15_spill] sm:$0xff] }
 0x1df   : > { %v3552_v13 = vpack.c.bf16 %v2885_v41, %v2885_v41  ;;  %v2489_v48 = vpop.f32.mrf.mxu1  ;;  %v4015_v19 = vpop.f32.mrf.mxu0  ;;  %v3079_v63 = vadd.f32 %v3078_v43, %v3077_v56  ;;  %v3082_v40 = vsel %vm216_vm1, %v2884_v44, 0.0  ;;  %v3148_v62 = vmul.f32 %v2885_v41, %v2885_v41 }
 0x1e0   : > { %v3179_v16 = vadd.f32 %v3178_v53, %v3177_v36  ;;  %v3550_v2 = vpack.c.bf16 %v2883_v9, %v2883_v9  ;;  %v3080_v26 = vsel %vm216_vm1, %v2883_v9, 0.0  ;;  %v3146_v14 = vmul.f32 %v2883_v9, %v2883_v9 }
 0x1e1   : > { %3046 = vst.msk [vmem:[%s5071_s19 + $0x1c] sm:$0xf] %vm3038_vm4, %v3552_v13  ;;  %v2888_v0 = vadd.f32 %v4014_v61, %v2594_v20  ;;  %v2592_v28 = vadd.f32 %v2489_v48, %v5028_v15  ;;  %v3981_v1 = vpop.f32.mrf.mxu1  ;;  %v2786_v8 = vpop.f32.mrf.mxu0  ;;  %v3081_v22 = vadd.f32 %v3080_v26, %v3079_v63  ;;  %v2024_v39 = vadd.f32 %v5012_v59, %v5377_v58 }
 0x1e2   : > { %v3181_v35 = vadd.f32 %v3180_v10, %v3179_v16  ;;  %3044 = vst.msk [vmem:[%s5071_s19 + $0x14] sm:$0xf] %vm3038_vm4, %v3550_v2  ;;  %v2595_v32 = vadd.f32 %v3981_v1, %v5031_v24  ;;  %v3182_v61 = vsel %vm216_vm1, %v3146_v14, 0.0  ;;  %v3184_v24 = vsel %vm216_vm1, %v3147_v11, 0.0 }
 0x1e3   : > { %v3555_v38 = vpack.c.bf16 %v2888_v0, %v2888_v0  ;;  %v2492_v15 = vpop.f32.mrf.mxu1  ;;  %v4018_v17 = vpop.f32.mrf.mxu0  ;;  %v3083_v21 = vadd.f32 %v3082_v40, %v3081_v22  ;;  %v2886_v29 = vadd.f32 %v2783_v34, %v2592_v28  ;;  %v3084_v60 = vsel %vm216_vm1, %v2885_v41, 0.0 }
 0x1e4   : > { %v3183_v30 = vadd.f32 %v3182_v61, %v3181_v35  ;;  %v2889_v33 = vadd.f32 %v4015_v19, %v2595_v32  ;;  %v2593_v51 = vadd.f32 %v2492_v15, %v5036_v50  ;;  %v5171_v34 = vadd.f32 %v4992_v23, %v5125_v18 }
 0x1e5   : > { %3049 = vst.msk [vmem:[%s5071_s19 + $0x28] sm:$0xf] %vm3038_vm4, %v3555_v38  ;;  %v3984_v44 = vpop.f32.mrf.mxu1  ;;  %v2799_v36 = vpop.f32.mrf.mxu0  ;;  %v3553_v9 = vpack.c.bf16 %v2886_v29, %v2886_v29  ;;  %v3085_v20 = vadd.f32 %v3084_v60, %v3083_v21  ;;  %v3186_v59 = vsel %vm216_vm1, %v3148_v62, 0.0  ;;  %v3086_v53 = vsel %vm216_vm1, %v2886_v29, 0.0 }
 0x1e6   : > { %v3185_v56 = vadd.f32 %v3184_v24, %v3183_v30  ;;  %v3149_v11 = vmul.f32 %v2886_v29, %v2886_v29  ;;  %v3556_v41 = vpack.c.bf16 %v2889_v33, %v2889_v33  ;;  %v2887_v19 = vadd.f32 %v2786_v8, %v2593_v51 }
 0x1e7   : > { %v2505_v43 = vpop.f32.mrf.mxu1  ;;  %v4019_v13 = vpop.f32.mrf.mxu0  ;;  %3047 = vst.msk [vmem:[%s5071_s19 + $0x20] sm:$0xf] %vm3038_vm4, %v3553_v9  ;;  %v3087_v50 = vadd.f32 %v3086_v53, %v3085_v20  ;;  %v2598_v63 = vadd.f32 %v3984_v44, %v5039_v12  ;;  %v3151_v16 = vmul.f32 %v2888_v0, %v2888_v0  ;;  %v3152_v23 = vmul.f32 %v2889_v33, %v2889_v33 }
 0x1e8   : > { %v3187_v48 = vadd.f32 %v3186_v59, %v3185_v56  ;;  %v3188_v2 = vsel %vm216_vm1, %v3149_v11, 0.0  ;;  %3050 = vst.msk [vmem:[%s5071_s19 + $0x2c] sm:$0xf] %vm3038_vm4, %v3556_v41  ;;  %v2596_v18 = vadd.f32 %v2505_v43, %v5043_v55  ;;  %v3554_v28 = vpack.c.bf16 %v2887_v19, %v2887_v19 }
 0x1e9   : > { %v3985_v26 = vpop.f32.mrf.mxu1  ;;  %v2802_v10 = vpop.f32.mrf.mxu0  ;;  %v3088_v1 = vsel %vm216_vm1, %v2887_v19, 0.0  ;;  %v3150_v35 = vmul.f32 %v2887_v19, %v2887_v19  ;;  %v2892_v8 = vadd.f32 %v4018_v17, %v2598_v63  ;;  %v3090_v61 = vsel %vm216_vm1, %v2888_v0, 0.0 }
 0x1ea   : > { %v3189_v14 = vadd.f32 %v3188_v2, %v3187_v48  ;;  %v3089_v22 = vadd.f32 %v3088_v1, %v3087_v50  ;;  %v2890_v32 = vadd.f32 %v2799_v36, %v2596_v18  ;;  %v2599_v12 = vadd.f32 %v3985_v26, %v5046_v5  ;;  %3048 = vst.msk [vmem:[%s5071_s19 + $0x24] sm:$0xf] %vm3038_vm4, %v3554_v28 }
 0x1eb   : > { %v2508_v40 = vpop.f32.mrf.mxu1  ;;  %v4022_v62 = vpop.f32.mrf.mxu0  ;;  %v3190_v55 = vsel %vm216_vm1, %v3150_v35, 0.0  ;;  %v5190_v15 = vadd.f32 %v5003_v37, %v2024_v39  ;;  %v3192_v21 = vsel %vm216_vm1, %v3151_v16, 0.0  ;;  %v3559_v5 = vpack.c.bf16 %v2892_v8, %v2892_v8 }
 0x1ec   : > { %v2597_v38 = vadd.f32 %v2508_v40, %v5049_v6  ;;  %v3091_v17 = vadd.f32 %v3090_v61, %v3089_v22  ;;  %v3191_v30 = vadd.f32 %v3190_v55, %v3189_v14  ;;  %v3092_v0 = vsel %vm216_vm1, %v2889_v33, 0.0 }
 0x1ed   : > { %v3988_v29 = vpop.f32.mrf.mxu1  ;;  %v2815_v58 = vpop.f32.mrf.mxu0  ;;  %v3194_v24 = vsel %vm216_vm1, %v3152_v23, 0.0  ;;  %v3557_v60 = vpack.c.bf16 %v2890_v32, %v2890_v32  ;;  %v3153_v51 = vmul.f32 %v2890_v32, %v2890_v32  ;;  %3053 = vst.msk [vmem:[%s5071_s19 + $0x38] sm:$0xf] %vm3038_vm4, %v3559_v5  ;;  %v2893_v37 = vadd.f32 %v4019_v13, %v2599_v12 }
 0x1ee   : > { %v3193_v44 = vadd.f32 %v3192_v21, %v3191_v30  ;;  %v3093_v6 = vadd.f32 %v3092_v0, %v3091_v17  ;;  %v2891_v39 = vadd.f32 %v2802_v10, %v2597_v38  ;;  %v3155_v9 = vmul.f32 %v2892_v8, %v2892_v8 }
 0x1ef   : > { %v2521_v36 = vpop.f32.mrf.mxu1  ;;  %v4023_v56 = vpop.f32.mrf.mxu0  ;;  %3051 = vst.msk [vmem:[%s5071_s19 + $0x30] sm:$0xf] %vm3038_vm4, %v3557_v60  ;;  %v3094_v20 = vsel %vm216_vm1, %v2890_v32, 0.0  ;;  %v2602_v33 = vadd.f32 %v3988_v29, %v5058_v49  ;;  %v3196_v41 = vsel %vm216_vm1, %v3153_v51, 0.0  ;;  %v3560_v43 = vpack.c.bf16 %v2893_v37, %v2893_v37 }
 0x1f0   : > { %v2600_v59 = vadd.f32 %v2521_v36, %v5074_v46  ;;  %v3095_v53 = vadd.f32 %v3094_v20, %v3093_v6  ;;  %v3195_v11 = vadd.f32 %v3194_v24, %v3193_v44  ;;  %v3156_v48 = vmul.f32 %v2893_v37, %v2893_v37 }
 0x1f1   : > { %v3989_v13 = vpop.f32.mrf.mxu1  ;;  %v2818_v50 = vpop.f32.mrf.mxu0  ;;  %v3558_v19 = vpack.c.bf16 %v2891_v39, %v2891_v39  ;;  %v3096_v63 = vsel %vm216_vm1, %v2891_v39, 0.0  ;;  %v3154_v16 = vmul.f32 %v2891_v39, %v2891_v39  ;;  %3054 = vst.msk [vmem:[%s5071_s19 + $0x3c] sm:$0xf] %vm3038_vm4, %v3560_v43  ;;  %v2896_v49 = vadd.f32 %v4022_v62, %v2602_v33 }
 0x1f2   : > { %v3197_v2 = vadd.f32 %v3196_v41, %v3195_v11  ;;  %v3097_v23 = vadd.f32 %v3096_v63, %v3095_v53  ;;  %v2894_v18 = vadd.f32 %v2815_v58, %v2600_v59  ;;  %v3098_v10 = vsel %vm216_vm1, %v2892_v8, 0.0 }
 0x1f3   : > { %v2524_v46 = vpop.f32.mrf.mxu1  ;;  %v4026_v26 = vpop.f32.mrf.mxu0  ;;  %3052 = vst.msk [vmem:[%s5071_s19 + $0x34] sm:$0xf] %vm3038_vm4, %v3558_v19  ;;  %v3198_v14 = vsel %vm216_vm1, %v3154_v16, 0.0  ;;  %v2603_v28 = vadd.f32 %v3989_v13, %v5077_v4  ;;  %v3200_v35 = vsel %vm216_vm1, %v3155_v9, 0.0  ;;  %v3563_v12 = vpack.c.bf16 %v2896_v49, %v2896_v49 }
 0x1f4   : > { %v2601_v1 = vadd.f32 %v2524_v46, %v5086_v42  ;;  %v3099_v22 = vadd.f32 %v3098_v10, %v3097_v23  ;;  %v3199_v32 = vadd.f32 %v3198_v14, %v3197_v2  ;;  %v3100_v61 = vsel %vm216_vm1, %v2893_v37, 0.0 }
 0x1f5   : > { %v3992_v40 = vpop.f32.mrf.mxu1  ;;  %v2831_v62 = vpop.f32.mrf.mxu0  ;;  %v3202_v8 = vsel %vm216_vm1, %v3156_v48, 0.0  ;;  %v3561_v55 = vpack.c.bf16 %v2894_v18, %v2894_v18  ;;  %v3157_v38 = vmul.f32 %v2894_v18, %v2894_v18  ;;  %3057 = vst.msk [vmem:[%s5071_s19 + $0x48] sm:$0xf] %vm3038_vm4, %v3563_v12  ;;  %v2897_v17 = vadd.f32 %v4023_v56, %v2603_v28 }
 0x1f6   : > { %v3201_v21 = vadd.f32 %v3200_v35, %v3199_v32  ;;  %v3101_v4 = vadd.f32 %v3100_v61, %v3099_v22  ;;  %v2895_v42 = vadd.f32 %v2818_v50, %v2601_v1  ;;  %v3159_v29 = vmul.f32 %v2896_v49, %v2896_v49 }
 0x1f7   : > { %v2537_v30 = vpop.f32.mrf.mxu1  ;;  %v4027_v5 = vpop.f32.mrf.mxu0  ;;  %3055 = vst.msk [vmem:[%s5071_s19 + $0x40] sm:$0xf] %vm3038_vm4, %v3561_v55  ;;  %v3102_v58 = vsel %vm216_vm1, %v2894_v18, 0.0  ;;  %v2606_v0 = vadd.f32 %v3992_v40, %v5089_v25  ;;  %v3204_v44 = vsel %vm216_vm1, %v3157_v38, 0.0  ;;  %v3564_v6 = vpack.c.bf16 %v2897_v17, %v2897_v17 }
 0x1f8   : > { %v2604_v24 = vadd.f32 %v2537_v30, %v5094_v27  ;;  %v3103_v60 = vadd.f32 %v3102_v58, %v3101_v4  ;;  %v3203_v51 = vadd.f32 %v3202_v8, %v3201_v21  ;;  %v3160_v36 = vmul.f32 %v2897_v17, %v2897_v17 }
 0x1f9   : > { %v3993_v37 = vpop.f32.mrf.mxu1  ;;  %v2834_v39 = vpop.f32.mrf.mxu0  ;;  %v3562_v56 = vpack.c.bf16 %v2895_v42, %v2895_v42  ;;  %v3104_v9 = vsel %vm216_vm1, %v2895_v42, 0.0  ;;  %v3158_v20 = vmul.f32 %v2895_v42, %v2895_v42  ;;  %3058 = vst.msk [vmem:[%s5071_s19 + $0x4c] sm:$0xf] %vm3038_vm4, %v3564_v6  ;;  %v2900_v25 = vadd.f32 %v4026_v26, %v2606_v0 }
 0x1fa   : > { %v3205_v33 = vadd.f32 %v3204_v44, %v3203_v51  ;;  %v3105_v59 = vadd.f32 %v3104_v9, %v3103_v60  ;;  %v2898_v53 = vadd.f32 %v2831_v62, %v2604_v24  ;;  %v3106_v41 = vsel %vm216_vm1, %v2896_v49, 0.0 }
 0x1fb   : > { %v2540_v27 = vpop.f32.mrf.mxu1  ;;  %v4030_v11 = vpop.f32.mrf.mxu0  ;;  %3056 = vst.msk [vmem:[%s5071_s19 + $0x44] sm:$0xf] %vm3038_vm4, %v3562_v56  ;;  %v3206_v43 = vsel %vm216_vm1, %v3158_v20, 0.0  ;;  %v2607_v13 = vadd.f32 %v3993_v37, %v5097_v7  ;;  %v3208_v48 = vsel %vm216_vm1, %v3159_v29, 0.0  ;;  %v3567_v16 = vpack.c.bf16 %v2900_v25, %v2900_v25 }
 0x1fc   : > { %v2605_v50 = vadd.f32 %v2540_v27, %v5100_v45  ;;  %v3107_v19 = vadd.f32 %v3106_v41, %v3105_v59  ;;  %v3207_v63 = vadd.f32 %v3206_v43, %v3205_v33  ;;  %v3108_v18 = vsel %vm216_vm1, %v2897_v17, 0.0 }
 0x1fd   : > { %v3996_v2 = vpop.f32.mrf.mxu1  ;;  %v2847_v23 = vpop.f32.mrf.mxu0  ;;  %v3210_v49 = vsel %vm216_vm1, %v3160_v36, 0.0  ;;  %v3565_v46 = vpack.c.bf16 %v2898_v53, %v2898_v53  ;;  %v3161_v26 = vmul.f32 %v2898_v53, %v2898_v53  ;;  %3061 = vst.msk [vmem:[%s5071_s19 + $0x58] sm:$0xf] %vm3038_vm4, %v3567_v16  ;;  %v2901_v14 = vadd.f32 %v4027_v5, %v2607_v13 }
 0x1fe   : > { %v3209_v10 = vadd.f32 %v3208_v48, %v3207_v63  ;;  %v3109_v7 = vadd.f32 %v3108_v18, %v3107_v19  ;;  %v2899_v45 = vadd.f32 %v2834_v39, %v2605_v50  ;;  %v3163_v35 = vmul.f32 %v2900_v25, %v2900_v25 }
 0x1ff   : > { %v2553_v28 = vpop.f32.mrf.mxu1  ;;  %v4031_v1 = vpop.f32.mrf.mxu0  ;;  %3059 = vst.msk [vmem:[%s5071_s19 + $0x50] sm:$0xf] %vm3038_vm4, %v3565_v46  ;;  %v3110_v22 = vsel %vm216_vm1, %v2898_v53, 0.0  ;;  %v2610_v32 = vadd.f32 %v3996_v2, %v5103_v47  ;;  %v3212_v61 = vsel %vm216_vm1, %v3161_v26, 0.0  ;;  %v3568_v8 = vpack.c.bf16 %v2901_v14, %v2901_v14 }
 0x200   : > { %v2608_v12 = vadd.f32 %v2553_v28, %v5106_v31  ;;  %v3111_v40 = vadd.f32 %v3110_v22, %v3109_v7  ;;  %v3211_v62 = vadd.f32 %v3210_v49, %v3209_v10  ;;  %v3164_v21 = vmul.f32 %v2901_v14, %v2901_v14 }
 0x201   : > { %v3997_v55 = vpop.f32.mrf.mxu1  ;;  %v2850_v38 = vpop.f32.mrf.mxu0  ;;  %v3566_v4 = vpack.c.bf16 %v2899_v45, %v2899_v45  ;;  %v3112_v17 = vsel %vm216_vm1, %v2899_v45, 0.0  ;;  %v3162_v42 = vmul.f32 %v2899_v45, %v2899_v45  ;;  %3062 = vst.msk [vmem:[%s5071_s19 + $0x5c] sm:$0xf] %vm3038_vm4, %v3568_v8  ;;  %v2904_v47 = vadd.f32 %v4030_v11, %v2610_v32 }
 0x202   : > { %v3213_v30 = vadd.f32 %v3212_v61, %v3211_v62  ;;  %v3113_v5 = vadd.f32 %v3112_v17, %v3111_v40  ;;  %v2902_v29 = vadd.f32 %v2847_v23, %v2608_v12  ;;  %v3114_v0 = vsel %vm216_vm1, %v2900_v25, 0.0 }
 0x203   : > { %v2556_v31 = vpop.f32.mrf.mxu1  ;;  %v4034_v58 = vpop.f32.mrf.mxu0  ;;  %3060 = vst.msk [vmem:[%s5071_s19 + $0x54] sm:$0xf] %vm3038_vm4, %v3566_v4  ;;  %v3214_v24 = vsel %vm216_vm1, %v3162_v42, 0.0  ;;  %v2611_v60 = vadd.f32 %v3997_v55, %v5111_v3  ;;  %v3216_v44 = vsel %vm216_vm1, %v3163_v35, 0.0  ;;  %v3571_v39 = vpack.c.bf16 %v2904_v47, %v2904_v47 }
 0x204   : > { %v2609_v51 = vadd.f32 %v2556_v31, %v5114_v52  ;;  %v3115_v6 = vadd.f32 %v3114_v0, %v3113_v5  ;;  %v3215_v37 = vadd.f32 %v3214_v24, %v3213_v30  ;;  %v3116_v56 = vsel %vm216_vm1, %v2901_v14, 0.0 }
 0x205   : > { %v4000_v36 = vpop.f32.mrf.mxu1  ;;  %v3218_v9 = vsel %vm216_vm1, %v3164_v21, 0.0  ;;  %v3569_v20 = vpack.c.bf16 %v2902_v29, %v2902_v29  ;;  %v3165_v33 = vmul.f32 %v2902_v29, %v2902_v29  ;;  %v2863_v59 = vpop.f32.mrf.mxu0  ;;  %3065 = vst.msk [vmem:[%s5071_s19 + $0x68] sm:$0xf] %vm3038_vm4, %v3571_v39  ;;  %v2905_v53 = vadd.f32 %v4031_v1, %v2611_v60 }
 0x206   : > { %v3217_v25 = vadd.f32 %v3216_v44, %v3215_v37  ;;  %v3117_v3 = vadd.f32 %v3116_v56, %v3115_v6  ;;  %v2903_v52 = vadd.f32 %v2850_v38, %v2609_v51  ;;  %v3122_v11 = vsel %vm216_vm1, %v2904_v47, 0.0 }
 0x207   : > { %v2569_v27 = vpop.f32.mrf.mxu1  ;;  %3063 = vst.msk [vmem:[%s5071_s19 + $0x60] sm:$0xf] %vm3038_vm4, %v3569_v20  ;;  %v3118_v41 = vsel %vm216_vm1, %v2902_v29, 0.0  ;;  %v2614_v43 = vadd.f32 %v4000_v36, %v5121_v57  ;;  %v3167_v50 = vmul.f32 %v2904_v47, %v2904_v47  ;;  %v3572_v63 = vpack.c.bf16 %v2905_v53, %v2905_v53  ;;  %v4035_v46 = vpop.f32.mrf.mxu0 }
 0x208   : > { %v2612_v13 = vadd.f32 %v2569_v27, %v5158_v54  ;;  %v3119_v48 = vadd.f32 %v3118_v41, %v3117_v3  ;;  %v3219_v19 = vadd.f32 %v3218_v9, %v3217_v25  ;;  %v3220_v2 = vsel %vm216_vm1, %v3165_v33, 0.0 }
 0x209   : > { %v4001_v16 = vpop.f32.mrf.mxu1  ;;  %v3570_v23 = vpack.c.bf16 %v2903_v52, %v2903_v52  ;;  %v3120_v18 = vsel %vm216_vm1, %v2903_v52, 0.0  ;;  %v3166_v49 = vmul.f32 %v2903_v52, %v2903_v52  ;;  %3066 = vst.msk [vmem:[%s5071_s19 + $0x6c] sm:$0xf] %vm3038_vm4, %v3572_v63  ;;  %v2908_v57 = vadd.f32 %v4034_v58, %v2614_v43  ;;  %v2866_v8 = vpop.f32.mrf.mxu0 }
 0x20a   : > { %v3221_v26 = vadd.f32 %v3220_v2, %v3219_v19  ;;  %v3121_v10 = vadd.f32 %v3120_v18, %v3119_v48  ;;  %v2906_v7 = vadd.f32 %v2863_v59, %v2612_v13  ;;  %v3168_v14 = vmul.f32 %v2905_v53, %v2905_v53 }
 0x20b   : > { %v2572_v54 = vpop.f32.mrf.mxu1  ;;  %3064 = vst.msk [vmem:[%s5071_s19 + $0x64] sm:$0xf] %vm3038_vm4, %v3570_v23  ;;  %v3222_v45 = vsel %vm216_vm1, %v3166_v49, 0.0  ;;  %v2615_v28 = vadd.f32 %v4001_v16, %v5171_v34  ;;  %v3575_v32 = vpack.c.bf16 %v2908_v57, %v2908_v57  ;;  %v3224_v12 = vsel %vm216_vm1, %v3167_v50, 0.0 }
 0x20c   : > { %v2613_v1 = vadd.f32 %v2572_v54, %v5190_v15  ;;  %v3123_v35 = vadd.f32 %v3122_v11, %v3121_v10  ;;  %v3223_v22 = vadd.f32 %v3222_v45, %v3221_v26  ;;  %v3124_v40 = vsel %vm216_vm1, %v2905_v53, 0.0 }
 0x20d   : > { %v3573_v62 = vpack.c.bf16 %v2906_v7, %v2906_v7  ;;  %v3169_v61 = vmul.f32 %v2906_v7, %v2906_v7  ;;  %3069 = vst.msk [vmem:[%s5071_s19 + $0x78] sm:$0xf] %vm3038_vm4, %v3575_v32  ;;  %v2909_v21 = vadd.f32 %v4035_v46, %v2615_v28  ;;  %v3226_v4 = vsel %vm216_vm1, %v3168_v14, 0.0 }
 0x20e   : > { %v3225_v55 = vadd.f32 %v3224_v12, %v3223_v22  ;;  %v3125_v38 = vadd.f32 %v3124_v40, %v3123_v35  ;;  %v2907_v34 = vadd.f32 %v2866_v8, %v2613_v1  ;;  %v3126_v15 = vsel %vm216_vm1, %v2906_v7, 0.0 }
 0x20f   : > { %3067 = vst.msk [vmem:[%s5071_s19 + $0x70] sm:$0xf] %vm3038_vm4, %v3573_v62  ;;  %v3171_v17 = vmul.f32 %v2908_v57, %v2908_v57  ;;  %v3576_v5 = vpack.c.bf16 %v2909_v21, %v2909_v21  ;;  %v3228_v47 = vsel %vm216_vm1, %v3169_v61, 0.0  ;;  %v3130_v60 = vsel %vm216_vm1, %v2908_v57, 0.0 }
 0x210   : > { %v3127_v42 = vadd.f32 %v3126_v15, %v3125_v38  ;;  %v3227_v30 = vadd.f32 %v3226_v4, %v3225_v55  ;;  %v3574_v29 = vpack.c.bf16 %v2907_v34, %v2907_v34  ;;  %v3128_v31 = vsel %vm216_vm1, %v2907_v34, 0.0 }
 0x211   : > { %v3170_v58 = vmul.f32 %v2907_v34, %v2907_v34  ;;  %3070 = vst.msk [vmem:[%s5071_s19 + $0x7c] sm:$0xf] %vm3038_vm4, %v3576_v5  ;;  %v3172_v51 = vmul.f32 %v2909_v21, %v2909_v21  ;;  %v3232_v39 = vsel %vm216_vm1, %v3171_v17, 0.0  ;;  %v3132_v36 = vsel %vm216_vm1, %v2909_v21, 0.0 }
 0x212   : > { %v3229_v0 = vadd.f32 %v3228_v47, %v3227_v30  ;;  %v3129_v24 = vadd.f32 %v3128_v31, %v3127_v42  ;;  %3068 = vst.msk [vmem:[%s5071_s19 + $0x74] sm:$0xf] %vm3038_vm4, %v3574_v29 }
 0x213   : > { %v3230_v44 = vsel %vm216_vm1, %v3170_v58, 0.0  ;;  %v3234_v20 = vsel %vm216_vm1, %v3172_v51, 0.0 }
 0x214   : > { %v3131_v6 = vadd.f32 %v3130_v60, %v3129_v24  ;;  %v3231_v37 = vadd.f32 %v3230_v44, %v3229_v0 }
 0x216   : > { %v3133_v56 = vadd.f32 %v3132_v36, %v3131_v6  ;;  %v3233_v9 = vadd.f32 %v3232_v39, %v3231_v37 }
 0x218   : > { %v3134_v33 = vrot.slane %v3133_v56, 4  ;;  %v3235_v59 = vadd.f32 %v3234_v20, %v3233_v9 }
 0x21a   : > { %v3135_v25 = vadd.f32 %v3134_v33, %v3133_v56  ;;  %v3236_v3 = vrot.slane %v3235_v59, 4 }
 0x21c   : > { %v3136_v53 = vrot.slane %v3135_v25, 2  ;;  %v3237_v52 = vadd.f32 %v3236_v3, %v3235_v59 }
 0x21e   : > { %v3137_v27 = vadd.f32 %v3136_v53, %v3135_v25  ;;  %v3238_v11 = vrot.slane %v3237_v52, 2 }
 0x220   : > { %v3138_v41 = vrot.slane %v3137_v27, 1  ;;  %v3239_v43 = vadd.f32 %v3238_v11, %v3237_v52 }
 0x222   : > { %v3139_v13 = vadd.f32 %v3138_v41, %v3137_v27  ;;  %v3240_v50 = vrot.slane %v3239_v43, 1 }
 0x224   : > { %3140 = vst.msk [vmem:[%s211_s22] sm:$0x1] %vm225_vm3, %v3139_v13  ;;  %v3241_v48 = vadd.f32 %v3240_v50, %v3239_v43 }
 0x226   : > { %3242 = vst.msk [vmem:[%s214_s25] sm:$0x1] %vm225_vm3, %v3241_v48 }
 0x227 PF: > { %s15_s15 = sadd.s32 1, %s4063_s15  }
 0x228   : > { %p12_p4 = scmp.ge.s32.totalorder %s15_s15, 4  }
 0x22a   :  { %14 = sbr.rel (!%p12_p4) target bundleno = 1 (0x1), region = 93 }

// kernel: basic_block_ibn_forward.4
= control target key start
LH: loop header
LB: loop body
LE: loop exit
PB: predicated region body
PF: predicated region fallthrough
CT: control target
= control target key end

     0   :  { %s4424_s21 = smov 0   ;;  %s5706_s0 = inlined_call_operand.vmem [shape: bf16[2,16,16,8], index: 0, kind: input, shape index: {}]   ;;  %s5707_s1 = inlined_call_operand.vmem [shape: bf16[9,8,8], index: 1, kind: input, shape index: {}]   ;;  %s5708_s2 = inlined_call_operand.vmem [shape: f32[2,1,8], index: 2, kind: input, shape index: {}]   ;;  %s5709_s3 = inlined_call_operand.vmem [shape: f32[2,1,8], index: 3, kind: input, shape index: {}]   ;;  %s5710_s4 = inlined_call_operand.vmem [shape: bf16[2,16,16,8], index: 4, kind: output, shape index: {0}]   ;;  %s5711_s5 = inlined_call_operand.vmem [shape: f32[2,1,8], index: 5, kind: output, shape index: {1}]   ;;  %s5712_s6 = inlined_call_operand.vmem [shape: f32[2,1,8], index: 6, kind: output, shape index: {2}]  }
   0x1 LB: > { %s3590_s22 = sadd.s32 4294967295, %s4386_s21   ;;  %p3594_p0 = scmp.ge.s32.totalorder %s4386_s21, 1  ;;  %s4386_s21 = sphi %s4424_s21, %s17_s21  }
   0x2   : > { %p233_p1 = scmp.lt.s32.totalorder %s4386_s21, 3 }
   0x4   : > { %p234_p2 = pnand %p3594_p0, %p233_p1 }
   0x6   : > { %237 = sbr.rel (%p234_p2) target bundleno = 551 (0x227), region = 36 }
   0xb   : > { %v3601_v0 = vld [vmem:[%s5707_s1 + $0x4] sm:$0xf]  ;;  %vm698_vm0 = vcmask 1043456   ;;  %vm472_vm1 = vcmask 64512   ;;  %vm475_vm2 = vcmask 58368   ;;  %v4388_v2 = vmov 0.0  }
   0xc   : > { %4361 = vmatprep.subr.msk.bf16.mxu0 %vm698_vm0, %v3601_v0  ;;  %4362 = vmatprep.subr.msk.bf16.mxu1 %vm698_vm0, %v3601_v0  ;;  %v700_v1 = vsel %vm698_vm0, %v3601_v0, 0  ;;  %473 = vst.msk [vmem:[#allocation2] sm:$0xff] %vm472_vm1, %v4388_v2  ;;  %474 = vst.msk [vmem:[#allocation2 + $0x8] sm:$0xff] %vm472_vm1, %v4388_v2  ;;  %vm481_vm3 = vcmask 57344   ;;  %p4444_p3 = scmp.lt.s32.totalorder %s3590_s22, 1  ;;  %vm3262_vm4 = vcmask 60416  }
   0xd   : > { %476 = vst.msk [vmem:[#allocation2 + $0x10] sm:$0x3] %vm475_vm2, %v4388_v2  ;;  %480 = vst.msk [vmem:[#allocation2 + $0x1a8] sm:$0x3] %vm475_vm2, %v4388_v2  ;;  %v599_v3 = vld [vmem:[%s5707_s1] sm:$0xf]  ;;  %4054 = vmatpush3.bf16.msra.mxu0 %v700_v1  ;;  %4360 = vmatpush3.bf16.msra.mxu1 %v700_v1 }
   0xe   : > { %478 = vst.msk [vmem:[#allocation2 + $0x198] sm:$0xff] %vm472_vm1, %v4388_v2  ;;  %479 = vst.msk [vmem:[#allocation2 + $0x1a0] sm:$0xff] %vm472_vm1, %v4388_v2  ;;  %v3634_v4 = vld [vmem:[%s5707_s1 + $0x8] sm:$0xf]  ;;  %s5785_s22 = smov (!%p4444_p3, %s3590_s22), 1  ;;  %4363 = vmatprep.subr.msk.bf16.mxu1 %vm698_vm0, %v599_v3  ;;  %v4519_v8 = vsel %vm698_vm0, %v599_v3, 0 }
   0xf   : > { %482 = vst.msk [vmem:[#allocation2] sm:$0x1] %vm481_vm3, %v4388_v2  ;;  %500 = vst.msk [vmem:[#allocation2 + $0x11] sm:$0x1] %vm481_vm3, %v4388_v2  ;;  %4364 = vmatprep.subr.msk.bf16.mxu0 %vm698_vm0, %v3634_v4  ;;  %s3787_s30 = sshll.u32 %s5785_s22, 7  ;;  %s282_s9 = scalar_lea.vmem %s5708_s2, %s5785_s22  ;;  %v4525_v20 = vsel %vm698_vm0, %v3634_v4, 0 }
  0x10   : > { %517 = vst.msk [vmem:[#allocation2 + $0x1a9] sm:$0x1] %vm481_vm3, %v4388_v2  ;;  %483 = vst.msk [vmem:[#allocation2 + $0x18] sm:$0x1] %vm481_vm3, %v4388_v2  ;;  %s4508_s12 = scalar_lea.vmem %s5706_s0, %s3787_s30  ;;  %s285_s15 = scalar_lea.vmem %s5709_s3, %s5785_s22  ;;  %v4515_v6 = vld [vmem:[%s282_s9] ss:$0 sm:$0xff] }
  0x11   : > { %484 = vst.msk [vmem:[#allocation2 + $0x30] sm:$0x1] %vm481_vm3, %v4388_v2  ;;  %485 = vst.msk [vmem:[#allocation2 + $0x48] sm:$0x1] %vm481_vm3, %v4388_v2  ;;  %v3822_v5 = vld [vmem:[%s4508_s12] sm:$0xff]   ;;  %v3891_v7 = vld [vmem:[%s4508_s12 + $0x38] sm:$0xff]   ;;  %s5469_s9 = scalar_lea.vmem %s5710_s4, %s3787_s30  ;;  %s293_s11 = scalar_lea.vmem %s5711_s5, %s5785_s22 }
  0x12   : > { %486 = vst.msk [vmem:[#allocation2 + $0x60] sm:$0x1] %vm481_vm3, %v4388_v2  ;;  %487 = vst.msk [vmem:[#allocation2 + $0x78] sm:$0x1] %vm481_vm3, %v4388_v2  ;;  %v3823_v11 = vunpack.c.l.bf16 %v3822_v5  ;;  %v3824_v12 = vunpack.c.h.bf16 %v3822_v5  ;;  %v3851_v13 = vunpack.c.l.bf16 %v3891_v7  ;;  %v3852_v14 = vunpack.c.h.bf16 %v3891_v7  ;;  %v3892_v15 = vld [vmem:[%s4508_s12 + $0x40] sm:$0xff]   ;;  %v3885_v21 = vld [vmem:[%s4508_s12 + $0x8] sm:$0xff]   ;;  %s296_s14 = scalar_lea.vmem %s5712_s6, %s5785_s22 }
  0x13   : > { %488 = vst.msk [vmem:[#allocation2 + $0x90] sm:$0x1] %vm481_vm3, %v4388_v2  ;;  %489 = vst.msk [vmem:[#allocation2 + $0xa8] sm:$0x1] %vm481_vm3, %v4388_v2  ;;  %v600_v9 = vld [vmem:[#allocation2 + $0x1] sm:$0xff]  ;;  %v3855_v18 = vunpack.c.l.bf16 %v3892_v15  ;;  %v3856_v19 = vunpack.c.h.bf16 %v3892_v15  ;;  %v3827_v28 = vunpack.c.l.bf16 %v3885_v21  ;;  %v3828_v29 = vunpack.c.h.bf16 %v3885_v21  ;;  %v3886_v38 = vld [vmem:[%s4508_s12 + $0x10] sm:$0xff]  }
  0x14   : > { %490 = vst.msk [vmem:[#allocation2 + $0xc0] sm:$0x1] %vm481_vm3, %v4388_v2  ;;  %491 = vst.msk [vmem:[#allocation2 + $0xd8] sm:$0x1] %vm481_vm3, %v4388_v2  ;;  %v601_v10 = vld [vmem:[#allocation2 + $0x9] sm:$0xff]  ;;  %v369_v22 = vmul.f32 %v3823_v11, %v4515_v6  ;;  %v370_v23 = vmul.f32 %v3824_v12, %v4515_v6  ;;  %v383_v24 = vmul.f32 %v3851_v13, %v4515_v6  ;;  %v3831_v49 = vunpack.c.l.bf16 %v3886_v38  ;;  %v3887_v53 = vld [vmem:[%s4508_s12 + $0x18] sm:$0xff]  }
  0x15   : > { %492 = vst.msk [vmem:[#allocation2 + $0xf0] sm:$0x1] %vm481_vm3, %v4388_v2  ;;  %493 = vst.msk [vmem:[#allocation2 + $0x108] sm:$0x1] %vm481_vm3, %v4388_v2  ;;  %v632_v16 = vpack.c.bf16 %v601_v10, %v600_v9  ;;  %v4522_v17 = vld [vmem:[%s285_s15] ss:$0 sm:$0xff]  ;;  %v384_v25 = vmul.f32 %v3852_v14, %v4515_v6  ;;  %v385_v26 = vmul.f32 %v3855_v18, %v4515_v6  ;;  %v3832_v50 = vunpack.c.h.bf16 %v3886_v38 }
  0x16   : > { %494 = vst.msk [vmem:[#allocation2 + $0x120] sm:$0x1] %vm481_vm3, %v4388_v2  ;;  %495 = vst.msk [vmem:[#allocation2 + $0x138] sm:$0x1] %vm481_vm3, %v4388_v2  ;;  %v386_v27 = vmul.f32 %v3856_v19, %v4515_v6  ;;  %v408_v30 = vadd.f32 %v4522_v17, %v369_v22  ;;  %v409_v31 = vadd.f32 %v4522_v17, %v370_v23  ;;  %v3893_v39 = vld [vmem:[%s4508_s12 + $0x48] sm:$0xff]   ;;  %v3894_v44 = vld [vmem:[%s4508_s12 + $0x50] sm:$0xff]   ;;  %v3835_v0 = vunpack.c.l.bf16 %v3887_v53 }
  0x17   : > { %496 = vst.msk [vmem:[#allocation2 + $0x150] sm:$0x1] %vm481_vm3, %v4388_v2  ;;  %497 = vst.msk [vmem:[#allocation2 + $0x168] sm:$0x1] %vm481_vm3, %v4388_v2  ;;  %4055 = vmatprep.mubr.msk.bf16.mxu0 %vm472_vm1, %v632_v16  ;;  %v422_v32 = vadd.f32 %v4522_v17, %v383_v24  ;;  %v423_v33 = vadd.f32 %v4522_v17, %v384_v25  ;;  %v424_v34 = vadd.f32 %v4522_v17, %v385_v26  ;;  %v3888_v12 = vld [vmem:[%s4508_s12 + $0x20] sm:$0xff]   ;;  %v3895_v13 = vld [vmem:[%s4508_s12 + $0x58] sm:$0xff]  }
  0x18   : > { %498 = vst.msk [vmem:[#allocation2 + $0x180] sm:$0x1] %vm481_vm3, %v4388_v2  ;;  %501 = vst.msk [vmem:[#allocation2 + $0x29] sm:$0x1] %vm481_vm3, %v4388_v2  ;;  %v425_v35 = vadd.f32 %v4522_v17, %v386_v27  ;;  %v371_v36 = vmul.f32 %v3827_v28, %v4515_v6  ;;  %v372_v37 = vmul.f32 %v3828_v29, %v4515_v6  ;;  %v440_v40 = vmax.f32 %v408_v30, 0.0  ;;  %v3896_v19 = vld [vmem:[%s4508_s12 + $0x60] sm:$0xff]  }
  0x19   : > { %502 = vst.msk [vmem:[#allocation2 + $0x41] sm:$0x1] %vm481_vm3, %v4388_v2  ;;  %503 = vst.msk [vmem:[#allocation2 + $0x59] sm:$0x1] %vm481_vm3, %v4388_v2  ;;  %v441_v41 = vmax.f32 %v409_v31, 0.0  ;;  %v454_v42 = vmax.f32 %v422_v32, 0.0  ;;  %v3859_v51 = vunpack.c.l.bf16 %v3893_v39  ;;  %v3860_v52 = vunpack.c.h.bf16 %v3893_v39 }
  0x1a   : > { %504 = vst.msk [vmem:[#allocation2 + $0x71] sm:$0x1] %vm481_vm3, %v4388_v2  ;;  %505 = vst.msk [vmem:[#allocation2 + $0x89] sm:$0x1] %vm481_vm3, %v4388_v2  ;;  %v455_v43 = vmax.f32 %v423_v33, 0.0  ;;  %v456_v45 = vmax.f32 %v424_v34, 0.0  ;;  %v410_v47 = vadd.f32 %v4522_v17, %v371_v36  ;;  %v411_v48 = vadd.f32 %v4522_v17, %v372_v37 }
  0x1b   : > { %506 = vst.msk [vmem:[#allocation2 + $0xa1] sm:$0x1] %vm481_vm3, %v4388_v2  ;;  %507 = vst.msk [vmem:[#allocation2 + $0xb9] sm:$0x1] %vm481_vm3, %v4388_v2  ;;  %v457_v46 = vmax.f32 %v425_v35, 0.0  ;;  %v3863_v56 = vunpack.c.l.bf16 %v3894_v44  ;;  %v3864_v57 = vunpack.c.h.bf16 %v3894_v44  ;;  %v373_v58 = vmul.f32 %v3831_v49, %v4515_v6  ;;  %v4575_v21 = vld [vmem:[%s4508_s12 + $0x28] sm:$0xff]  }
  0x1c   : > { %508 = vst.msk [vmem:[#allocation2 + $0xd1] sm:$0x1] %vm481_vm3, %v4388_v2  ;;  %509 = vst.msk [vmem:[#allocation2 + $0xe9] sm:$0x1] %vm481_vm3, %v4388_v2  ;;  %v442_v54 = vmax.f32 %v410_v47, 0.0  ;;  %v443_v55 = vmax.f32 %v411_v48, 0.0  ;;  %v374_v59 = vmul.f32 %v3832_v50, %v4515_v6  ;;  %v387_v60 = vmul.f32 %v3859_v51, %v4515_v6 }
  0x1d   : > { %510 = vst.msk [vmem:[#allocation2 + $0x101] sm:$0x1] %vm481_vm3, %v4388_v2  ;;  %511 = vst.msk [vmem:[#allocation2 + $0x119] sm:$0x1] %vm481_vm3, %v4388_v2  ;;  %v388_v61 = vmul.f32 %v3860_v52, %v4515_v6  ;;  %v389_v62 = vmul.f32 %v3863_v56, %v4515_v6  ;;  %v390_v63 = vmul.f32 %v3864_v57, %v4515_v6  ;;  %v3836_v1 = vunpack.c.h.bf16 %v3887_v53  ;;  %v4607_v50 = vld [vmem:[%s5707_s1 + $0xc] sm:$0xf] }
  0x1e   : > { %512 = vst.msk [vmem:[#allocation2 + $0x131] sm:$0x1] %vm481_vm3, %v4388_v2  ;;  %513 = vst.msk [vmem:[#allocation2 + $0x149] sm:$0x1] %vm481_vm3, %v4388_v2  ;;  %v413_v3 = vadd.f32 %v4522_v17, %v374_v59  ;;  %v426_v4 = vadd.f32 %v4522_v17, %v387_v60  ;;  %v375_v10 = vmul.f32 %v3835_v0, %v4515_v6  ;;  %v3839_v33 = vunpack.c.l.bf16 %v3888_v12  ;;  %v3890_v59 = vld [vmem:[%s4508_s12 + $0x30] sm:$0xff]   ;;  %v3897_v0 = vld [vmem:[%s4508_s12 + $0x68] sm:$0xff]  }
  0x1f   : > { %514 = vst.msk [vmem:[#allocation2 + $0x161] sm:$0x1] %vm481_vm3, %v4388_v2  ;;  %515 = vst.msk [vmem:[#allocation2 + $0x179] sm:$0x1] %vm481_vm3, %v4388_v2  ;;  %v427_v5 = vadd.f32 %v4522_v17, %v388_v61  ;;  %v428_v7 = vadd.f32 %v4522_v17, %v389_v62  ;;  %v429_v9 = vadd.f32 %v4522_v17, %v390_v63  ;;  %v3840_v34 = vunpack.c.h.bf16 %v3888_v12 }
  0x20   : > { %516 = vst.msk [vmem:[#allocation2 + $0x191] sm:$0x1] %vm481_vm3, %v4388_v2  ;;  %499 = vst.msk [vmem:[#allocation2 + $0x198] sm:$0x1] %vm481_vm3, %v4388_v2  ;;  %v412_v2 = vadd.f32 %v4522_v17, %v373_v58  ;;  %v376_v11 = vmul.f32 %v3836_v1, %v4515_v6  ;;  %v445_v15 = vmax.f32 %v413_v3, 0.0  ;;  %v458_v16 = vmax.f32 %v426_v4, 0.0 }
  0x21   : > { %519 = vst.msk [vmem:[#allocation2 + $0x19] sm:$0xff] %vm472_vm1, %v440_v40  ;;  %520 = vst.msk [vmem:[#allocation2 + $0x21] sm:$0xff] %vm472_vm1, %v441_v41  ;;  %v459_v18 = vmax.f32 %v427_v5, 0.0  ;;  %v460_v25 = vmax.f32 %v428_v7, 0.0  ;;  %v461_v26 = vmax.f32 %v429_v9, 0.0  ;;  %v414_v27 = vadd.f32 %v4522_v17, %v375_v10  ;;  %v3898_v1 = vld [vmem:[%s4508_s12 + $0x70] sm:$0xff]  }
  0x22   : > { %533 = vst.msk [vmem:[#allocation2 + $0xc1] sm:$0xff] %vm472_vm1, %v454_v42  ;;  %534 = vst.msk [vmem:[#allocation2 + $0xc9] sm:$0xff] %vm472_vm1, %v455_v43  ;;  %v444_v14 = vmax.f32 %v412_v2, 0.0  ;;  %v415_v28 = vadd.f32 %v4522_v17, %v376_v11  ;;  %v3867_v35 = vunpack.c.l.bf16 %v3895_v13  ;;  %v377_v42 = vmul.f32 %v3839_v33, %v4515_v6 }
  0x23   : > { %535 = vst.msk [vmem:[#allocation2 + $0xd9] sm:$0xff] %vm472_vm1, %v456_v45  ;;  %536 = vst.msk [vmem:[#allocation2 + $0xe1] sm:$0xff] %vm472_vm1, %v457_v46  ;;  %v446_v38 = vmax.f32 %v414_v27, 0.0  ;;  %v378_v43 = vmul.f32 %v3840_v34, %v4515_v6  ;;  %v3868_v44 = vunpack.c.h.bf16 %v3895_v13  ;;  %v3871_v47 = vunpack.c.l.bf16 %v3896_v19 }
  0x24   : > { %521 = vst.msk [vmem:[#allocation2 + $0x31] sm:$0xff] %vm472_vm1, %v442_v54  ;;  %522 = vst.msk [vmem:[#allocation2 + $0x39] sm:$0xff] %vm472_vm1, %v443_v55  ;;  %v447_v39 = vmax.f32 %v415_v28, 0.0  ;;  %v391_v45 = vmul.f32 %v3867_v35, %v4515_v6  ;;  %v3872_v48 = vunpack.c.h.bf16 %v3896_v19  ;;  %v3843_v49 = vunpack.c.l.bf16 %v4575_v21 }
  0x25   : > { %523 = vst.msk [vmem:[#allocation2 + $0x49] sm:$0xff] %vm472_vm1, %v444_v14  ;;  %524 = vst.msk [vmem:[#allocation2 + $0x51] sm:$0xff] %vm472_vm1, %v445_v15  ;;  %v416_v51 = vadd.f32 %v4522_v17, %v377_v42  ;;  %v417_v52 = vadd.f32 %v4522_v17, %v378_v43  ;;  %v392_v53 = vmul.f32 %v3868_v44, %v4515_v6  ;;  %v3844_v57 = vunpack.c.h.bf16 %v4575_v21 }
  0x26   : > { %537 = vst.msk [vmem:[#allocation2 + $0xf1] sm:$0xff] %vm472_vm1, %v458_v16  ;;  %538 = vst.msk [vmem:[#allocation2 + $0xf9] sm:$0xff] %vm472_vm1, %v459_v18  ;;  %v430_v54 = vadd.f32 %v4522_v17, %v391_v45  ;;  %v393_v55 = vmul.f32 %v3871_v47, %v4515_v6  ;;  %v394_v56 = vmul.f32 %v3872_v48, %v4515_v6  ;;  %v3847_v15 = vunpack.c.l.bf16 %v3890_v59 }
  0x27   : > { %539 = vst.msk [vmem:[#allocation2 + $0x109] sm:$0xff] %vm472_vm1, %v460_v25  ;;  %540 = vst.msk [vmem:[#allocation2 + $0x111] sm:$0xff] %vm472_vm1, %v461_v26  ;;  %v379_v58 = vmul.f32 %v3843_v49, %v4515_v6  ;;  %v448_v60 = vmax.f32 %v416_v51, 0.0  ;;  %v449_v61 = vmax.f32 %v417_v52, 0.0  ;;  %v431_v62 = vadd.f32 %v4522_v17, %v392_v53 }
  0x28   : > { %v602_v22 = vld [vmem:[#allocation2 + $0x19] sm:$0xff]  ;;  %v603_v23 = vld [vmem:[#allocation2 + $0x21] sm:$0xff]  ;;  %525 = vst.msk [vmem:[#allocation2 + $0x61] sm:$0xff] %vm472_vm1, %v446_v38  ;;  %526 = vst.msk [vmem:[#allocation2 + $0x69] sm:$0xff] %vm472_vm1, %v447_v39  ;;  %v462_v63 = vmax.f32 %v430_v54, 0.0  ;;  %v432_v4 = vadd.f32 %v4522_v17, %v393_v55  ;;  %v433_v5 = vadd.f32 %v4522_v17, %v394_v56  ;;  %v380_v7 = vmul.f32 %v3844_v57, %v4515_v6 }
  0x29   : > { %v616_v24 = vld [vmem:[#allocation2 + $0xc1] sm:$0xff]  ;;  %v4579_v29 = vpack.c.bf16 %v603_v23, %v602_v22  ;;  %v617_v30 = vld [vmem:[#allocation2 + $0xc9] sm:$0xff]  ;;  %v418_v9 = vadd.f32 %v4522_v17, %v379_v58  ;;  %527 = vst.msk [vmem:[#allocation2 + $0x79] sm:$0xff] %vm472_vm1, %v448_v60  ;;  %528 = vst.msk [vmem:[#allocation2 + $0x81] sm:$0xff] %vm472_vm1, %v449_v61  ;;  %v463_v14 = vmax.f32 %v431_v62, 0.0  ;;  %v3848_v16 = vunpack.c.h.bf16 %v3890_v59 }
  0x2a   : > { %v618_v31 = vld [vmem:[#allocation2 + $0xd9] sm:$0xff]  ;;  %v619_v32 = vld [vmem:[#allocation2 + $0xe1] sm:$0xff]  ;;  %v4585_v36 = vpack.c.bf16 %v617_v30, %v616_v24  ;;  %541 = vst.msk [vmem:[#allocation2 + $0x121] sm:$0xff] %vm472_vm1, %v462_v63  ;;  %v464_v21 = vmax.f32 %v432_v4, 0.0  ;;  %v465_v22 = vmax.f32 %v433_v5, 0.0  ;;  %v419_v25 = vadd.f32 %v4522_v17, %v380_v7 }
  0x2b   : > { %v4587_v37 = vpack.c.bf16 %v619_v32, %v618_v31  ;;  %4056 = vmatmul.mubr.msk.bf16.vlgmr.msra.gmra.mxu0 %vm472_vm1, %v4579_v29  ;;  %v604_v40 = vld [vmem:[#allocation2 + $0x31] sm:$0xff]  ;;  %v605_v41 = vld [vmem:[#allocation2 + $0x39] sm:$0xff]  ;;  %542 = vst.msk [vmem:[#allocation2 + $0x129] sm:$0xff] %vm472_vm1, %v463_v14  ;;  %v450_v26 = vmax.f32 %v418_v9, 0.0  ;;  %v381_v27 = vmul.f32 %v3847_v15, %v4515_v6  ;;  %v382_v28 = vmul.f32 %v3848_v16, %v4515_v6 }
  0x2c   : > { %4071 = vmatprep.mubr.msk.bf16.mxu1 %vm472_vm1, %v4585_v36  ;;  %4122 = vmatpush3.bf16.msra.mxu0 %v4525_v20  ;;  %v4599_v46 = vpack.c.bf16 %v605_v41, %v604_v40  ;;  %v4612_v20 = vld [vmem:[%s5707_s1 + $0x10] sm:$0xf]  ;;  %543 = vst.msk [vmem:[#allocation2 + $0x139] sm:$0xff] %vm472_vm1, %v464_v21  ;;  %544 = vst.msk [vmem:[#allocation2 + $0x141] sm:$0xff] %vm472_vm1, %v465_v22  ;;  %v3875_v31 = vunpack.c.l.bf16 %v3897_v0  ;;  %v3876_v32 = vunpack.c.h.bf16 %v3897_v0  ;;  %v3879_v33 = vunpack.c.l.bf16 %v3898_v1  ;;  %v3899_v14 = vld [vmem:[%s4508_s12 + $0x78] sm:$0xff]  }
  0x2d   : > { %4072 = vmatmul.mubr.msk.bf16.vlgmr.msra.gmra.mxu1 %vm472_vm1, %v4587_v37  ;;  %4366 = vmatprep.subr.msk.bf16.mxu0 %vm698_vm0, %v4612_v20  ;;  %v607_v2 = vld [vmem:[#allocation2 + $0x51] sm:$0xff]  ;;  %v621_v11 = vld [vmem:[#allocation2 + $0xf9] sm:$0xff]  ;;  %v451_v34 = vmax.f32 %v419_v25, 0.0  ;;  %529 = vst.msk [vmem:[#allocation2 + $0x91] sm:$0xff] %vm472_vm1, %v450_v26  ;;  %v420_v35 = vadd.f32 %v4522_v17, %v381_v27  ;;  %v421_v38 = vadd.f32 %v4522_v17, %v382_v28  ;;  %v3880_v39 = vunpack.c.h.bf16 %v3898_v1  ;;  %v1078_v28 = vld [vmem:[#allocation2 + $0x22] sm:$0xff] }
  0x2e   : > { %4088 = vmatpush3.bf16.msra.mxu1 %v4519_v8  ;;  %4059 = vmatprep.mubr.msk.bf16.mxu0 %vm472_vm1, %v4599_v46  ;;  %v606_v8 = vld [vmem:[#allocation2 + $0x49] sm:$0xff]  ;;  %v620_v3 = vld [vmem:[#allocation2 + $0xf1] sm:$0xff]  ;;  %v395_v40 = vmul.f32 %v3875_v31, %v4515_v6  ;;  %v396_v41 = vmul.f32 %v3876_v32, %v4515_v6  ;;  %v397_v42 = vmul.f32 %v3879_v33, %v4515_v6  ;;  %v3883_v22 = vunpack.c.l.bf16 %v3899_v14  ;;  %v1077_v27 = vld [vmem:[#allocation2 + $0x1a] sm:$0xff] }
  0x2f   : > { %4365 = vmatprep.subr.msk.bf16.mxu1 %vm698_vm0, %v4607_v50  ;;  %v4639_v10 = vpack.c.bf16 %v607_v2, %v606_v8  ;;  %v622_v12 = vld [vmem:[#allocation2 + $0x109] sm:$0xff]  ;;  %v623_v13 = vld [vmem:[#allocation2 + $0x111] sm:$0xff]  ;;  %v4644_v18 = vpack.c.bf16 %v621_v11, %v620_v3  ;;  %v608_v23 = vld [vmem:[#allocation2 + $0x61] sm:$0xff]  ;;  %530 = vst.msk [vmem:[#allocation2 + $0x99] sm:$0xff] %vm472_vm1, %v451_v34  ;;  %v452_v43 = vmax.f32 %v420_v35, 0.0  ;;  %v453_v44 = vmax.f32 %v421_v38, 0.0 }
  0x30   : > { %v4646_v19 = vpack.c.bf16 %v623_v13, %v622_v12  ;;  %v609_v24 = vld [vmem:[#allocation2 + $0x69] sm:$0xff]  ;;  %v398_v45 = vmul.f32 %v3880_v39, %v4515_v6  ;;  %v610_v47 = vld [vmem:[#allocation2 + $0x79] sm:$0xff]  ;;  %v611_v48 = vld [vmem:[#allocation2 + $0x81] sm:$0xff]  ;;  %v434_v51 = vadd.f32 %v4522_v17, %v395_v40  ;;  %v435_v52 = vadd.f32 %v4522_v17, %v396_v41 }
  0x31   : > { %4075 = vmatprep.mubr.msk.bf16.mxu1 %vm472_vm1, %v4644_v18  ;;  %v4656_v30 = vpack.c.bf16 %v609_v24, %v608_v23  ;;  %v624_v49 = vld [vmem:[#allocation2 + $0x121] sm:$0xff]  ;;  %v436_v53 = vadd.f32 %v4522_v17, %v397_v42  ;;  %v4675_v54 = vpack.c.bf16 %v611_v48, %v610_v47  ;;  %531 = vst.msk [vmem:[#allocation2 + $0xa9] sm:$0xff] %vm472_vm1, %v452_v43  ;;  %532 = vst.msk [vmem:[#allocation2 + $0xb1] sm:$0xff] %vm472_vm1, %v453_v44  ;;  %v1076_v2 = vld [vmem:[#allocation2 + $0xa] sm:$0xff] }
  0x32   : > { %v437_v55 = vadd.f32 %v4522_v17, %v398_v45  ;;  %v625_v56 = vld [vmem:[#allocation2 + $0x129] sm:$0xff]  ;;  %v466_v57 = vmax.f32 %v434_v51, 0.0  ;;  %v467_v58 = vmax.f32 %v435_v52, 0.0  ;;  %v551_v12 = vld [vmem:[#allocation2] sm:$0xff]  ;;  %v3884_v23 = vunpack.c.h.bf16 %v3899_v14  ;;  %v1079_v32 = vld [vmem:[#allocation2 + $0x32] sm:$0xff] }
  0x33   : > { %4060 = vmatmul.mubr.msk.bf16.gmra.mxu0 %vm472_vm1, %v4639_v10  ;;  %v468_v59 = vmax.f32 %v436_v53, 0.0  ;;  %v4682_v60 = vpack.c.bf16 %v625_v56, %v624_v49  ;;  %v626_v61 = vld [vmem:[#allocation2 + $0x139] sm:$0xff]  ;;  %v627_v62 = vld [vmem:[#allocation2 + $0x141] sm:$0xff]  ;;  %v399_v34 = vmul.f32 %v3883_v22, %v4515_v6  ;;  %v4714_v38 = vpack.c.bf16 %v1078_v28, %v1077_v27  ;;  %v555_v44 = vld [vmem:[#allocation2 + $0x30] sm:$0xff] }
  0x34   : > { %4063 = vmatprep.mubr.msk.bf16.mxu0 %vm472_vm1, %v4656_v30  ;;  %v469_v63 = vmax.f32 %v437_v55, 0.0  ;;  %v4684_v0 = vpack.c.bf16 %v627_v62, %v626_v61  ;;  %v612_v1 = vld [vmem:[#allocation2 + $0x91] sm:$0xff]  ;;  %545 = vst.msk [vmem:[#allocation2 + $0x151] sm:$0xff] %vm472_vm1, %v466_v57  ;;  %546 = vst.msk [vmem:[#allocation2 + $0x159] sm:$0xff] %vm472_vm1, %v467_v58  ;;  %v1075_v8 = vld [vmem:[#allocation2 + $0x2] sm:$0xff]  ;;  %v400_v35 = vmul.f32 %v3884_v23, %v4515_v6  ;;  %v1762_v6 = vsel %vm698_vm0, %v4612_v20, 0 }
  0x35   : > { %4076 = vmatmul.mubr.msk.bf16.gmra.mxu1 %vm472_vm1, %v4646_v19  ;;  %547 = vst.msk [vmem:[#allocation2 + $0x169] sm:$0xff] %vm472_vm1, %v468_v59  ;;  %v1107_v9 = vpack.c.bf16 %v1076_v2, %v1075_v8  ;;  %v552_v13 = vld [vmem:[#allocation2 + $0x8] sm:$0xff]  ;;  %v1080_v33 = vld [vmem:[#allocation2 + $0x3a] sm:$0xff]  ;;  %v438_v39 = vadd.f32 %v4522_v17, %v399_v34  ;;  %v1082_v52 = vld [vmem:[#allocation2 + $0x52] sm:$0xff]  ;;  %v1468_v53 = vsel %vm698_vm0, %v4607_v50, 0 }
  0x36   : > { %4079 = vmatprep.mubr.msk.bf16.mxu1 %vm472_vm1, %v4682_v60  ;;  %548 = vst.msk [vmem:[#allocation2 + $0x171] sm:$0xff] %vm472_vm1, %v469_v63  ;;  %v613_v3 = vld [vmem:[#allocation2 + $0x99] sm:$0xff]  ;;  %v583_v26 = vpack.c.bf16 %v552_v13, %v551_v12  ;;  %v439_v40 = vadd.f32 %v4522_v17, %v400_v35  ;;  %v4719_v43 = vpack.c.bf16 %v1080_v33, %v1079_v32  ;;  %v1081_v51 = vld [vmem:[#allocation2 + $0x4a] sm:$0xff]  ;;  %v1083_v55 = vld [vmem:[#allocation2 + $0x62] sm:$0xff] }
  0x37   : > { %v4694_v4 = vpack.c.bf16 %v613_v3, %v612_v1  ;;  %v553_v41 = vld [vmem:[#allocation2 + $0x18] sm:$0xff]  ;;  %v554_v42 = vld [vmem:[#allocation2 + $0x20] sm:$0xff]  ;;  %v470_v47 = vmax.f32 %v438_v39, 0.0  ;;  %v1084_v56 = vld [vmem:[#allocation2 + $0x6a] sm:$0xff]  ;;  %v4749_v58 = vpack.c.bf16 %v1082_v52, %v1081_v51 }
  0x38   : > { %v614_v5 = vld [vmem:[#allocation2 + $0xa9] sm:$0xff]  ;;  %v615_v7 = vld [vmem:[#allocation2 + $0xb1] sm:$0xff]  ;;  %v471_v48 = vmax.f32 %v439_v40, 0.0  ;;  %v4730_v17 = vpack.c.bf16 %v554_v42, %v553_v41  ;;  %v4753_v61 = vpack.c.bf16 %v1084_v56, %v1083_v55  ;;  %v559_v62 = vld [vmem:[#allocation2 + $0x60] sm:$0xff] }
  0x39   : > { %v4698_v11 = vpack.c.bf16 %v615_v7, %v614_v5  ;;  %v556_v45 = vld [vmem:[#allocation2 + $0x38] sm:$0xff]  ;;  %549 = vst.msk [vmem:[#allocation2 + $0x181] sm:$0xff] %vm472_vm1, %v470_v47  ;;  %v4745_v57 = vld [vmem:[%s5707_s1 + $0x14] sm:$0xf]  ;;  %v557_v50 = vld [vmem:[#allocation2 + $0x48] sm:$0xff] }
  0x3a   : > { %v4726_v49 = vld [vmem:[%s5707_s1 + $0x18] sm:$0xf]  ;;  %550 = vst.msk [vmem:[#allocation2 + $0x189] sm:$0xff] %vm472_vm1, %v471_v48  ;;  %v4736_v20 = vpack.c.bf16 %v556_v45, %v555_v44  ;;  %v558_v59 = vld [vmem:[#allocation2 + $0x50] sm:$0xff]  ;;  %v560_v63 = vld [vmem:[#allocation2 + $0x68] sm:$0xff] }
  0x3b   : > { %4064 = vmatmul.mubr.msk.bf16.gmra.mxu0 %vm472_vm1, %v4675_v54  ;;  %v628_v15 = vld [vmem:[#allocation2 + $0x151] sm:$0xff]  ;;  %v629_v16 = vld [vmem:[#allocation2 + $0x159] sm:$0xff]  ;;  %v4759_v1 = vpack.c.bf16 %v558_v59, %v557_v50  ;;  %v4763_v8 = vpack.c.bf16 %v560_v63, %v559_v62  ;;  %v1086_v3 = vld [vmem:[#allocation2 + $0x82] sm:$0xff] }
  0x3c   : > { %4067 = vmatprep.mubr.msk.bf16.mxu0 %vm472_vm1, %v4694_v4  ;;  %v630_v21 = vld [vmem:[#allocation2 + $0x169] sm:$0xff]  ;;  %v4703_v24 = vpack.c.bf16 %v629_v16, %v628_v15  ;;  %v1085_v2 = vld [vmem:[#allocation2 + $0x7a] sm:$0xff]  ;;  %v1087_v5 = vld [vmem:[#allocation2 + $0x92] sm:$0xff] }
  0x3d   : > { %4080 = vmatmul.mubr.msk.bf16.gmra.mxu1 %vm472_vm1, %v4684_v0  ;;  %v631_v25 = vld [vmem:[#allocation2 + $0x171] sm:$0xff]  ;;  %v1088_v7 = vld [vmem:[#allocation2 + $0x9a] sm:$0xff]  ;;  %v565_v32 = vld [vmem:[#allocation2 + $0xa8] sm:$0xff] }
  0x3e   : > { %v4706_v31 = vpack.c.bf16 %v631_v25, %v630_v21  ;;  %4083 = vmatprep.mubr.msk.bf16.mxu1 %vm472_vm1, %v4703_v24  ;;  %v561_v12 = vld [vmem:[#allocation2 + $0x78] sm:$0xff]  ;;  %v562_v13 = vld [vmem:[#allocation2 + $0x80] sm:$0xff]  ;;  %v4771_v14 = vpack.c.bf16 %v1088_v7, %v1087_v5  ;;  %v563_v15 = vld [vmem:[#allocation2 + $0x90] sm:$0xff] }
  0x3f   : > { %v564_v16 = vld [vmem:[#allocation2 + $0x98] sm:$0xff]  ;;  %v4775_v21 = vpack.c.bf16 %v562_v13, %v561_v12  ;;  %v1089_v23 = vld [vmem:[#allocation2 + $0xaa] sm:$0xff]  ;;  %v567_v35 = vld [vmem:[#allocation2 + $0xc0] sm:$0xff] }
  0x40   : > { %v4779_v22 = vpack.c.bf16 %v564_v16, %v563_v15  ;;  %v1090_v25 = vld [vmem:[#allocation2 + $0xb2] sm:$0xff]  ;;  %v1092_v27 = vld [vmem:[#allocation2 + $0xca] sm:$0xff]  ;;  %v1093_v42 = vld [vmem:[#allocation2 + $0xda] sm:$0xff] }
  0x41   : > { %v4783_v28 = vpack.c.bf16 %v1090_v25, %v1089_v23  ;;  %v566_v33 = vld [vmem:[#allocation2 + $0xb0] sm:$0xff]  ;;  %v568_v39 = vld [vmem:[#allocation2 + $0xc8] sm:$0xff]  ;;  %v1096_v45 = vld [vmem:[#allocation2 + $0xfa] sm:$0xff] }
  0x42   : > { %v4791_v40 = vpack.c.bf16 %v566_v33, %v565_v32  ;;  %v4795_v41 = vpack.c.bf16 %v568_v39, %v567_v35  ;;  %v1095_v44 = vld [vmem:[#allocation2 + $0xf2] sm:$0xff]  ;;  %v570_v51 = vld [vmem:[#allocation2 + $0xe0] sm:$0xff]  ;;  %v1097_v59 = vld [vmem:[#allocation2 + $0x10a] sm:$0xff] }
  0x43   : > { %4068 = vmatmul.mubr.msk.bf16.gmra.mxu0 %vm472_vm1, %v4698_v11  ;;  %v569_v48 = vld [vmem:[#allocation2 + $0xd8] sm:$0xff]  ;;  %v4803_v52 = vpack.c.bf16 %v1096_v45, %v1095_v44  ;;  %v1099_v63 = vld [vmem:[#allocation2 + $0x122] sm:$0xff]  ;;  %v574_v7 = vld [vmem:[#allocation2 + $0x110] sm:$0xff] }
  0x44   : > { %4123 = vmatprep.mubr.msk.bf16.mxu0 %vm472_vm1, %v1107_v9  ;;  %v4767_v9 = vpack.c.bf16 %v1086_v3, %v1085_v2  ;;  %v572_v55 = vld [vmem:[#allocation2 + $0xf8] sm:$0xff]  ;;  %v4807_v56 = vpack.c.bf16 %v570_v51, %v569_v48  ;;  %v1100_v2 = vld [vmem:[#allocation2 + $0x12a] sm:$0xff]  ;;  %v575_v13 = vld [vmem:[#allocation2 + $0x120] sm:$0xff] }
  0x45   : > { %4084 = vmatmul.mubr.msk.bf16.gmra.mxu1 %vm472_vm1, %v4706_v31  ;;  %v1098_v62 = vld [vmem:[#allocation2 + $0x112] sm:$0xff]  ;;  %v573_v5 = vld [vmem:[#allocation2 + $0x108] sm:$0xff]  ;;  %v4819_v12 = vpack.c.bf16 %v1100_v2, %v1099_v63  ;;  %v1101_v25 = vld [vmem:[#allocation2 + $0x13a] sm:$0xff]  ;;  %v2351_v2 = vsel %vm698_vm0, %v4726_v49, 0 }
  0x46   : > { %4089 = vmatprep.mubr.msk.bf16.mxu1 %vm472_vm1, %v583_v26  ;;  %v1091_v26 = vld [vmem:[#allocation2 + $0xc2] sm:$0xff]  ;;  %v4815_v3 = vpack.c.bf16 %v1098_v62, %v1097_v59  ;;  %v4823_v16 = vpack.c.bf16 %v574_v7, %v573_v5  ;;  %v1104_v32 = vld [vmem:[#allocation2 + $0x15a] sm:$0xff]  ;;  %v1105_v51 = vld [vmem:[#allocation2 + $0x16a] sm:$0xff] }
  0x47   : > { %v4787_v34 = vpack.c.bf16 %v1092_v27, %v1091_v26  ;;  %v576_v15 = vld [vmem:[#allocation2 + $0x128] sm:$0xff]  ;;  %v1103_v27 = vld [vmem:[#allocation2 + $0x152] sm:$0xff]  ;;  %v578_v39 = vld [vmem:[#allocation2 + $0x140] sm:$0xff] }
  0x48   : > { %v4827_v23 = vpack.c.bf16 %v576_v15, %v575_v13  ;;  %v1102_v26 = vld [vmem:[#allocation2 + $0x142] sm:$0xff]  ;;  %v577_v35 = vld [vmem:[#allocation2 + $0x138] sm:$0xff]  ;;  %v582_v62 = vld [vmem:[#allocation2 + $0x170] sm:$0xff] }
  0x49   : > { %v4831_v33 = vpack.c.bf16 %v1102_v26, %v1101_v25  ;;  %v580_v44 = vld [vmem:[#allocation2 + $0x158] sm:$0xff]  ;;  %v4839_v45 = vpack.c.bf16 %v578_v39, %v577_v35  ;;  %v581_v59 = vld [vmem:[#allocation2 + $0x168] sm:$0xff]  ;;  %v3736_v5 = vld [vmem:[%s5707_s1 + $0x20] sm:$0xf] }
  0x4a   : > { %v4853_v63 = vpack.c.bf16 %v582_v62, %v581_v59  ;;  %v2283_v7 = vld [vmem:[#allocation2 + $0x1a0] sm:$0xff]  ;;  %v2546_v35 = vld [vmem:[#allocation2 + $0x31] sm:$0xff] }
  0x4b   : > { %4124 = vmatmul.mubr.msk.bf16.vlgmr.msra.gmra.mxu0 %vm472_vm1, %v4714_v38  ;;  %v1987_v26 = vld [vmem:[#allocation2 + $0x182] sm:$0xff]  ;;  %v2547_v39 = vld [vmem:[#allocation2 + $0x39] sm:$0xff] }
  0x4c   : > { %4190 = vmatpush3.bf16.msra.mxu0 %v1762_v6  ;;  %4127 = vmatprep.mubr.msk.bf16.mxu0 %vm472_vm1, %v4719_v43  ;;  %v1094_v6 = vld [vmem:[#allocation2 + $0xe2] sm:$0xff] }
  0x4d   : > { %4368 = vmatprep.subr.msk.bf16.mxu0 %vm698_vm0, %v4726_v49  ;;  %4090 = vmatmul.mubr.msk.bf16.vlgmr.msra.gmra.mxu1 %vm472_vm1, %v4730_v17  ;;  %v4799_v47 = vpack.c.bf16 %v1094_v6, %v1093_v42  ;;  %v4835_v42 = vpack.c.bf16 %v1104_v32, %v1103_v27  ;;  %v579_v6 = vld [vmem:[#allocation2 + $0x150] sm:$0xff]  ;;  %v3719_v49 = vld [vmem:[%s5707_s1 + $0x1c] sm:$0xf] }
  0x4e   : > { %4156 = vmatpush3.bf16.msra.mxu1 %v1468_v53  ;;  %4093 = vmatprep.mubr.msk.bf16.mxu1 %vm472_vm1, %v4736_v20  ;;  %v571_v53 = vld [vmem:[#allocation2 + $0xf0] sm:$0xff]  ;;  %v4843_v48 = vpack.c.bf16 %v580_v44, %v579_v6 }
  0x4f   : > { %4367 = vmatprep.subr.msk.bf16.mxu1 %vm698_vm0, %v4745_v57  ;;  %v4811_v50 = vpack.c.bf16 %v572_v55, %v571_v53  ;;  %v1106_v53 = vld [vmem:[#allocation2 + $0x172] sm:$0xff]  ;;  %v1988_v27 = vld [vmem:[#allocation2 + $0x18a] sm:$0xff] }
  0x50   : > { %v4847_v55 = vpack.c.bf16 %v1106_v53, %v1105_v51  ;;  %v2578_v51 = vpack.c.bf16 %v2547_v39, %v2546_v35  ;;  %v2554_v35 = vld [vmem:[#allocation2 + $0x91] sm:$0xff]  ;;  %v2555_v39 = vld [vmem:[#allocation2 + $0x99] sm:$0xff] }
  0x53   : > { %4128 = vmatmul.mubr.msk.bf16.gmra.mxu0 %vm472_vm1, %v4749_v58 }
  0x54   : > { %4131 = vmatprep.mubr.msk.bf16.mxu0 %vm472_vm1, %v4753_v61 }
  0x55   : > { %4094 = vmatmul.mubr.msk.bf16.gmra.mxu1 %vm472_vm1, %v4759_v1 }
  0x56   : > { %4097 = vmatprep.mubr.msk.bf16.mxu1 %vm472_vm1, %v4763_v8 }
  0x5b   : > { %4132 = vmatmul.mubr.msk.bf16.gmra.mxu0 %vm472_vm1, %v4767_v9 }
  0x5c   : > { %4135 = vmatprep.mubr.msk.bf16.mxu0 %vm472_vm1, %v4771_v14 }
  0x5d   : > { %4098 = vmatmul.mubr.msk.bf16.gmra.mxu1 %vm472_vm1, %v4775_v21 }
  0x5e   : > { %4101 = vmatprep.mubr.msk.bf16.mxu1 %vm472_vm1, %v4779_v22 }
  0x63   : > { %4136 = vmatmul.mubr.msk.bf16.gmra.mxu0 %vm472_vm1, %v4783_v28 }
  0x64   : > { %4139 = vmatprep.mubr.msk.bf16.mxu0 %vm472_vm1, %v4787_v34 }
  0x65   : > { %4102 = vmatmul.mubr.msk.bf16.gmra.mxu1 %vm472_vm1, %v4791_v40 }
  0x66   : > { %4105 = vmatprep.mubr.msk.bf16.mxu1 %vm472_vm1, %v4795_v41 }
  0x6b   : > { %4140 = vmatmul.mubr.msk.bf16.gmra.mxu0 %vm472_vm1, %v4799_v47 }
  0x6c   : > { %4143 = vmatprep.mubr.msk.bf16.mxu0 %vm472_vm1, %v4803_v52 }
  0x6d   : > { %4106 = vmatmul.mubr.msk.bf16.gmra.mxu1 %vm472_vm1, %v4807_v56 }
  0x6e   : > { %4109 = vmatprep.mubr.msk.bf16.mxu1 %vm472_vm1, %v4811_v50 }
  0x73   : > { %4144 = vmatmul.mubr.msk.bf16.gmra.mxu0 %vm472_vm1, %v4815_v3 }
  0x74   : > { %4147 = vmatprep.mubr.msk.bf16.mxu0 %vm472_vm1, %v4819_v12 }
  0x75   : > { %4110 = vmatmul.mubr.msk.bf16.gmra.mxu1 %vm472_vm1, %v4823_v16 }
  0x76   : > { %4113 = vmatprep.mubr.msk.bf16.mxu1 %vm472_vm1, %v4827_v23 }
  0x7b   : > { %4148 = vmatmul.mubr.msk.bf16.gmra.mxu0 %vm472_vm1, %v4831_v33 }
  0x7c   : > { %4151 = vmatprep.mubr.msk.bf16.mxu0 %vm472_vm1, %v4835_v42 }
  0x7d   : > { %4114 = vmatmul.mubr.msk.bf16.gmra.mxu1 %vm472_vm1, %v4839_v45 }
  0x7e   : > { %4117 = vmatprep.mubr.msk.bf16.mxu1 %vm472_vm1, %v4843_v48 }
  0x83   : > { %4152 = vmatmul.mubr.msk.bf16.gmra.mxu0 %vm472_vm1, %v4847_v55 }
  0x84   : > { %4191 = vmatprep.mubr.msk.bf16.mxu0 %vm472_vm1, %v4579_v29  ;;  %v2056_v29 = vsel %vm698_vm0, %v4745_v57, 0 }
  0x85   : > { %4118 = vmatmul.mubr.msk.bf16.gmra.mxu1 %vm472_vm1, %v4853_v63 }
  0x86   : > { %4157 = vmatprep.mubr.msk.bf16.mxu1 %vm472_vm1, %v4730_v17 }
  0x8b   : > { %4192 = vmatmul.mubr.msk.bf16.vlgmr.msra.gmra.mxu0 %vm472_vm1, %v4599_v46 }
  0x8c   : > { %4258 = vmatpush3.bf16.msra.mxu0 %v2351_v2  ;;  %4195 = vmatprep.mubr.msk.bf16.mxu0 %vm472_vm1, %v4639_v10  ;;  %v1399_v10 = vld [vmem:[#allocation2 + $0x180] sm:$0xff]  ;;  %v2549_v2 = vld [vmem:[#allocation2 + $0x51] sm:$0xff] }
  0x8d   : > { %4370 = vmatprep.subr.msk.bf16.mxu0 %vm698_vm0, %v3736_v5  ;;  %4158 = vmatmul.mubr.msk.bf16.vlgmr.msra.gmra.mxu1 %vm472_vm1, %v4736_v20 }
  0x8e   : > { %4224 = vmatpush3.bf16.msra.mxu1 %v2056_v29  ;;  %4161 = vmatprep.mubr.msk.bf16.mxu1 %vm472_vm1, %v4759_v1 }
  0x8f   : > { %4369 = vmatprep.subr.msk.bf16.mxu1 %vm698_vm0, %v3719_v49 }
  0x93   : > { %4196 = vmatmul.mubr.msk.bf16.gmra.mxu0 %vm472_vm1, %v4656_v30  ;;  %v2939_v30 = vsel %vm698_vm0, %v3736_v5, 0 }
  0x94   : > { %4199 = vmatprep.mubr.msk.bf16.mxu0 %vm472_vm1, %v4675_v54  ;;  %v2645_v54 = vsel %vm698_vm0, %v3719_v49, 0  ;;  %v2550_v49 = vld [vmem:[#allocation2 + $0x61] sm:$0xff] }
  0x95   : > { %4162 = vmatmul.mubr.msk.bf16.gmra.mxu1 %vm472_vm1, %v4763_v8 }
  0x96   : > { %4165 = vmatprep.mubr.msk.bf16.mxu1 %vm472_vm1, %v4775_v21 }
  0x9b   : > { %4200 = vmatmul.mubr.msk.bf16.gmra.mxu0 %vm472_vm1, %v4694_v4 }
  0x9c   : > { %4203 = vmatprep.mubr.msk.bf16.mxu0 %vm472_vm1, %v4698_v11 }
  0x9d   : > { %4166 = vmatmul.mubr.msk.bf16.gmra.mxu1 %vm472_vm1, %v4779_v22 }
  0x9e   : > { %4169 = vmatprep.mubr.msk.bf16.mxu1 %vm472_vm1, %v4791_v40 }
  0xa3   : > { %4204 = vmatmul.mubr.msk.bf16.gmra.mxu0 %vm472_vm1, %v4585_v36  ;;  %v1693_v36 = vld [vmem:[#allocation2 + $0x181] sm:$0xff] }
  0xa4   : > { %4207 = vmatprep.mubr.msk.bf16.mxu0 %vm472_vm1, %v4587_v37  ;;  %v1694_v37 = vld [vmem:[#allocation2 + $0x189] sm:$0xff] }
  0xa5   : > { %4170 = vmatmul.mubr.msk.bf16.gmra.mxu1 %vm472_vm1, %v4795_v41  ;;  %v4927_v46 = vpack.c.bf16 %v1694_v37, %v1693_v36 }
  0xa6   : > { %4173 = vmatprep.mubr.msk.bf16.mxu1 %vm472_vm1, %v4807_v56 }
  0xab   : > { %4208 = vmatmul.mubr.msk.bf16.gmra.mxu0 %vm472_vm1, %v4644_v18  ;;  %v1400_v18 = vld [vmem:[#allocation2 + $0x188] sm:$0xff] }
  0xac   : > { %4211 = vmatprep.mubr.msk.bf16.mxu0 %vm472_vm1, %v4646_v19  ;;  %v1416_v19 = vpack.c.bf16 %v1400_v18, %v1399_v10 }
  0xad   : > { %4174 = vmatmul.mubr.msk.bf16.gmra.mxu1 %vm472_vm1, %v4811_v50 }
  0xae   : > { %4177 = vmatprep.mubr.msk.bf16.mxu1 %vm472_vm1, %v4823_v16 }
  0xb3   : > { %4212 = vmatmul.mubr.msk.bf16.gmra.mxu0 %vm472_vm1, %v4682_v60 }
  0xb4   : > { %4215 = vmatprep.mubr.msk.bf16.mxu0 %vm472_vm1, %v4684_v0 }
  0xb5   : > { %4178 = vmatmul.mubr.msk.bf16.gmra.mxu1 %vm472_vm1, %v4827_v23 }
  0xb6   : > { %4181 = vmatprep.mubr.msk.bf16.mxu1 %vm472_vm1, %v4839_v45 }
  0xbb   : > { %4216 = vmatmul.mubr.msk.bf16.gmra.mxu0 %vm472_vm1, %v4703_v24 }
  0xbc   : > { %4219 = vmatprep.mubr.msk.bf16.mxu0 %vm472_vm1, %v4706_v31 }
  0xbd   : > { %4182 = vmatmul.mubr.msk.bf16.gmra.mxu1 %vm472_vm1, %v4843_v48 }
  0xbe   : > { %4185 = vmatprep.mubr.msk.bf16.mxu1 %vm472_vm1, %v4853_v63 }
  0xc3   : > { %4220 = vmatmul.mubr.msk.bf16.gmra.mxu0 %vm472_vm1, %v4927_v46 }
  0xc4   : > { %4259 = vmatprep.mubr.msk.bf16.mxu0 %vm472_vm1, %v4736_v20 }
  0xc5   : > { %4186 = vmatmul.mubr.msk.bf16.gmra.mxu1 %vm472_vm1, %v1416_v19 }
  0xc6   : > { %4225 = vmatprep.mubr.msk.bf16.mxu1 %vm472_vm1, %v4714_v38 }
  0xcb   : > { %4260 = vmatmul.mubr.msk.bf16.vlgmr.msra.gmra.mxu0 %vm472_vm1, %v4759_v1 }
  0xcc   : > { %4326 = vmatpush3.bf16.msra.mxu0 %v2939_v30  ;;  %4263 = vmatprep.mubr.msk.bf16.mxu0 %vm472_vm1, %v4763_v8 }
  0xcd   : > { %4226 = vmatmul.mubr.msk.bf16.vlgmr.msra.gmra.mxu1 %vm472_vm1, %v4719_v43 }
  0xce   : > { %4292 = vmatpush3.bf16.msra.mxu1 %v2645_v54  ;;  %4229 = vmatprep.mubr.msk.bf16.mxu1 %vm472_vm1, %v4749_v58 }
  0xd3   : > { %4264 = vmatmul.mubr.msk.bf16.gmra.mxu0 %vm472_vm1, %v4775_v21 }
  0xd4   : > { %4267 = vmatprep.mubr.msk.bf16.mxu0 %vm472_vm1, %v4779_v22 }
  0xd5   : > { %4230 = vmatmul.mubr.msk.bf16.gmra.mxu1 %vm472_vm1, %v4753_v61 }
  0xd6   : > { %4233 = vmatprep.mubr.msk.bf16.mxu1 %vm472_vm1, %v4767_v9 }
  0xdb   : > { %4268 = vmatmul.mubr.msk.bf16.gmra.mxu0 %vm472_vm1, %v4791_v40 }
  0xdc   : > { %4271 = vmatprep.mubr.msk.bf16.mxu0 %vm472_vm1, %v4795_v41 }
  0xdd   : > { %4234 = vmatmul.mubr.msk.bf16.gmra.mxu1 %vm472_vm1, %v4771_v14 }
  0xde   : > { %4237 = vmatprep.mubr.msk.bf16.mxu1 %vm472_vm1, %v4783_v28 }
  0xe3   : > { %4272 = vmatmul.mubr.msk.bf16.gmra.mxu0 %vm472_vm1, %v4807_v56 }
  0xe4   : > { %4275 = vmatprep.mubr.msk.bf16.mxu0 %vm472_vm1, %v4811_v50  ;;  %v2282_v50 = vld [vmem:[#allocation2 + $0x198] sm:$0xff] }
  0xe5   : > { %4238 = vmatmul.mubr.msk.bf16.gmra.mxu1 %vm472_vm1, %v4787_v34 }
  0xe6   : > { %4241 = vmatprep.mubr.msk.bf16.mxu1 %vm472_vm1, %v4799_v47 }
  0xeb   : > { %v4972_v60 = vpop.f32.mrf.mxu0  ;;  %4276 = vmatmul.mubr.msk.bf16.gmra.mxu0 %vm472_vm1, %v4823_v16 }
  0xec   : > { %4279 = vmatprep.mubr.msk.bf16.mxu0 %vm472_vm1, %v4827_v23  ;;  %v2299_v23 = vpack.c.bf16 %v2283_v7, %v2282_v50 }
  0xed   : > { %v4978_v0 = vpop.f32.mrf.mxu1  ;;  %v4980_v4 = vpop.f32.mrf.mxu0  ;;  %4242 = vmatmul.mubr.msk.bf16.gmra.mxu1 %vm472_vm1, %v4803_v52 }
  0xee   : > { %4245 = vmatprep.mubr.msk.bf16.mxu1 %vm472_vm1, %v4815_v3 }
  0xef   : > { %v4984_v11 = vpop.f32.mrf.mxu1  ;;  %v4986_v24 = vpop.f32.mrf.mxu0 }
  0xf1   : > { %v4990_v31 = vpop.f32.mrf.mxu1  ;;  %v4992_v38 = vpop.f32.mrf.mxu0 }
  0xf3   : > { %v4994_v17 = vpop.f32.mrf.mxu1  ;;  %v4996_v20 = vpop.f32.mrf.mxu0  ;;  %4280 = vmatmul.mubr.msk.bf16.gmra.mxu0 %vm472_vm1, %v4839_v45  ;;  %v5044_v45 = vpack.c.bf16 %v1988_v27, %v1987_v26  ;;  %v2553_v26 = vld [vmem:[#allocation2 + $0x81] sm:$0xff] }
  0xf4   : > { %4283 = vmatprep.mubr.msk.bf16.mxu0 %vm472_vm1, %v4843_v48 }
  0xf5   : > { %v5002_v57 = vpop.f32.mrf.mxu1  ;;  %v5004_v1 = vpop.f32.mrf.mxu0  ;;  %4246 = vmatmul.mubr.msk.bf16.gmra.mxu1 %vm472_vm1, %v4819_v12 }
  0xf6   : > { %4249 = vmatprep.mubr.msk.bf16.mxu1 %vm472_vm1, %v4831_v33 }
  0xf7   : > { %v5008_v8 = vpop.f32.mrf.mxu1  ;;  %v5010_v21 = vpop.f32.mrf.mxu0 }
  0xf9   : > { %v5014_v22 = vpop.f32.mrf.mxu1  ;;  %v5016_v40 = vpop.f32.mrf.mxu0 }
  0xfb   : > { %v5018_v41 = vpop.f32.mrf.mxu1  ;;  %v5020_v56 = vpop.f32.mrf.mxu0  ;;  %4284 = vmatmul.mubr.msk.bf16.gmra.mxu0 %vm472_vm1, %v4853_v63  ;;  %v2548_v63 = vld [vmem:[#allocation2 + $0x49] sm:$0xff] }
  0xfc   : > { %4287 = vmatprep.mubr.msk.bf16.mxu0 %vm472_vm1, %v1416_v19  ;;  %v2579_v10 = vpack.c.bf16 %v2549_v2, %v2548_v63 }
  0xfd   : > { %v5025_v13 = vpop.f32.mrf.mxu0  ;;  %v5027_v15 = vpop.f32.mrf.mxu1  ;;  %4250 = vmatmul.mubr.msk.bf16.gmra.mxu1 %vm472_vm1, %v4835_v42 }
  0xfe   : > { %4253 = vmatprep.mubr.msk.bf16.mxu1 %vm472_vm1, %v4847_v55 }
  0xff   : > { %v5031_v16 = vpop.f32.mrf.mxu0  ;;  %v5033_v25 = vpop.f32.mrf.mxu1 }
 0x101   : > { %v5037_v32 = vpop.f32.mrf.mxu0  ;;  %v5039_v6 = vpop.f32.mrf.mxu1 }
 0x103   : > { %v5041_v44 = vpop.f32.mrf.mxu0  ;;  %4288 = vmatmul.mubr.msk.bf16.gmra.mxu0 %vm472_vm1, %v2299_v23  ;;  %v5046_v48 = vpop.f32.mrf.mxu1  ;;  %v2552_v23 = vld [vmem:[#allocation2 + $0x79] sm:$0xff] }
 0x104   : > { %4327 = vmatprep.mubr.msk.bf16.mxu0 %vm472_vm1, %v4719_v43  ;;  %v2551_v43 = vld [vmem:[#allocation2 + $0x69] sm:$0xff] }
 0x105   : > { %v5050_v53 = vpop.f32.mrf.mxu0  ;;  %v5052_v59 = vpop.f32.mrf.mxu1  ;;  %4254 = vmatmul.mubr.msk.bf16.gmra.mxu1 %vm472_vm1, %v5044_v45  ;;  %v2580_v18 = vpack.c.bf16 %v2551_v43, %v2550_v49  ;;  %v2581_v49 = vpack.c.bf16 %v2553_v26, %v2552_v23  ;;  %v2582_v43 = vpack.c.bf16 %v2555_v39, %v2554_v35  ;;  %v2557_v23 = vld [vmem:[#allocation2 + $0xb1] sm:$0xff]  ;;  %v2558_v35 = vld [vmem:[#allocation2 + $0xc1] sm:$0xff]  ;;  %v2559_v39 = vld [vmem:[#allocation2 + $0xc9] sm:$0xff] }
 0x106   : > { %4293 = vmatprep.mubr.msk.bf16.mxu1 %vm472_vm1, %v2578_v51 }
 0x107   : > { %v5056_v62 = vpop.f32.mrf.mxu0  ;;  %v5059_v5 = vpop.f32.mrf.mxu1 }
 0x109   : > { %v5061_v29 = vpop.f32.mrf.mxu0  ;;  %v5063_v36 = vpop.f32.mrf.mxu1 }
 0x10b   : > { %v4125_v37 = vpop.f32.mrf.mxu0  ;;  %4328 = vmatmul.mubr.msk.bf16.vlgmr.msra.gmra.mxu0 %vm472_vm1, %v4749_v58  ;;  %v5069_v19 = vpop.f32.mrf.mxu1 }
 0x10c   : > { %4331 = vmatprep.mubr.msk.bf16.mxu0 %vm472_vm1, %v4753_v61 }
 0x10d   : > { %v1210_v30 = vpop.f32.mrf.mxu0  ;;  %v4091_v54 = vpop.f32.mrf.mxu1  ;;  %4294 = vmatmul.mubr.msk.bf16.vlgmr.msra.gmra.mxu1 %vm472_vm1, %v2579_v10 }
 0x10e   : > { %v957_v7 = vadd.f32 %v4091_v54, %v4972_v60  ;;  %4297 = vmatprep.mubr.msk.bf16.mxu1 %vm472_vm1, %v2580_v18 }
 0x10f   : > { %v4126_v50 = vpop.f32.mrf.mxu0  ;;  %v948_v27 = vpop.f32.mrf.mxu1 }
 0x110   : > { %v949_v61 = vadd.f32 %v948_v27, %v4980_v4  ;;  %v5075_v51 = vadd.f32 %v4125_v37, %v957_v7 }
 0x111   : > { %v1213_v58 = vpop.f32.mrf.mxu0  ;;  %v4092_v63 = vpop.f32.mrf.mxu1 }
 0x112   : > { %v960_v60 = vadd.f32 %v4092_v63, %v4986_v24  ;;  %v5082_v10 = vadd.f32 %v1210_v30, %v949_v61  ;;  %v2556_v24 = vld [vmem:[#allocation2 + $0xa9] sm:$0xff] }
 0x113   : > { %v4129_v2 = vpop.f32.mrf.mxu0  ;;  %4332 = vmatmul.mubr.msk.bf16.gmra.mxu0 %vm472_vm1, %v4767_v9  ;;  %v951_v18 = vpop.f32.mrf.mxu1 }
 0x114   : > { %4335 = vmatprep.mubr.msk.bf16.mxu0 %vm472_vm1, %v4771_v14  ;;  %v952_v4 = vadd.f32 %v951_v18, %v4992_v38  ;;  %v5085_v37 = vadd.f32 %v4126_v50, %v960_v60 }
 0x115   : > { %v1226_v54 = vpop.f32.mrf.mxu0  ;;  %v4095_v7 = vpop.f32.mrf.mxu1  ;;  %4298 = vmatmul.mubr.msk.bf16.gmra.mxu1 %vm472_vm1, %v2581_v49 }
 0x116   : > { %v973_v9 = vadd.f32 %v4095_v7, %v4996_v20  ;;  %4301 = vmatprep.mubr.msk.bf16.mxu1 %vm472_vm1, %v2582_v43  ;;  %v5090_v14 = vadd.f32 %v1213_v58, %v952_v4  ;;  %v2583_v20 = vpack.c.bf16 %v2557_v23, %v2556_v24  ;;  %v2584_v58 = vpack.c.bf16 %v2559_v39, %v2558_v35  ;;  %v2562_v23 = vld [vmem:[#allocation2 + $0xf1] sm:$0xff] }
 0x117   : > { %v4130_v27 = vpop.f32.mrf.mxu0  ;;  %v964_v30 = vpop.f32.mrf.mxu1 }
 0x118   : > { %v965_v38 = vadd.f32 %v964_v30, %v5004_v1  ;;  %v5093_v50 = vadd.f32 %v4129_v2, %v973_v9  ;;  %v2561_v9 = vld [vmem:[#allocation2 + $0xe1] sm:$0xff]  ;;  %v2563_v30 = vld [vmem:[#allocation2 + $0xf9] sm:$0xff] }
 0x119   : > { %v1229_v26 = vpop.f32.mrf.mxu0  ;;  %v4096_v61 = vpop.f32.mrf.mxu1 }
 0x11a   : > { %v976_v49 = vadd.f32 %v4096_v61, %v5010_v21  ;;  %v5100_v60 = vadd.f32 %v1226_v54, %v965_v38  ;;  %v2560_v21 = vld [vmem:[#allocation2 + $0xd9] sm:$0xff] }
 0x11b   : > { %v4133_v63 = vpop.f32.mrf.mxu0  ;;  %4336 = vmatmul.mubr.msk.bf16.gmra.mxu0 %vm472_vm1, %v4783_v28  ;;  %v967_v43 = vpop.f32.mrf.mxu1 }
 0x11c   : > { %4339 = vmatprep.mubr.msk.bf16.mxu0 %vm472_vm1, %v4787_v34  ;;  %v968_v1 = vadd.f32 %v967_v43, %v5016_v40  ;;  %v5103_v2 = vadd.f32 %v4130_v27, %v976_v49 }
 0x11d   : > { %v1242_v18 = vpop.f32.mrf.mxu0  ;;  %v4099_v4 = vpop.f32.mrf.mxu1  ;;  %4302 = vmatmul.mubr.msk.bf16.gmra.mxu1 %vm472_vm1, %v2583_v20 }
 0x11e   : > { %v989_v28 = vadd.f32 %v4099_v4, %v5020_v56  ;;  %4305 = vmatprep.mubr.msk.bf16.mxu1 %vm472_vm1, %v2584_v58  ;;  %v5108_v34 = vadd.f32 %v1229_v26, %v968_v1  ;;  %v2585_v56 = vpack.c.bf16 %v2561_v9, %v2560_v21  ;;  %v2586_v26 = vpack.c.bf16 %v2563_v30, %v2562_v23  ;;  %v2565_v1 = vld [vmem:[#allocation2 + $0x111] sm:$0xff]  ;;  %v2567_v21 = vld [vmem:[#allocation2 + $0x129] sm:$0xff] }
 0x11f   : > { %v4134_v7 = vpop.f32.mrf.mxu0  ;;  %v980_v54 = vpop.f32.mrf.mxu1 }
 0x120   : > { %v981_v40 = vadd.f32 %v980_v54, %v5025_v13  ;;  %v5111_v27 = vadd.f32 %v4133_v63, %v989_v28  ;;  %v2566_v28 = vld [vmem:[#allocation2 + $0x121] sm:$0xff] }
 0x121   : > { %v1245_v24 = vpop.f32.mrf.mxu0  ;;  %v4100_v35 = vpop.f32.mrf.mxu1 }
 0x122   : > { %v992_v38 = vadd.f32 %v4100_v35, %v5031_v16  ;;  %v5118_v61 = vadd.f32 %v1242_v18, %v981_v40  ;;  %v2564_v16 = vld [vmem:[#allocation2 + $0x109] sm:$0xff] }
 0x123   : > { %v4137_v39 = vpop.f32.mrf.mxu0  ;;  %4340 = vmatmul.mubr.msk.bf16.gmra.mxu0 %vm472_vm1, %v4799_v47  ;;  %v983_v20 = vpop.f32.mrf.mxu1 }
 0x124   : > { %4343 = vmatprep.mubr.msk.bf16.mxu0 %vm472_vm1, %v4803_v52  ;;  %v984_v13 = vadd.f32 %v983_v20, %v5037_v32  ;;  %v5121_v63 = vadd.f32 %v4134_v7, %v992_v38 }
 0x125   : > { %v1258_v49 = vpop.f32.mrf.mxu0  ;;  %v4103_v58 = vpop.f32.mrf.mxu1  ;;  %4306 = vmatmul.mubr.msk.bf16.gmra.mxu1 %vm472_vm1, %v2585_v56 }
 0x126   : > { %v1005_v47 = vadd.f32 %v4103_v58, %v5041_v44  ;;  %4309 = vmatprep.mubr.msk.bf16.mxu1 %vm472_vm1, %v2586_v26  ;;  %v5126_v52 = vadd.f32 %v1245_v24, %v984_v13  ;;  %v2587_v44 = vpack.c.bf16 %v2565_v1, %v2564_v16  ;;  %v2588_v24 = vpack.c.bf16 %v2567_v21, %v2566_v28  ;;  %v2569_v26 = vld [vmem:[#allocation2 + $0x141] sm:$0xff]  ;;  %v2570_v13 = vld [vmem:[#allocation2 + $0x151] sm:$0xff]  ;;  %v2571_v58 = vld [vmem:[#allocation2 + $0x159] sm:$0xff] }
 0x127   : > { %v4138_v43 = vpop.f32.mrf.mxu0  ;;  %v996_v18 = vpop.f32.mrf.mxu1 }
 0x128   : > { %v997_v32 = vadd.f32 %v996_v18, %v5050_v53  ;;  %v5129_v7 = vadd.f32 %v4137_v39, %v1005_v47  ;;  %v2590_v18 = vpack.c.bf16 %v2571_v58, %v2570_v13 }
 0x129   : > { %v1261_v4 = vpop.f32.mrf.mxu0  ;;  %v4104_v9 = vpop.f32.mrf.mxu1 }
 0x12a   : > { %v1008_v23 = vadd.f32 %v4104_v9, %v5056_v62  ;;  %v5136_v30 = vadd.f32 %v1258_v49, %v997_v32  ;;  %v2568_v62 = vld [vmem:[#allocation2 + $0x139] sm:$0xff] }
 0x12b   : > { %v4141_v54 = vpop.f32.mrf.mxu0  ;;  %4344 = vmatmul.mubr.msk.bf16.gmra.mxu0 %vm472_vm1, %v4815_v3  ;;  %v999_v40 = vpop.f32.mrf.mxu1 }
 0x12c   : > { %4347 = vmatprep.mubr.msk.bf16.mxu0 %vm472_vm1, %v4819_v12  ;;  %v1000_v53 = vadd.f32 %v999_v40, %v5061_v29  ;;  %v5139_v39 = vadd.f32 %v4138_v43, %v1008_v23 }
 0x12d   : > { %v1274_v35 = vpop.f32.mrf.mxu0  ;;  %v4107_v56 = vpop.f32.mrf.mxu1  ;;  %4310 = vmatmul.mubr.msk.bf16.gmra.mxu1 %vm472_vm1, %v2587_v44  ;;  %v2573_v44 = vld [vmem:[#allocation2 + $0x171] sm:$0xff] }
 0x12e   : > { %v1021_v3 = vadd.f32 %v4107_v56, %v4978_v0  ;;  %4313 = vmatprep.mubr.msk.bf16.mxu1 %vm472_vm1, %v2588_v24  ;;  %v5144_v12 = vadd.f32 %v1261_v4, %v1000_v53  ;;  %v2589_v0 = vpack.c.bf16 %v2569_v26, %v2568_v62 }
 0x12f   : > { %v4142_v38 = vpop.f32.mrf.mxu0  ;;  %v1012_v20 = vpop.f32.mrf.mxu1 }
 0x130   : > { %v1013_v29 = vadd.f32 %v1012_v20, %v4984_v11  ;;  %v5147_v43 = vadd.f32 %v4141_v54, %v1021_v3  ;;  %v2871_v3 = vld [vmem:[#allocation2 + $0x1a2] sm:$0xff] }
 0x131   : > { %v1277_v49 = vpop.f32.mrf.mxu0  ;;  %v4108_v47 = vpop.f32.mrf.mxu1 }
 0x132   : > { %v1024_v1 = vadd.f32 %v4108_v47, %v4990_v31  ;;  %v5154_v4 = vadd.f32 %v1274_v35, %v1013_v29  ;;  %v2572_v31 = vld [vmem:[#allocation2 + $0x169] sm:$0xff]  ;;  %v2577_v29 = vld [vmem:[#allocation2 + $0x1a1] sm:$0xff] }
 0x133   : > { %v4145_v16 = vpop.f32.mrf.mxu0  ;;  %4348 = vmatmul.mubr.msk.bf16.gmra.mxu0 %vm472_vm1, %v4831_v33  ;;  %v1015_v28 = vpop.f32.mrf.mxu1  ;;  %v2591_v56 = vpack.c.bf16 %v2573_v44, %v2572_v31 }
 0x134   : > { %4351 = vmatprep.mubr.msk.bf16.mxu0 %vm472_vm1, %v4835_v42  ;;  %v1016_v11 = vadd.f32 %v1015_v28, %v4994_v17  ;;  %v5157_v32 = vadd.f32 %v4142_v38, %v1024_v1  ;;  %v2870_v38 = vld [vmem:[#allocation2 + $0x19a] sm:$0xff] }
 0x135   : > { %v1290_v21 = vpop.f32.mrf.mxu0  ;;  %v4111_v9 = vpop.f32.mrf.mxu1  ;;  %4314 = vmatmul.mubr.msk.bf16.gmra.mxu1 %vm472_vm1, %v2589_v0  ;;  %v2887_v58 = vpack.c.bf16 %v2871_v3, %v2870_v38 }
 0x136   : > { %v1037_v33 = vadd.f32 %v4111_v9, %v5002_v57  ;;  %4317 = vmatprep.mubr.msk.bf16.mxu1 %vm472_vm1, %v2590_v18  ;;  %v5162_v42 = vadd.f32 %v1277_v49, %v1016_v11 }
 0x137   : > { %v4146_v54 = vpop.f32.mrf.mxu0  ;;  %v1028_v23 = vpop.f32.mrf.mxu1 }
 0x138   : > { %v1029_v40 = vadd.f32 %v1028_v23, %v5008_v8  ;;  %v5165_v35 = vadd.f32 %v4145_v16, %v1037_v33 }
 0x139   : > { %v1293_v24 = vpop.f32.mrf.mxu0  ;;  %v4112_v17 = vpop.f32.mrf.mxu1 }
 0x13a   : > { %v1040_v57 = vadd.f32 %v4112_v17, %v5014_v22  ;;  %v5172_v62 = vadd.f32 %v1290_v21, %v1029_v40 }
 0x13b   : > { %v4149_v53 = vpop.f32.mrf.mxu0  ;;  %4352 = vmatmul.mubr.msk.bf16.gmra.mxu0 %vm472_vm1, %v4847_v55  ;;  %v1031_v26 = vpop.f32.mrf.mxu1 }
 0x13c   : > { %4355 = vmatprep.mubr.msk.bf16.mxu0 %vm472_vm1, %v5044_v45  ;;  %v1032_v8 = vadd.f32 %v1031_v26, %v5018_v41  ;;  %v5175_v49 = vadd.f32 %v4146_v54, %v1040_v57  ;;  %v2576_v45 = vld [vmem:[#allocation2 + $0x199] sm:$0xff] }
 0x13d   : > { %v1306_v20 = vpop.f32.mrf.mxu0  ;;  %v4115_v13 = vpop.f32.mrf.mxu1  ;;  %4318 = vmatmul.mubr.msk.bf16.gmra.mxu1 %vm472_vm1, %v2591_v56  ;;  %v2593_v21 = vpack.c.bf16 %v2577_v29, %v2576_v45 }
 0x13e   : > { %v1053_v22 = vadd.f32 %v4115_v13, %v5027_v15  ;;  %4321 = vmatprep.mubr.msk.bf16.mxu1 %vm472_vm1, %v4927_v46  ;;  %v5181_v47 = vadd.f32 %v1293_v24, %v1032_v8 }
 0x13f   : > { %v4150_v55 = vpop.f32.mrf.mxu0  ;;  %v1044_v16 = vpop.f32.mrf.mxu1 }
 0x140   : > { %v1045_v41 = vadd.f32 %v1044_v16, %v5033_v25  ;;  %v5184_v1 = vadd.f32 %v4149_v53, %v1053_v22 }
 0x141   : > { %v1309_v0 = vpop.f32.mrf.mxu0  ;;  %v4116_v18 = vpop.f32.mrf.mxu1 }
 0x142   : > { %v1056_v15 = vadd.f32 %v4116_v18, %v5039_v6  ;;  %v5188_v11 = vadd.f32 %v1306_v20, %v1045_v41 }
 0x143   : > { %v4153_v28 = vpop.f32.mrf.mxu0  ;;  %4356 = vmatmul.mubr.msk.bf16.gmra.mxu0 %vm472_vm1, %v2887_v58  ;;  %v1047_v46 = vpop.f32.mrf.mxu1 }
 0x144   : > { %v1048_v54 = vadd.f32 %v1047_v46, %v5046_v48  ;;  %v5191_v33 = vadd.f32 %v4150_v55, %v1056_v15 }
 0x145   : > { %v1322_v9 = vpop.f32.mrf.mxu0  ;;  %v4119_v31 = vpop.f32.mrf.mxu1  ;;  %4322 = vmatmul.mubr.msk.bf16.gmra.mxu1 %vm472_vm1, %v2593_v21 }
 0x146   : > { %v1069_v44 = vadd.f32 %v4119_v31, %v5052_v59  ;;  %v5195_v23 = vadd.f32 %v1309_v0, %v1048_v54 }
 0x147   : > { %v4154_v25 = vpop.f32.mrf.mxu0  ;;  %v1060_v24 = vpop.f32.mrf.mxu1 }
 0x148   : > { %v1061_v6 = vadd.f32 %v1060_v24, %v5059_v5  ;;  %v5198_v17 = vadd.f32 %v4153_v28, %v1069_v44 }
 0x149   : > { %v1325_v40 = vpop.f32.mrf.mxu0  ;;  %v4120_v53 = vpop.f32.mrf.mxu1 }
 0x14a   : > { %v1072_v48 = vadd.f32 %v4120_v53, %v5063_v36  ;;  %v5201_v57 = vadd.f32 %v1322_v9, %v1061_v6 }
 0x14b   : > { %v4193_v56 = vpop.f32.mrf.mxu0  ;;  %v1063_v38 = vpop.f32.mrf.mxu1 }
 0x14c   : > { %v1064_v26 = vadd.f32 %v1063_v38, %v5069_v19  ;;  %v5204_v20 = vadd.f32 %v4154_v25, %v1072_v48 }
 0x14d   : > { %v1798_v3 = vpop.f32.mrf.mxu0  ;;  %v4159_v59 = vpop.f32.mrf.mxu1 }
 0x14e   : > { %v1633_v13 = vadd.f32 %v4159_v59, %v5075_v51  ;;  %v5207_v55 = vadd.f32 %v1325_v40, %v1064_v26 }
 0x14f   : > { %v4194_v8 = vpop.f32.mrf.mxu0  ;;  %v1504_v5 = vpop.f32.mrf.mxu1 }
 0x150   : > { %v1631_v22 = vadd.f32 %v1504_v5, %v5082_v10  ;;  %v5210_v45 = vadd.f32 %v4193_v56, %v1633_v13 }
 0x151   : > { %v1801_v58 = vpop.f32.mrf.mxu0  ;;  %v4160_v36 = vpop.f32.mrf.mxu1 }
 0x152   : > { %v1634_v16 = vadd.f32 %v4160_v36, %v5085_v37  ;;  %v5213_v0 = vadd.f32 %v1798_v3, %v1631_v22 }
 0x153   : > { %v4197_v29 = vpop.f32.mrf.mxu0  ;;  %v1507_v19 = vpop.f32.mrf.mxu1 }
 0x154   : > { %v1632_v18 = vadd.f32 %v1507_v19, %v5090_v14  ;;  %v5216_v28 = vadd.f32 %v4194_v8, %v1634_v16 }
 0x155   : > { %v1814_v41 = vpop.f32.mrf.mxu0  ;;  %v4163_v51 = vpop.f32.mrf.mxu1 }
 0x156   : > { %v1637_v15 = vadd.f32 %v4163_v51, %v5093_v50  ;;  %v5219_v46 = vadd.f32 %v1801_v58, %v1632_v18 }
 0x157   : > { %v4198_v21 = vpop.f32.mrf.mxu0  ;;  %v1520_v10 = vpop.f32.mrf.mxu1 }
 0x158   : > { %v1635_v54 = vadd.f32 %v1520_v10, %v5100_v60  ;;  %v5222_v31 = vadd.f32 %v4197_v29, %v1637_v15 }
 0x159   : > { %v1817_v9 = vpop.f32.mrf.mxu0  ;;  %v4164_v37 = vpop.f32.mrf.mxu1 }
 0x15a   : > { %v1638_v44 = vadd.f32 %v4164_v37, %v5103_v2  ;;  %v5225_v24 = vadd.f32 %v1814_v41, %v1635_v54 }
 0x15b   : > { %v4201_v25 = vpop.f32.mrf.mxu0  ;;  %v1523_v14 = vpop.f32.mrf.mxu1 }
 0x15c   : > { %v1636_v6 = vadd.f32 %v1523_v14, %v5108_v34  ;;  %v5228_v53 = vadd.f32 %v4198_v21, %v1638_v44 }
 0x15d   : > { %v1830_v40 = vpop.f32.mrf.mxu0  ;;  %v4167_v50 = vpop.f32.mrf.mxu1 }
 0x15e   : > { %v1641_v48 = vadd.f32 %v4167_v50, %v5111_v27  ;;  %v5231_v38 = vadd.f32 %v1817_v9, %v1636_v6 }
 0x15f   : > { %v4202_v56 = vpop.f32.mrf.mxu0  ;;  %v1536_v60 = vpop.f32.mrf.mxu1 }
 0x160   : > { %v1639_v26 = vadd.f32 %v1536_v60, %v5118_v61  ;;  %v5234_v59 = vadd.f32 %v4201_v25, %v1641_v48 }
 0x161   : > { %v1833_v3 = vpop.f32.mrf.mxu0  ;;  %v4168_v2 = vpop.f32.mrf.mxu1 }
 0x162   : > { %v1642_v13 = vadd.f32 %v4168_v2, %v5121_v63  ;;  %v5237_v5 = vadd.f32 %v1830_v40, %v1639_v26 }
 0x163   : > { %v4205_v8 = vpop.f32.mrf.mxu0  ;;  %v1539_v34 = vpop.f32.mrf.mxu1 }
 0x164   : > { %v1640_v22 = vadd.f32 %v1539_v34, %v5126_v52  ;;  %v5240_v36 = vadd.f32 %v4202_v56, %v1642_v13 }
 0x165   : > { %v1846_v58 = vpop.f32.mrf.mxu0  ;;  %v4171_v27 = vpop.f32.mrf.mxu1 }
 0x166   : > { %v1645_v16 = vadd.f32 %v4171_v27, %v5129_v7  ;;  %v5243_v19 = vadd.f32 %v1833_v3, %v1640_v22 }
 0x167   : > { %v4206_v29 = vpop.f32.mrf.mxu0  ;;  %v1552_v61 = vpop.f32.mrf.mxu1 }
 0x168   : > { %v1643_v18 = vadd.f32 %v1552_v61, %v5136_v30  ;;  %v5246_v51 = vadd.f32 %v4205_v8, %v1645_v16 }
 0x169   : > { %v1849_v41 = vpop.f32.mrf.mxu0  ;;  %v4172_v63 = vpop.f32.mrf.mxu1 }
 0x16a   : > { %v1646_v15 = vadd.f32 %v4172_v63, %v5139_v39  ;;  %v5249_v10 = vadd.f32 %v1846_v58, %v1643_v18 }
 0x16b   : > { %v4209_v21 = vpop.f32.mrf.mxu0  ;;  %v1555_v52 = vpop.f32.mrf.mxu1 }
 0x16c   : > { %v1644_v54 = vadd.f32 %v1555_v52, %v5144_v12  ;;  %v5252_v37 = vadd.f32 %v4206_v29, %v1646_v15 }
 0x16d   : > { %v1862_v9 = vpop.f32.mrf.mxu0  ;;  %v4175_v7 = vpop.f32.mrf.mxu1 }
 0x16e   : > { %v1649_v44 = vadd.f32 %v4175_v7, %v5147_v43  ;;  %v5255_v14 = vadd.f32 %v1849_v41, %v1644_v54 }
 0x16f   : > { %v4210_v25 = vpop.f32.mrf.mxu0  ;;  %v1568_v30 = vpop.f32.mrf.mxu1 }
 0x170   : > { %v1647_v6 = vadd.f32 %v1568_v30, %v5154_v4  ;;  %v5258_v50 = vadd.f32 %v4209_v21, %v1649_v44 }
 0x171   : > { %v1865_v40 = vpop.f32.mrf.mxu0  ;;  %v4176_v39 = vpop.f32.mrf.mxu1 }
 0x172   : > { %v1650_v48 = vadd.f32 %v4176_v39, %v5157_v32  ;;  %v5261_v60 = vadd.f32 %v1862_v9, %v1647_v6 }
 0x173   : > { %v4213_v56 = vpop.f32.mrf.mxu0  ;;  %v1571_v12 = vpop.f32.mrf.mxu1 }
 0x174   : > { %v1648_v26 = vadd.f32 %v1571_v12, %v5162_v42  ;;  %v5264_v2 = vadd.f32 %v4210_v25, %v1650_v48 }
 0x175   : > { %v1878_v3 = vpop.f32.mrf.mxu0  ;;  %v4179_v43 = vpop.f32.mrf.mxu1 }
 0x176   : > { %v1653_v13 = vadd.f32 %v4179_v43, %v5165_v35  ;;  %v5267_v34 = vadd.f32 %v1865_v40, %v1648_v26 }
 0x177   : > { %v4214_v8 = vpop.f32.mrf.mxu0  ;;  %v1584_v4 = vpop.f32.mrf.mxu1 }
 0x178   : > { %5714 = vst [vmem:[#allocation3_spill] sm:$0xff] %v5267_v34  ;;  %v1651_v22 = vadd.f32 %v1584_v4, %v5172_v62  ;;  %v5270_v27 = vadd.f32 %v4213_v56, %v1653_v13 }
 0x179   : > { %v1881_v58 = vpop.f32.mrf.mxu0  ;;  %v4180_v32 = vpop.f32.mrf.mxu1 }
 0x17a   : > { %5715 = vst [vmem:[#allocation4_spill] sm:$0xff] %v5270_v27  ;;  %v1654_v16 = vadd.f32 %v4180_v32, %v5175_v49  ;;  %v5273_v61 = vadd.f32 %v1878_v3, %v1651_v22 }
 0x17b   : > { %v4217_v29 = vpop.f32.mrf.mxu0  ;;  %v1587_v42 = vpop.f32.mrf.mxu1 }
 0x17c   : > { %5716 = vst [vmem:[#allocation5_spill] sm:$0xff] %v5273_v61  ;;  %v1652_v18 = vadd.f32 %v1587_v42, %v5181_v47  ;;  %v5276_v63 = vadd.f32 %v4214_v8, %v1654_v16 }
 0x17d   : > { %v1894_v41 = vpop.f32.mrf.mxu0  ;;  %v4183_v35 = vpop.f32.mrf.mxu1 }
 0x17e   : > { %5717 = vst [vmem:[#allocation6_spill] sm:$0xff] %v5276_v63  ;;  %v1657_v15 = vadd.f32 %v4183_v35, %v5184_v1  ;;  %v5279_v52 = vadd.f32 %v1881_v58, %v1652_v18 }
 0x17f   : > { %v4218_v21 = vpop.f32.mrf.mxu0  ;;  %v1600_v62 = vpop.f32.mrf.mxu1 }
 0x180   : > { %5718 = vst [vmem:[#allocation7_spill] sm:$0xff] %v5279_v52  ;;  %v1655_v54 = vadd.f32 %v1600_v62, %v5188_v11  ;;  %v5282_v7 = vadd.f32 %v4217_v29, %v1657_v15 }
 0x181   : > { %v1897_v9 = vpop.f32.mrf.mxu0  ;;  %v4184_v49 = vpop.f32.mrf.mxu1 }
 0x182   : > { %5719 = vst [vmem:[#allocation8_spill] sm:$0xff] %v5282_v7  ;;  %v1658_v44 = vadd.f32 %v4184_v49, %v5191_v33  ;;  %v5285_v30 = vadd.f32 %v1894_v41, %v1655_v54 }
 0x183   : > { %v4221_v25 = vpop.f32.mrf.mxu0  ;;  %v1603_v47 = vpop.f32.mrf.mxu1 }
 0x184   : > { %5720 = vst [vmem:[#allocation9_spill] sm:$0xff] %v5285_v30  ;;  %v1656_v6 = vadd.f32 %v1603_v47, %v5195_v23  ;;  %v5288_v39 = vadd.f32 %v4218_v21, %v1658_v44 }
 0x185   : > { %v1910_v40 = vpop.f32.mrf.mxu0  ;;  %v4187_v1 = vpop.f32.mrf.mxu1 }
 0x186   : > { %5721 = vst [vmem:[#allocation10_spill] sm:$0xff] %v5288_v39  ;;  %v1661_v48 = vadd.f32 %v4187_v1, %v5198_v17  ;;  %v5291_v12 = vadd.f32 %v1897_v9, %v1656_v6 }
 0x187   : > { %v4222_v56 = vpop.f32.mrf.mxu0  ;;  %v1616_v11 = vpop.f32.mrf.mxu1 }
 0x188   : > { %5722 = vst [vmem:[#allocation11_spill] sm:$0xff] %v5291_v12  ;;  %v1659_v26 = vadd.f32 %v1616_v11, %v5201_v57  ;;  %v5294_v43 = vadd.f32 %v4221_v25, %v1661_v48 }
 0x189   : > { %v1913_v3 = vpop.f32.mrf.mxu0  ;;  %v4188_v33 = vpop.f32.mrf.mxu1 }
 0x18a   : > { %5723 = vst [vmem:[#allocation12_spill] sm:$0xff] %v5294_v43  ;;  %v1662_v13 = vadd.f32 %v4188_v33, %v5204_v20  ;;  %v5299_v23 = vadd.f32 %v1910_v40, %v1659_v26 }
 0x18b   : > { %v5296_v8 = vpop.f32.mrf.mxu0  ;;  %v1619_v4 = vpop.f32.mrf.mxu1 }
 0x18c   : > { %5724 = vst [vmem:[#allocation13_spill] sm:$0xff] %v5299_v23  ;;  %v1660_v17 = vadd.f32 %v1619_v4, %v5207_v55  ;;  %v5304_v22 = vadd.f32 %v4222_v56, %v1662_v13 }
 0x18d   : > { %v5301_v58 = vpop.f32.mrf.mxu0  ;;  %v4227_v32 = vpop.f32.mrf.mxu1 }
 0x18e   : > { %5725 = vst [vmem:[#allocation14_spill] sm:$0xff] %v5304_v22  ;;  %v5308_v57 = vadd.f32 %v1913_v3, %v1660_v17 }
 0x18f   : > { %v5306_v29 = vpop.f32.mrf.mxu0  ;;  %v2092_v16 = vpop.f32.mrf.mxu1 }
 0x190   : > { %5726 = vst [vmem:[#allocation15_spill] sm:$0xff] %v5308_v57 }
 0x191   : > { %v5310_v42 = vpop.f32.mrf.mxu0  ;;  %v4228_v41 = vpop.f32.mrf.mxu1 }
 0x193   : > { %v5312_v18 = vpop.f32.mrf.mxu0  ;;  %v2095_v20 = vpop.f32.mrf.mxu1 }
 0x195   : > { %v5314_v35 = vpop.f32.mrf.mxu0  ;;  %v4231_v21 = vpop.f32.mrf.mxu1 }
 0x197   : > { %v5316_v15 = vpop.f32.mrf.mxu0  ;;  %v2108_v55 = vpop.f32.mrf.mxu1 }
 0x199   : > { %v5318_v62 = vpop.f32.mrf.mxu0  ;;  %v4232_v9 = vpop.f32.mrf.mxu1 }
 0x19b   : > { %v5320_v54 = vpop.f32.mrf.mxu0  ;;  %v2111_v49 = vpop.f32.mrf.mxu1 }
 0x19d   : > { %v5322_v25 = vpop.f32.mrf.mxu0  ;;  %v4235_v44 = vpop.f32.mrf.mxu1 }
 0x19f   : > { %v5324_v47 = vpop.f32.mrf.mxu0  ;;  %v2124_v40 = vpop.f32.mrf.mxu1 }
 0x1a1   : > { %v5326_v6 = vpop.f32.mrf.mxu0  ;;  %v4236_v1 = vpop.f32.mrf.mxu1 }
 0x1a3   : > { %v5328_v56 = vpop.f32.mrf.mxu0  ;;  %v2127_v48 = vpop.f32.mrf.mxu1 }
 0x1a5   : > { %v5330_v11 = vpop.f32.mrf.mxu0  ;;  %v4239_v3 = vpop.f32.mrf.mxu1 }
 0x1a7   : > { %v5332_v26 = vpop.f32.mrf.mxu0  ;;  %v2140_v33 = vpop.f32.mrf.mxu1 }
 0x1a9   : > { %v5334_v13 = vpop.f32.mrf.mxu0  ;;  %v4240_v4 = vpop.f32.mrf.mxu1 }
 0x1aa   : > { %5727 = vst [vmem:[#allocation16_spill] sm:$0xff] %v5334_v13 }
 0x1ab   : > { %v5336_v17 = vpop.f32.mrf.mxu0  ;;  %v2143_v57 = vpop.f32.mrf.mxu1 }
 0x1ac   : > { %5728 = vst [vmem:[#allocation17_spill] sm:$0xff] %v5336_v17 }
 0x1ad   : > { %v5338_v22 = vpop.f32.mrf.mxu0  ;;  %v4243_v23 = vpop.f32.mrf.mxu1 }
 0x1ae   : > { %5729 = vst [vmem:[#allocation18_spill] sm:$0xff] %v5338_v22 }
 0x1af   : > { %v5340_v43 = vpop.f32.mrf.mxu0  ;;  %v2156_v12 = vpop.f32.mrf.mxu1 }
 0x1b0   : > { %5730 = vst [vmem:[#allocation19_spill] sm:$0xff] %v5340_v43 }
 0x1b1   : > { %v5342_v39 = vpop.f32.mrf.mxu0  ;;  %v4244_v30 = vpop.f32.mrf.mxu1 }
 0x1b2   : > { %5731 = vst [vmem:[#allocation20_spill] sm:$0xff] %v5342_v39 }
 0x1b3   : > { %v5344_v7 = vpop.f32.mrf.mxu0  ;;  %v5346_v52 = vpop.f32.mrf.mxu1 }
 0x1b4   : > { %5732 = vst [vmem:[#allocation21_spill] sm:$0xff] %v5344_v7  ;;  %5733 = vst [vmem:[#allocation22_spill] sm:$0xff] %v5346_v52 }
 0x1b5   : > { %v5348_v63 = vpop.f32.mrf.mxu0  ;;  %v5350_v61 = vpop.f32.mrf.mxu1 }
 0x1b6   : > { %5734 = vst [vmem:[#allocation23_spill] sm:$0xff] %v5348_v63  ;;  %5735 = vst [vmem:[#allocation24_spill] sm:$0xff] %v5350_v61 }
 0x1b7   : > { %v5352_v27 = vpop.f32.mrf.mxu0  ;;  %v5354_v17 = vpop.f32.mrf.mxu1 }
 0x1b8   : > { %5736 = vst [vmem:[#allocation25_spill] sm:$0xff] %v5352_v27  ;;  %5737 = vst [vmem:[#allocation26_spill] sm:$0xff] %v5354_v17 }
 0x1b9   : > { %v5356_v22 = vpop.f32.mrf.mxu0  ;;  %v5358_v34 = vpop.f32.mrf.mxu1 }
 0x1ba   : > { %5738 = vst [vmem:[#allocation27_spill] sm:$0xff] %v5356_v22  ;;  %5739 = vst [vmem:[#allocation28_spill] sm:$0xff] %v5358_v34  ;;  %v2221_v22 = vadd.f32 %v4227_v32, %v5210_v45  ;;  %v2226_v45 = vadd.f32 %v4232_v9, %v5228_v53 }
 0x1bb   : > { %v5360_v43 = vpop.f32.mrf.mxu0  ;;  %v5362_v39 = vpop.f32.mrf.mxu1 }
 0x1bc   : > { %5740 = vst [vmem:[#allocation29_spill] sm:$0xff] %v5360_v43  ;;  %5741 = vst [vmem:[#allocation30_spill] sm:$0xff] %v5362_v39 }
 0x1bd   : > { %v5364_v13 = vpop.f32.mrf.mxu0  ;;  %v5366_v7 = vpop.f32.mrf.mxu1 }
 0x1be   : > { %5742 = vst [vmem:[#allocation31_spill] sm:$0xff] %v5364_v13  ;;  %5743 = vst [vmem:[#allocation32_spill] sm:$0xff] %v5366_v7  ;;  %v2219_v13 = vadd.f32 %v2092_v16, %v5213_v0  ;;  %v2222_v7 = vadd.f32 %v4228_v41, %v5216_v28  ;;  %v2516_v0 = vadd.f32 %v5296_v8, %v2221_v22 }
 0x1bf   : > { %v5368_v52 = vpop.f32.mrf.mxu0  ;;  %v5370_v63 = vpop.f32.mrf.mxu1  ;;  %v2224_v28 = vadd.f32 %v2111_v49, %v5231_v38  ;;  %v2229_v16 = vadd.f32 %v4235_v44, %v5234_v59  ;;  %v2227_v41 = vadd.f32 %v2124_v40, %v5237_v5  ;;  %v2231_v38 = vadd.f32 %v2140_v33, %v5249_v10  ;;  %v5755_v44 = vld [vmem:[#allocation26_spill] sm:$0xff] }
 0x1c0   : > { %5744 = vst [vmem:[#allocation33_spill] sm:$0xff] %v5368_v52  ;;  %v2517_v8 = vadd.f32 %v5306_v29, %v2222_v7  ;;  %v2234_v59 = vadd.f32 %v4240_v4, %v5252_v37  ;;  %v2232_v5 = vadd.f32 %v2143_v57, %v5255_v14  ;;  %v5420_v7 = vadd.f32 %v5316_v15, %v2226_v45  ;;  %v5749_v15 = vld [vmem:[#allocation16_spill] sm:$0xff] }
 0x1c1   : > { %v5372_v61 = vpop.f32.mrf.mxu0  ;;  %v5374_v27 = vpop.f32.mrf.mxu1  ;;  %v5423_v10 = vadd.f32 %v5318_v62, %v2224_v28  ;;  %v5426_v37 = vadd.f32 %v5320_v54, %v2229_v16  ;;  %v5429_v14 = vadd.f32 %v5322_v25, %v2227_v41  ;;  %v5752_v62 = vld [vmem:[#allocation4_spill] sm:$0xff]  ;;  %v5754_v25 = vld [vmem:[#allocation5_spill] sm:$0xff] }
 0x1c2   : > { %5745 = vst [vmem:[#allocation34_spill] sm:$0xff] %v5372_v61  ;;  %5746 = vst [vmem:[#allocation35_spill] sm:$0xff] %v5374_v27  ;;  %v2220_v61 = vadd.f32 %v2095_v20, %v5219_v46  ;;  %v2225_v27 = vadd.f32 %v4231_v21, %v5222_v31  ;;  %v2230_v46 = vadd.f32 %v4236_v1, %v5240_v36  ;;  %v5753_v54 = vld [vmem:[#allocation24_spill] sm:$0xff]  ;;  %v5756_v1 = vld [vmem:[#allocation17_spill] sm:$0xff] }
 0x1c3   : > { %v5376_v17 = vpop.f32.mrf.mxu0  ;;  %v5379_v34 = vpop.f32.mrf.mxu1  ;;  %v2228_v31 = vadd.f32 %v2127_v48, %v5243_v19  ;;  %v2514_v21 = vadd.f32 %v5301_v58, %v2219_v13  ;;  %v2237_v19 = vadd.f32 %v4243_v23, %v5258_v50  ;;  %v2241_v49 = vadd.f32 %v5753_v54, %v5752_v62  ;;  %v5757_v48 = vld [vmem:[#allocation6_spill] sm:$0xff]  ;;  %v5761_v45 = vld [vmem:[#allocation8_spill] sm:$0xff]  ;;  %v5763_v16 = vld [vmem:[#allocation9_spill] sm:$0xff] }
 0x1c4   : > { %5747 = vst [vmem:[#allocation36_spill] sm:$0xff] %v5376_v17  ;;  %5748 = vst [vmem:[#allocation37_spill] sm:$0xff] %v5379_v34  ;;  %v2223_v17 = vadd.f32 %v2108_v55, %v5225_v24  ;;  %v2233_v24 = vadd.f32 %v4239_v3, %v5246_v51  ;;  %v2515_v36 = vadd.f32 %v5310_v42, %v2220_v61  ;;  %v5760_v33 = vld [vmem:[#allocation30_spill] sm:$0xff]  ;;  %v5770_v62 = vld [vmem:[#allocation12_spill] sm:$0xff] }
 0x1c5   : > { %v5381_v43 = vpop.f32.mrf.mxu0  ;;  %v5385_v39 = vpop.f32.mrf.mxu1  ;;  %v2520_v55 = vadd.f32 %v5312_v18, %v2225_v27  ;;  %v5432_v50 = vadd.f32 %v5324_v47, %v2230_v46  ;;  %v2235_v27 = vadd.f32 %v2156_v12, %v5261_v60  ;;  %v2238_v61 = vadd.f32 %v4244_v30, %v5264_v2  ;;  %v5750_v2 = vld [vmem:[#allocation3_spill] sm:$0xff]  ;;  %v5751_v30 = vld [vmem:[#allocation22_spill] sm:$0xff] }
 0x1c6   : > { %v5417_v9 = vadd.f32 %v5314_v35, %v2223_v17  ;;  %v5437_v29 = vadd.f32 %v5326_v6, %v2228_v31  ;;  %v5440_v57 = vadd.f32 %v5328_v56, %v2233_v24  ;;  %v5443_v18 = vadd.f32 %v5330_v11, %v2231_v38  ;;  %v5758_v11 = vld [vmem:[#allocation28_spill] sm:$0xff]  ;;  %v5764_v24 = vld [vmem:[#allocation18_spill] sm:$0xff] }
 0x1c7   : > { %v5387_v52 = vpop.f32.mrf.mxu0  ;;  %v5393_v32 = vpop.f32.mrf.mxu1  ;;  %v5446_v35 = vadd.f32 %v5332_v26, %v2234_v59  ;;  %v5449_v60 = vadd.f32 %v5749_v15, %v2232_v5  ;;  %v2236_v12 = vadd.f32 %v5751_v30, %v5750_v2  ;;  %v2239_v47 = vadd.f32 %v5755_v44, %v5754_v25  ;;  %v5759_v26 = vld [vmem:[#allocation7_spill] sm:$0xff]  ;;  %v5766_v59 = vld [vmem:[#allocation10_spill] sm:$0xff] }
 0x1c8   : > { %v5458_v56 = vadd.f32 %v5756_v1, %v2237_v19  ;;  %v2242_v3 = vadd.f32 %v5758_v11, %v5757_v48  ;;  %v2240_v13 = vadd.f32 %v5760_v33, %v5759_v26  ;;  %v2243_v41 = vadd.f32 %v5370_v63, %v5763_v16  ;;  %v5773_v11 = vld [vmem:[#allocation23_spill] sm:$0xff]  ;;  %v5776_v16 = vld [vmem:[#allocation29_spill] sm:$0xff] }
 0x1c9   : > { %v5395_v34 = vpop.f32.mrf.mxu0  ;;  %v5404_v20 = vpop.f32.mrf.mxu1  ;;  %v5476_v38 = vadd.f32 %v5764_v24, %v2235_v27  ;;  %v5767_v5 = vld [vmem:[#allocation35_spill] sm:$0xff]  ;;  %v2249_v54 = vadd.f32 %v5385_v39, %v5770_v62  ;;  %v5771_v27 = vld [vmem:[#allocation20_spill] sm:$0xff]  ;;  %v5496_v26 = vadd.f32 %v5773_v11, %v2239_v47 }
 0x1ca   : > { %v2246_v19 = vadd.f32 %v5767_v5, %v5766_v59  ;;  %v5775_v39 = vld [vmem:[#allocation27_spill] sm:$0xff] }
 0x1cb   : > { %v4329_v53 = vpop.f32.mrf.mxu0  ;;  %v5413_v22 = vpop.f32.mrf.mxu1 }
 0x1cd   : > { %v2975_v51 = vpop.f32.mrf.mxu0  ;;  %v4295_v23 = vpop.f32.mrf.mxu1 }
 0x1ce   : > { %v2810_v42 = vadd.f32 %v4295_v23, %v2516_v0  ;;  %v5762_v0 = vld [vmem:[#allocation32_spill] sm:$0xff]  ;;  %v5768_v23 = vld [vmem:[#allocation11_spill] sm:$0xff] }
 0x1cf   : > { %v4330_v58 = vpop.f32.mrf.mxu0  ;;  %v2681_v40 = vpop.f32.mrf.mxu1  ;;  %v2245_v28 = vadd.f32 %v5762_v0, %v5761_v45 }
 0x1d0   : > { %v3104_v4 = vadd.f32 %v4329_v53, %v2810_v42  ;;  %v2808_v17 = vadd.f32 %v2681_v40, %v2514_v21  ;;  %v5765_v53 = vld [vmem:[#allocation19_spill] sm:$0xff]  ;;  %v5769_v42 = vld [vmem:[#allocation37_spill] sm:$0xff]  ;;  %v5488_v40 = vadd.f32 %v5771_v27, %v2236_v12 }
 0x1d1   : > { %v2978_v6 = vpop.f32.mrf.mxu0  ;;  %v4296_v46 = vpop.f32.mrf.mxu1  ;;  %v5479_v21 = vadd.f32 %v5765_v53, %v2238_v61  ;;  %v2244_v15 = vadd.f32 %v5769_v42, %v5768_v23  ;;  %v5772_v61 = vld [vmem:[#allocation21_spill] sm:$0xff] }
 0x1d2   : > { %v3791_v2 = vpack.c.bf16 %v3104_v4, %v3104_v4  ;;  %v3102_v30 = vadd.f32 %v2975_v51, %v2808_v17  ;;  %v2811_v63 = vadd.f32 %v4296_v46, %v2517_v8  ;;  %v5491_v1 = vadd.f32 %v5772_v61, %v2241_v49  ;;  %v5774_v51 = vld [vmem:[#allocation25_spill] sm:$0xff]  ;;  %v5777_v49 = vld [vmem:[#allocation31_spill] sm:$0xff] }
 0x1d3   : > { %v4333_v31 = vpop.f32.mrf.mxu0  ;;  %v2684_v25 = vpop.f32.mrf.mxu1  ;;  %v5499_v33 = vadd.f32 %v5774_v51, %v2242_v3  ;;  %v5502_v8 = vadd.f32 %v5775_v39, %v2240_v13  ;;  %v5505_v46 = vadd.f32 %v5776_v16, %v2245_v28  ;;  %v5508_v24 = vadd.f32 %v5777_v49, %v2243_v41  ;;  %v5778_v3 = vld [vmem:[#allocation33_spill] sm:$0xff]  ;;  %v5779_v13 = vld [vmem:[#allocation34_spill] sm:$0xff] }
 0x1d4   : > { %3265 = vst.msk [vmem:[%s5469_s9 + $0x8] sm:$0xf] %vm3262_vm4, %v3791_v2  ;;  %v3789_v48 = vpack.c.bf16 %v3102_v30, %v3102_v30  ;;  %v3105_v17 = vadd.f32 %v4330_v58, %v2811_v63  ;;  %v2809_v45 = vadd.f32 %v2684_v25, %v2515_v36  ;;  %v3365_v47 = vmul.f32 %v3102_v30, %v3102_v30  ;;  %v5780_v36 = vld [vmem:[#allocation13_spill] sm:$0xff]  ;;  %v5781_v2 = vld [vmem:[#allocation36_spill] sm:$0xff]  ;;  %v5782_v63 = vld [vmem:[#allocation14_spill] sm:$0xff] }
 0x1d5   : > { %v2991_v44 = vpop.f32.mrf.mxu0  ;;  %v4299_v0 = vpop.f32.mrf.mxu1  ;;  %v5513_v59 = vadd.f32 %v5778_v3, %v2246_v19  ;;  %v5516_v5 = vadd.f32 %v5779_v13, %v2244_v15  ;;  %v5520_v58 = vadd.f32 %v5393_v32, %v5780_v36  ;;  %v5523_v62 = vadd.f32 %v5781_v2, %v2249_v54 }
 0x1d6   : > { %3263 = vst.msk [vmem:[%s5469_s9] sm:$0xf] %vm3262_vm4, %v3789_v48  ;;  %v2814_v53 = vadd.f32 %v4299_v0, %v2520_v55  ;;  %v3792_v28 = vpack.c.bf16 %v3105_v17, %v3105_v17  ;;  %v3103_v23 = vadd.f32 %v2978_v6, %v2809_v45  ;;  %v5527_v55 = vadd.f32 %v5404_v20, %v5782_v63 }
 0x1d7   : > { %v4334_v12 = vpop.f32.mrf.mxu0  ;;  %v2697_v42 = vpop.f32.mrf.mxu1  ;;  %v3367_v19 = vmul.f32 %v3104_v4, %v3104_v4  ;;  %v3295_v27 = vsel %vm472_vm1, %v3102_v30, 0.0  ;;  %v3298_v11 = vsel %vm472_vm1, %v3104_v4, 0.0  ;;  %v3397_v20 = vsel %vm472_vm1, %v3365_v47, 0.0 }
 0x1d8   : > { %v3108_v25 = vadd.f32 %v4333_v31, %v2814_v53  ;;  %v2812_v15 = vadd.f32 %v2697_v42, %v5417_v9  ;;  %3266 = vst.msk [vmem:[%s5469_s9 + $0xc] sm:$0xf] %vm3262_vm4, %v3792_v28  ;;  %v3790_v32 = vpack.c.bf16 %v3103_v23, %v3103_v23  ;;  %v3296_v6 = vsel %vm472_vm1, %v3103_v23, 0.0 }
 0x1d9   : > { %v2994_v41 = vpop.f32.mrf.mxu0  ;;  %v3366_v61 = vmul.f32 %v3103_v23, %v3103_v23  ;;  %v4300_v48 = vpop.f32.mrf.mxu1  ;;  %v3297_v51 = vadd.f32 %v3296_v6, %v3295_v27  ;;  %v3368_v31 = vmul.f32 %v3105_v17, %v3105_v17  ;;  %v3400_v49 = vsel %vm472_vm1, %v3367_v19, 0.0 }
 0x1da   : > { %v3795_v39 = vpack.c.bf16 %v3108_v25, %v3108_v25  ;;  %3264 = vst.msk [vmem:[%s5469_s9 + $0x4] sm:$0xf] %vm3262_vm4, %v3790_v32  ;;  %v3106_v30 = vadd.f32 %v2991_v44, %v2812_v15  ;;  %v2815_v45 = vadd.f32 %v4300_v48, %v5420_v7  ;;  %v3300_v47 = vsel %vm472_vm1, %v3105_v17, 0.0 }
 0x1db   : > { %v4337_v54 = vpop.f32.mrf.mxu0  ;;  %v3398_v9 = vsel %vm472_vm1, %v3366_v61, 0.0  ;;  %v2700_v0 = vpop.f32.mrf.mxu1  ;;  %v3299_v53 = vadd.f32 %v3298_v11, %v3297_v51  ;;  %v3402_v19 = vsel %vm472_vm1, %v3368_v31, 0.0  ;;  %v3371_v15 = vmul.f32 %v3108_v25, %v3108_v25 }
 0x1dc   : > { %v3399_v3 = vadd.f32 %v3398_v9, %v3397_v20  ;;  %3269 = vst.msk [vmem:[%s5469_s9 + $0x18] sm:$0xf] %vm3262_vm4, %v3795_v39  ;;  %v2813_v4 = vadd.f32 %v2700_v0, %v5423_v10  ;;  %v3793_v13 = vpack.c.bf16 %v3106_v30, %v3106_v30  ;;  %v3369_v36 = vmul.f32 %v3106_v30, %v3106_v30 }
 0x1dd   : > { %v3007_v16 = vpop.f32.mrf.mxu0  ;;  %v3109_v28 = vadd.f32 %v4334_v12, %v2815_v45  ;;  %v4303_v23 = vpop.f32.mrf.mxu1  ;;  %v3301_v7 = vadd.f32 %v3300_v47, %v3299_v53  ;;  %v3302_v10 = vsel %vm472_vm1, %v3106_v30, 0.0  ;;  %v5560_v45 = vadd.f32 %v5381_v43, %v5520_v58 }
 0x1de   : > { %v3401_v42 = vadd.f32 %v3400_v49, %v3399_v3  ;;  %v3107_v2 = vadd.f32 %v2994_v41, %v2813_v4  ;;  %v2818_v63 = vadd.f32 %v4303_v23, %v5426_v37  ;;  %3267 = vst.msk [vmem:[%s5469_s9 + $0x10] sm:$0xf] %vm3262_vm4, %v3793_v13  ;;  %v3404_v41 = vsel %vm472_vm1, %v3369_v36, 0.0  ;;  %v5783_v23 = vld [vmem:[#allocation15_spill] sm:$0xff] }
 0x1df   : > { %v4338_v44 = vpop.f32.mrf.mxu0  ;;  %v3796_v17 = vpack.c.bf16 %v3109_v28, %v3109_v28  ;;  %v2713_v27 = vpop.f32.mrf.mxu1  ;;  %v3303_v12 = vadd.f32 %v3302_v10, %v3301_v7  ;;  %v3306_v0 = vsel %vm472_vm1, %v3108_v25, 0.0  ;;  %v3372_v49 = vmul.f32 %v3109_v28, %v3109_v28 }
 0x1e0   : > { %v3403_v6 = vadd.f32 %v3402_v19, %v3401_v42  ;;  %v3794_v61 = vpack.c.bf16 %v3107_v2, %v3107_v2  ;;  %v3304_v48 = vsel %vm472_vm1, %v3107_v2, 0.0  ;;  %v3370_v37 = vmul.f32 %v3107_v2, %v3107_v2 }
 0x1e1   : > { %v3010_v32 = vpop.f32.mrf.mxu0  ;;  %3270 = vst.msk [vmem:[%s5469_s9 + $0x1c] sm:$0xf] %vm3262_vm4, %v3796_v17  ;;  %v3112_v11 = vadd.f32 %v4337_v54, %v2818_v63  ;;  %v2816_v20 = vadd.f32 %v2713_v27, %v5429_v14  ;;  %v4304_v51 = vpop.f32.mrf.mxu1  ;;  %v3305_v9 = vadd.f32 %v3304_v48, %v3303_v12  ;;  %v2248_v42 = vadd.f32 %v5413_v22, %v5783_v23 }
 0x1e2   : > { %v3405_v31 = vadd.f32 %v3404_v41, %v3403_v6  ;;  %3268 = vst.msk [vmem:[%s5469_s9 + $0x14] sm:$0xf] %vm3262_vm4, %v3794_v61  ;;  %v2819_v30 = vadd.f32 %v4304_v51, %v5432_v50  ;;  %v3406_v54 = vsel %vm472_vm1, %v3370_v37, 0.0  ;;  %v3408_v50 = vsel %vm472_vm1, %v3371_v15, 0.0 }
 0x1e3   : > { %v4341_v39 = vpop.f32.mrf.mxu0  ;;  %v3799_v53 = vpack.c.bf16 %v3112_v11, %v3112_v11  ;;  %v2716_v14 = vpop.f32.mrf.mxu1  ;;  %v3307_v4 = vadd.f32 %v3306_v0, %v3305_v9  ;;  %v3110_v13 = vadd.f32 %v3007_v16, %v2816_v20  ;;  %v3308_v43 = vsel %vm472_vm1, %v3109_v28, 0.0 }
 0x1e4   : > { %v3407_v47 = vadd.f32 %v3406_v54, %v3405_v31  ;;  %v3113_v36 = vadd.f32 %v4338_v44, %v2819_v30  ;;  %v2817_v58 = vadd.f32 %v2716_v14, %v5437_v29  ;;  %v5573_v16 = vadd.f32 %v5387_v52, %v5527_v55 }
 0x1e5   : > { %v3023_v3 = vpop.f32.mrf.mxu0  ;;  %3273 = vst.msk [vmem:[%s5469_s9 + $0x28] sm:$0xf] %vm3262_vm4, %v3799_v53  ;;  %v4307_v25 = vpop.f32.mrf.mxu1  ;;  %v3797_v63 = vpack.c.bf16 %v3110_v13, %v3110_v13  ;;  %v3309_v19 = vadd.f32 %v3308_v43, %v3307_v4  ;;  %v3410_v22 = vsel %vm472_vm1, %v3372_v49, 0.0  ;;  %v3310_v44 = vsel %vm472_vm1, %v3110_v13, 0.0 }
 0x1e6   : > { %v3409_v2 = vadd.f32 %v3408_v50, %v3407_v47  ;;  %v3373_v15 = vmul.f32 %v3110_v13, %v3110_v13  ;;  %v3800_v28 = vpack.c.bf16 %v3113_v36, %v3113_v36  ;;  %v3111_v12 = vadd.f32 %v3010_v32, %v2817_v58 }
 0x1e7   : > { %v4342_v7 = vpop.f32.mrf.mxu0  ;;  %v2729_v10 = vpop.f32.mrf.mxu1  ;;  %3271 = vst.msk [vmem:[%s5469_s9 + $0x20] sm:$0xf] %vm3262_vm4, %v3797_v63  ;;  %v3311_v29 = vadd.f32 %v3310_v44, %v3309_v19  ;;  %v2822_v6 = vadd.f32 %v4307_v25, %v5440_v57  ;;  %v3375_v61 = vmul.f32 %v3112_v11, %v3112_v11  ;;  %v3376_v52 = vmul.f32 %v3113_v36, %v3113_v36 }
 0x1e8   : > { %v3411_v27 = vadd.f32 %v3410_v22, %v3409_v2  ;;  %v3412_v48 = vsel %vm472_vm1, %v3373_v15, 0.0  ;;  %3274 = vst.msk [vmem:[%s5469_s9 + $0x2c] sm:$0xf] %vm3262_vm4, %v3800_v28  ;;  %v2820_v55 = vadd.f32 %v2729_v10, %v5443_v18  ;;  %v3798_v51 = vpack.c.bf16 %v3111_v12, %v3111_v12 }
 0x1e9   : > { %v3026_v17 = vpop.f32.mrf.mxu0  ;;  %v4308_v41 = vpop.f32.mrf.mxu1  ;;  %v3312_v31 = vsel %vm472_vm1, %v3111_v12, 0.0  ;;  %v3374_v9 = vmul.f32 %v3111_v12, %v3111_v12  ;;  %v3116_v32 = vadd.f32 %v4341_v39, %v2822_v6  ;;  %v3314_v53 = vsel %vm472_vm1, %v3112_v11, 0.0 }
 0x1ea   : > { %v3413_v20 = vadd.f32 %v3412_v48, %v3411_v27  ;;  %v3313_v30 = vadd.f32 %v3312_v31, %v3311_v29  ;;  %v3114_v0 = vadd.f32 %v3023_v3, %v2820_v55  ;;  %v2823_v57 = vadd.f32 %v4308_v41, %v5446_v35  ;;  %3272 = vst.msk [vmem:[%s5469_s9 + $0x24] sm:$0xf] %vm3262_vm4, %v3798_v51 }
 0x1eb   : > { %v4345_v37 = vpop.f32.mrf.mxu0  ;;  %v2732_v49 = vpop.f32.mrf.mxu1  ;;  %v3414_v18 = vsel %vm472_vm1, %v3374_v9, 0.0  ;;  %v5592_v4 = vadd.f32 %v5395_v34, %v2248_v42  ;;  %v3416_v47 = vsel %vm472_vm1, %v3375_v61, 0.0  ;;  %v3803_v35 = vpack.c.bf16 %v3116_v32, %v3116_v32 }
 0x1ec   : > { %v2821_v14 = vadd.f32 %v2732_v49, %v5449_v60  ;;  %v3315_v39 = vadd.f32 %v3314_v53, %v3313_v30  ;;  %v3415_v3 = vadd.f32 %v3414_v18, %v3413_v20  ;;  %v3316_v11 = vsel %vm472_vm1, %v3113_v36, 0.0 }
 0x1ed   : > { %v3039_v54 = vpop.f32.mrf.mxu0  ;;  %v4311_v13 = vpop.f32.mrf.mxu1  ;;  %v3418_v50 = vsel %vm472_vm1, %v3376_v52, 0.0  ;;  %v3801_v43 = vpack.c.bf16 %v3114_v0, %v3114_v0  ;;  %v3377_v58 = vmul.f32 %v3114_v0, %v3114_v0  ;;  %3277 = vst.msk [vmem:[%s5469_s9 + $0x38] sm:$0xf] %vm3262_vm4, %v3803_v35  ;;  %v3117_v34 = vadd.f32 %v4342_v7, %v2823_v57 }
 0x1ee   : > { %v3417_v25 = vadd.f32 %v3416_v47, %v3415_v3  ;;  %v3317_v60 = vadd.f32 %v3316_v11, %v3315_v39  ;;  %v3115_v42 = vadd.f32 %v3026_v17, %v2821_v14  ;;  %v3379_v19 = vmul.f32 %v3116_v32, %v3116_v32 }
 0x1ef   : > { %v4346_v23 = vpop.f32.mrf.mxu0  ;;  %v2745_v2 = vpop.f32.mrf.mxu1  ;;  %3275 = vst.msk [vmem:[%s5469_s9 + $0x30] sm:$0xf] %vm3262_vm4, %v3801_v43  ;;  %v3318_v22 = vsel %vm472_vm1, %v3114_v0, 0.0  ;;  %v2826_v36 = vadd.f32 %v4311_v13, %v5458_v56  ;;  %v3420_v10 = vsel %vm472_vm1, %v3377_v58, 0.0  ;;  %v3804_v29 = vpack.c.bf16 %v3117_v34, %v3117_v34 }
 0x1f0   : > { %v2824_v44 = vadd.f32 %v2745_v2, %v5476_v38  ;;  %v3319_v15 = vadd.f32 %v3318_v22, %v3317_v60  ;;  %v3419_v28 = vadd.f32 %v3418_v50, %v3417_v25  ;;  %v3380_v27 = vmul.f32 %v3117_v34, %v3117_v34 }
 0x1f1   : > { %v3042_v63 = vpop.f32.mrf.mxu0  ;;  %v4312_v7 = vpop.f32.mrf.mxu1  ;;  %v3802_v12 = vpack.c.bf16 %v3115_v42, %v3115_v42  ;;  %v3320_v6 = vsel %vm472_vm1, %v3115_v42, 0.0  ;;  %v3378_v61 = vmul.f32 %v3115_v42, %v3115_v42  ;;  %3278 = vst.msk [vmem:[%s5469_s9 + $0x3c] sm:$0xf] %vm3262_vm4, %v3804_v29  ;;  %v3120_v56 = vadd.f32 %v4345_v37, %v2826_v36 }
 0x1f2   : > { %v3421_v48 = vadd.f32 %v3420_v10, %v3419_v28  ;;  %v3321_v52 = vadd.f32 %v3320_v6, %v3319_v15  ;;  %v3118_v55 = vadd.f32 %v3039_v54, %v2824_v44  ;;  %v3322_v20 = vsel %vm472_vm1, %v3116_v32, 0.0 }
 0x1f3   : > { %v4349_v17 = vpop.f32.mrf.mxu0  ;;  %v2748_v38 = vpop.f32.mrf.mxu1  ;;  %3276 = vst.msk [vmem:[%s5469_s9 + $0x34] sm:$0xf] %vm3262_vm4, %v3802_v12  ;;  %v3422_v51 = vsel %vm472_vm1, %v3378_v61, 0.0  ;;  %v2827_v31 = vadd.f32 %v4312_v7, %v5479_v21  ;;  %v3424_v30 = vsel %vm472_vm1, %v3379_v19, 0.0  ;;  %v3807_v37 = vpack.c.bf16 %v3120_v56, %v3120_v56 }
 0x1f4   : > { %v2825_v9 = vadd.f32 %v2748_v38, %v5488_v40  ;;  %v3323_v0 = vadd.f32 %v3322_v20, %v3321_v52  ;;  %v3423_v57 = vadd.f32 %v3422_v51, %v3421_v48  ;;  %v3324_v53 = vsel %vm472_vm1, %v3117_v34, 0.0 }
 0x1f5   : > { %v3055_v41 = vpop.f32.mrf.mxu0  ;;  %v4315_v49 = vpop.f32.mrf.mxu1  ;;  %v3426_v32 = vsel %vm472_vm1, %v3380_v27, 0.0  ;;  %v3805_v18 = vpack.c.bf16 %v3118_v55, %v3118_v55  ;;  %v3381_v14 = vmul.f32 %v3118_v55, %v3118_v55  ;;  %3281 = vst.msk [vmem:[%s5469_s9 + $0x48] sm:$0xf] %vm3262_vm4, %v3807_v37  ;;  %v3121_v39 = vadd.f32 %v4346_v23, %v2827_v31 }
 0x1f6   : > { %v3425_v47 = vadd.f32 %v3424_v30, %v3423_v57  ;;  %v3325_v21 = vadd.f32 %v3324_v53, %v3323_v0  ;;  %v3119_v40 = vadd.f32 %v3042_v63, %v2825_v9  ;;  %v3383_v13 = vmul.f32 %v3120_v56, %v3120_v56 }
 0x1f7   : > { %v4350_v54 = vpop.f32.mrf.mxu0  ;;  %v2761_v3 = vpop.f32.mrf.mxu1  ;;  %3279 = vst.msk [vmem:[%s5469_s9 + $0x40] sm:$0xf] %vm3262_vm4, %v3805_v18  ;;  %v3326_v11 = vsel %vm472_vm1, %v3118_v55, 0.0  ;;  %v2830_v50 = vadd.f32 %v4315_v49, %v5491_v1  ;;  %v3428_v60 = vsel %vm472_vm1, %v3381_v14, 0.0  ;;  %v3808_v34 = vpack.c.bf16 %v3121_v39, %v3121_v39 }
 0x1f8   : > { %v2828_v43 = vadd.f32 %v2761_v3, %v5496_v26  ;;  %v3327_v58 = vadd.f32 %v3326_v11, %v3325_v21  ;;  %v3427_v25 = vadd.f32 %v3426_v32, %v3425_v47  ;;  %v3384_v2 = vmul.f32 %v3121_v39, %v3121_v39 }
 0x1f9   : > { %v3058_v35 = vpop.f32.mrf.mxu0  ;;  %v4316_v23 = vpop.f32.mrf.mxu1  ;;  %v3806_v63 = vpack.c.bf16 %v3119_v40, %v3119_v40  ;;  %v3328_v19 = vsel %vm472_vm1, %v3119_v40, 0.0  ;;  %v3382_v22 = vmul.f32 %v3119_v40, %v3119_v40  ;;  %3282 = vst.msk [vmem:[%s5469_s9 + $0x4c] sm:$0xf] %vm3262_vm4, %v3808_v34  ;;  %v3124_v1 = vadd.f32 %v4349_v17, %v2830_v50 }
 0x1fa   : > { %v3429_v36 = vadd.f32 %v3428_v60, %v3427_v25  ;;  %v3329_v44 = vadd.f32 %v3328_v19, %v3327_v58  ;;  %v3122_v15 = vadd.f32 %v3055_v41, %v2828_v43  ;;  %v3330_v10 = vsel %vm472_vm1, %v3120_v56, 0.0 }
 0x1fb   : > { %v4353_v42 = vpop.f32.mrf.mxu0  ;;  %v2764_v26 = vpop.f32.mrf.mxu1  ;;  %3280 = vst.msk [vmem:[%s5469_s9 + $0x44] sm:$0xf] %vm3262_vm4, %v3806_v63  ;;  %v3430_v29 = vsel %vm472_vm1, %v3382_v22, 0.0  ;;  %v2831_v7 = vadd.f32 %v4316_v23, %v5499_v33  ;;  %v3432_v12 = vsel %vm472_vm1, %v3383_v13, 0.0  ;;  %v3811_v17 = vpack.c.bf16 %v3124_v1, %v3124_v1 }
 0x1fc   : > { %v2829_v27 = vadd.f32 %v2764_v26, %v5502_v8  ;;  %v3331_v6 = vadd.f32 %v3330_v10, %v3329_v44  ;;  %v3431_v61 = vadd.f32 %v3430_v29, %v3429_v36  ;;  %v3332_v55 = vsel %vm472_vm1, %v3121_v39, 0.0 }
 0x1fd   : > { %v3071_v28 = vpop.f32.mrf.mxu0  ;;  %v4319_v48 = vpop.f32.mrf.mxu1  ;;  %v3434_v56 = vsel %vm472_vm1, %v3384_v2, 0.0  ;;  %v3809_v38 = vpack.c.bf16 %v3122_v15, %v3122_v15  ;;  %v3385_v41 = vmul.f32 %v3122_v15, %v3122_v15  ;;  %3285 = vst.msk [vmem:[%s5469_s9 + $0x58] sm:$0xf] %vm3262_vm4, %v3811_v17  ;;  %v3125_v51 = vadd.f32 %v4350_v54, %v2831_v7 }
 0x1fe   : > { %v3433_v20 = vadd.f32 %v3432_v12, %v3431_v61  ;;  %v3333_v33 = vadd.f32 %v3332_v55, %v3331_v6  ;;  %v3123_v8 = vadd.f32 %v3058_v35, %v2829_v27  ;;  %v3387_v30 = vmul.f32 %v3124_v1, %v3124_v1 }
 0x1ff   : > { %v4354_v52 = vpop.f32.mrf.mxu0  ;;  %v2777_v31 = vpop.f32.mrf.mxu1  ;;  %3283 = vst.msk [vmem:[%s5469_s9 + $0x50] sm:$0xf] %vm3262_vm4, %v3809_v38  ;;  %v3334_v0 = vsel %vm472_vm1, %v3122_v15, 0.0  ;;  %v2834_v57 = vadd.f32 %v4319_v48, %v5505_v46  ;;  %v3436_v32 = vsel %vm472_vm1, %v3385_v41, 0.0  ;;  %v3812_v18 = vpack.c.bf16 %v3125_v51, %v3125_v51 }
 0x200   : > { %v2832_v37 = vadd.f32 %v2777_v31, %v5508_v24  ;;  %v3335_v49 = vadd.f32 %v3334_v0, %v3333_v33  ;;  %v3435_v53 = vadd.f32 %v3434_v56, %v3433_v20  ;;  %v3388_v14 = vmul.f32 %v3125_v51, %v3125_v51 }
 0x201   : > { %v3074_v9 = vpop.f32.mrf.mxu0  ;;  %v4320_v54 = vpop.f32.mrf.mxu1  ;;  %v3810_v47 = vpack.c.bf16 %v3123_v8, %v3123_v8  ;;  %v3336_v21 = vsel %vm472_vm1, %v3123_v8, 0.0  ;;  %v3386_v39 = vmul.f32 %v3123_v8, %v3123_v8  ;;  %3286 = vst.msk [vmem:[%s5469_s9 + $0x5c] sm:$0xf] %vm3262_vm4, %v3812_v18  ;;  %v3128_v46 = vadd.f32 %v4353_v42, %v2834_v57 }
 0x202   : > { %v3437_v3 = vadd.f32 %v3436_v32, %v3435_v53  ;;  %v3337_v35 = vadd.f32 %v3336_v21, %v3335_v49  ;;  %v3126_v13 = vadd.f32 %v3071_v28, %v2832_v37  ;;  %v3338_v11 = vsel %vm472_vm1, %v3124_v1, 0.0 }
 0x203   : > { %v4357_v40 = vpop.f32.mrf.mxu0  ;;  %v2780_v24 = vpop.f32.mrf.mxu1  ;;  %3284 = vst.msk [vmem:[%s5469_s9 + $0x54] sm:$0xf] %vm3262_vm4, %v3810_v47  ;;  %v3438_v50 = vsel %vm472_vm1, %v3386_v39, 0.0  ;;  %v2835_v43 = vadd.f32 %v4320_v54, %v5513_v59  ;;  %v3440_v25 = vsel %vm472_vm1, %v3387_v30, 0.0  ;;  %v3815_v23 = vpack.c.bf16 %v3128_v46, %v3128_v46 }
 0x204   : > { %v2833_v58 = vadd.f32 %v2780_v24, %v5516_v5  ;;  %v3339_v60 = vadd.f32 %v3338_v11, %v3337_v35  ;;  %v3439_v34 = vadd.f32 %v3438_v50, %v3437_v3  ;;  %v3340_v2 = vsel %vm472_vm1, %v3125_v51, 0.0 }
 0x205   : > { %v4323_v42 = vpop.f32.mrf.mxu1  ;;  %v3442_v63 = vsel %vm472_vm1, %v3388_v14, 0.0  ;;  %v3813_v19 = vpack.c.bf16 %v3126_v13, %v3126_v13  ;;  %v3389_v22 = vmul.f32 %v3126_v13, %v3126_v13  ;;  %v3087_v36 = vpop.f32.mrf.mxu0  ;;  %3289 = vst.msk [vmem:[%s5469_s9 + $0x68] sm:$0xf] %vm3262_vm4, %v3815_v23  ;;  %v3129_v1 = vadd.f32 %v4354_v52, %v2835_v43 }
 0x206   : > { %v3441_v44 = vadd.f32 %v3440_v25, %v3439_v34  ;;  %v3341_v59 = vadd.f32 %v3340_v2, %v3339_v60  ;;  %v3127_v5 = vadd.f32 %v3074_v9, %v2833_v58  ;;  %v3346_v26 = vsel %vm472_vm1, %v3128_v46, 0.0 }
 0x207   : > { %v2793_v15 = vpop.f32.mrf.mxu1  ;;  %3287 = vst.msk [vmem:[%s5469_s9 + $0x60] sm:$0xf] %vm3262_vm4, %v3813_v19  ;;  %v3342_v28 = vsel %vm472_vm1, %v3126_v13, 0.0  ;;  %v2838_v10 = vadd.f32 %v4323_v42, %v5523_v62  ;;  %v3391_v7 = vmul.f32 %v3128_v46, %v3128_v46  ;;  %v3816_v6 = vpack.c.bf16 %v3129_v1, %v3129_v1  ;;  %v4358_v56 = vpop.f32.mrf.mxu0 }
 0x208   : > { %v2836_v29 = vadd.f32 %v2793_v15, %v5560_v45  ;;  %v3343_v27 = vadd.f32 %v3342_v28, %v3341_v59  ;;  %v3443_v12 = vadd.f32 %v3442_v63, %v3441_v44  ;;  %v3444_v17 = vsel %vm472_vm1, %v3389_v22, 0.0 }
 0x209   : > { %v4324_v61 = vpop.f32.mrf.mxu1  ;;  %v3814_v48 = vpack.c.bf16 %v3127_v5, %v3127_v5  ;;  %v3344_v52 = vsel %vm472_vm1, %v3127_v5, 0.0  ;;  %v3390_v55 = vmul.f32 %v3127_v5, %v3127_v5  ;;  %3290 = vst.msk [vmem:[%s5469_s9 + $0x6c] sm:$0xf] %vm3262_vm4, %v3816_v6  ;;  %v3132_v62 = vadd.f32 %v4357_v40, %v2838_v10  ;;  %v3090_v32 = vpop.f32.mrf.mxu0 }
 0x20a   : > { %v3445_v38 = vadd.f32 %v3444_v17, %v3443_v12  ;;  %v3345_v41 = vadd.f32 %v3344_v52, %v3343_v27  ;;  %v3130_v20 = vadd.f32 %v3087_v36, %v2836_v29  ;;  %v3392_v33 = vmul.f32 %v3129_v1, %v3129_v1 }
 0x20b   : > { %v2796_v45 = vpop.f32.mrf.mxu1  ;;  %3288 = vst.msk [vmem:[%s5469_s9 + $0x64] sm:$0xf] %vm3262_vm4, %v3814_v48  ;;  %v3446_v51 = vsel %vm472_vm1, %v3390_v55, 0.0  ;;  %v2839_v8 = vadd.f32 %v4324_v61, %v5573_v16  ;;  %v3819_v0 = vpack.c.bf16 %v3132_v62, %v3132_v62  ;;  %v3448_v57 = vsel %vm472_vm1, %v3391_v7, 0.0 }
 0x20c   : > { %v2837_v31 = vadd.f32 %v2796_v45, %v5592_v4  ;;  %v3347_v9 = vadd.f32 %v3346_v26, %v3345_v41  ;;  %v3447_v30 = vadd.f32 %v3446_v51, %v3445_v38  ;;  %v3348_v37 = vsel %vm472_vm1, %v3129_v1, 0.0 }
 0x20d   : > { %v3817_v49 = vpack.c.bf16 %v3130_v20, %v3130_v20  ;;  %v3393_v53 = vmul.f32 %v3130_v20, %v3130_v20  ;;  %3293 = vst.msk [vmem:[%s5469_s9 + $0x78] sm:$0xf] %vm3262_vm4, %v3819_v0  ;;  %v3133_v14 = vadd.f32 %v4358_v56, %v2839_v8  ;;  %v3450_v47 = vsel %vm472_vm1, %v3392_v33, 0.0 }
 0x20e   : > { %v3449_v18 = vadd.f32 %v3448_v57, %v3447_v30  ;;  %v3349_v54 = vadd.f32 %v3348_v37, %v3347_v9  ;;  %v3131_v16 = vadd.f32 %v3090_v32, %v2837_v31  ;;  %v3350_v4 = vsel %vm472_vm1, %v3130_v20, 0.0 }
 0x20f   : > { %3291 = vst.msk [vmem:[%s5469_s9 + $0x70] sm:$0xf] %vm3262_vm4, %v3817_v49  ;;  %v3395_v21 = vmul.f32 %v3132_v62, %v3132_v62  ;;  %v3820_v3 = vpack.c.bf16 %v3133_v14, %v3133_v14  ;;  %v3452_v35 = vsel %vm472_vm1, %v3393_v53, 0.0  ;;  %v3354_v43 = vsel %vm472_vm1, %v3132_v62, 0.0 }
 0x210   : > { %v3351_v39 = vadd.f32 %v3350_v4, %v3349_v54  ;;  %v3451_v40 = vadd.f32 %v3450_v47, %v3449_v18  ;;  %v3818_v46 = vpack.c.bf16 %v3131_v16, %v3131_v16  ;;  %v3352_v13 = vsel %vm472_vm1, %v3131_v16, 0.0 }
 0x211   : > { %v3394_v24 = vmul.f32 %v3131_v16, %v3131_v16  ;;  %3294 = vst.msk [vmem:[%s5469_s9 + $0x7c] sm:$0xf] %vm3262_vm4, %v3820_v3  ;;  %v3396_v58 = vmul.f32 %v3133_v14, %v3133_v14  ;;  %v3456_v23 = vsel %vm472_vm1, %v3395_v21, 0.0  ;;  %v3356_v42 = vsel %vm472_vm1, %v3133_v14, 0.0 }
 0x212   : > { %v3453_v11 = vadd.f32 %v3452_v35, %v3451_v40  ;;  %v3353_v50 = vadd.f32 %v3352_v13, %v3351_v39  ;;  %3292 = vst.msk [vmem:[%s5469_s9 + $0x74] sm:$0xf] %vm3262_vm4, %v3818_v46 }
 0x213   : > { %v3454_v25 = vsel %vm472_vm1, %v3394_v24, 0.0  ;;  %v3458_v19 = vsel %vm472_vm1, %v3396_v58, 0.0 }
 0x214   : > { %v3355_v60 = vadd.f32 %v3354_v43, %v3353_v50  ;;  %v3455_v34 = vadd.f32 %v3454_v25, %v3453_v11 }
 0x216   : > { %v3357_v2 = vadd.f32 %v3356_v42, %v3355_v60  ;;  %v3457_v63 = vadd.f32 %v3456_v23, %v3455_v34 }
 0x218   : > { %v3358_v22 = vrot.slane %v3357_v2, 4  ;;  %v3459_v36 = vadd.f32 %v3458_v19, %v3457_v63 }
 0x21a   : > { %v3359_v44 = vadd.f32 %v3358_v22, %v3357_v2  ;;  %v3460_v59 = vrot.slane %v3459_v36, 4 }
 0x21c   : > { %v3360_v1 = vrot.slane %v3359_v44, 2  ;;  %v3461_v5 = vadd.f32 %v3460_v59, %v3459_v36 }
 0x21e   : > { %v3361_v15 = vadd.f32 %v3360_v1, %v3359_v44  ;;  %v3462_v26 = vrot.slane %v3461_v5, 2 }
 0x220   : > { %v3362_v28 = vrot.slane %v3361_v15, 1  ;;  %v3463_v10 = vadd.f32 %v3462_v26, %v3461_v5 }
 0x222   : > { %v3363_v29 = vadd.f32 %v3362_v28, %v3361_v15  ;;  %v3464_v7 = vrot.slane %v3463_v10, 1 }
 0x224   : > { %3364 = vst.msk [vmem:[%s293_s11] sm:$0x1] %vm481_vm3, %v3363_v29  ;;  %v3465_v27 = vadd.f32 %v3464_v7, %v3463_v10 }
 0x226   : > { %3466 = vst.msk [vmem:[%s296_s14] sm:$0x1] %vm481_vm3, %v3465_v27 }
 0x227 PF: > { %s17_s21 = sadd.s32 1, %s4386_s21  }
 0x228   : > { %p14_p4 = scmp.ge.s32.totalorder %s17_s21, 4  }
 0x22a   :  { %16 = sbr.rel (!%p14_p4) target bundleno = 1 (0x1), region = 107 }

</bundles_post_ra>
